<compile_context>
chip_gen: v7x
topology: tpu7x:2x2x1
jax: 0.10.0
libtpu: 0.0.40
codegen_flags: <defaults>
</compile_context>

<pallas_src>
import functools

import jax
import jax.numpy as jnp
from jax.experimental import pallas as pl
from jax.experimental.pallas import tpu as pltpu

BN_EPS = 1e-5


# ----------------------------------------------------------------------------
# Conv stage: fused (Cout,K)@(K,M) matmul + BN affine + LeakyReLU (lane-dense M)
# ----------------------------------------------------------------------------
def _conv_matmul_kernel(w_ref, p_ref, s_ref, b_ref, o_ref, *, slope):
    # w: (Cout, K) bf16, p: (K, tm) bf16, s/b: (Cout, 1) f32, o: (Cout, tm) bf16
    acc = jnp.dot(w_ref[...], p_ref[...], preferred_element_type=jnp.float32)
    y = acc * s_ref[...] + b_ref[...]             # f32 epilogue
    y = jnp.where(y >= 0.0, y, slope * y)         # LeakyReLU
    o_ref[...] = y.astype(o_ref.dtype)


def _pick_tm(m):
    for tm in (512, 256, 128):
        if m % tm == 0:
            return tm
    return m


def conv_matmul(w2d, patches_t, scale, bias, *, slope):
    """(Cout, M) = LeakyReLU((w2d @ patches_t) * scale + bias), bf16 MXU ops."""
    cout, k = w2d.shape
    k2, m = patches_t.shape
    assert k == k2
    tm = _pick_tm(m)
    kernel = functools.partial(_conv_matmul_kernel, slope=slope)
    return pl.pallas_call(
        kernel,
        out_shape=jax.ShapeDtypeStruct((cout, m), jnp.bfloat16),
        grid_spec=pltpu.PrefetchScalarGridSpec(
            num_scalar_prefetch=0,
            grid=(m // tm,),
            in_specs=[
                pl.BlockSpec((cout, k), lambda i: (0, 0)),   # weight (resident)
                pl.BlockSpec((k, tm), lambda i: (0, i)),     # patch block
                pl.BlockSpec((cout, 1), lambda i: (0, 0)),   # BN scale
                pl.BlockSpec((cout, 1), lambda i: (0, 0)),   # BN bias
            ],
            out_specs=pl.BlockSpec((cout, tm), lambda i: (0, i)),
        ),
        compiler_params=pltpu.CompilerParams(
            dimension_semantics=("parallel",)),
    )(w2d.astype(jnp.bfloat16), patches_t.astype(jnp.bfloat16),
      scale.reshape(cout, 1).astype(jnp.float32),
      bias.reshape(cout, 1).astype(jnp.float32))


def im2col_t_4x4_s2_p1(x_cbhw):
    """x: (C, B, H, W) -> (K=C*16, M=B*Ho*Wo) transposed patch matrix.

    K ordering is (Cin, kh, kw), matching torch's Conv2d weight.reshape(Cout,-1).
    """
    # TODO(synk): fold this gather into the conv kernel's input DMA (shifted
    # in-kernel matmuls / space-to-depth) to drop the 16x patch expansion for
    # large batches; at these sizes it is <0.5 MiB in bf16.
    c, b, h, w = x_cbhw.shape
    ho, wo = h // 2, w // 2
    xp = jnp.pad(x_cbhw, ((0, 0), (0, 0), (1, 1), (1, 1)))
    cols = []
    for i in range(4):
        for j in range(4):
            cols.append(xp[:, :, i:i + 2 * ho:2, j:j + 2 * wo:2])
    p = jnp.stack(cols, axis=1)                   # (C, 16, B, Ho, Wo)
    return p.reshape(c * 16, b * ho * wo), ho, wo


def conv_bn_lrelu(x_cbhw, weight, scale, bias, *, slope=0.2):
    """Conv2d(k4,s2,p1,bias=False) + BN affine + LeakyReLU in one Pallas call.

    x: (Cin, B, H, W) channel-leading bf16 -> (Cout, B, Ho, Wo) bf16.
    """
    cout = weight.shape[0]
    b = x_cbhw.shape[1]
    patches_t, ho, wo = im2col_t_4x4_s2_p1(x_cbhw)
    w2d = weight.reshape(cout, -1)
    y = conv_matmul(w2d, patches_t, scale, bias, slope=slope)   # (Cout, M)
    return y.reshape(cout, b, ho, wo)


# ----------------------------------------------------------------------------
# Fused MLP tail: fcx + zm1 + zm2 + j1 + (j2 + sigmoid) in a single kernel
# ----------------------------------------------------------------------------
def _tail_kernel(h_ref, zm_ref,
                 fcxw_ref, fcxs_ref, fcxb_ref,
                 z1w_ref, z1s_ref, z1b_ref,
                 z2w_ref, z2s_ref, z2b_ref,
                 j1wx_ref, j1wz_ref, j1s_ref, j1b_ref,
                 j2w_ref, j2b_ref, o_ref):
    slope = 0.01                      # nn.LeakyReLU default
    bf = jnp.bfloat16

    def lrelu(v):
        return jnp.where(v >= 0.0, v, slope * v)

    # infer_x tail: Linear(ndf*256 -> 512) + BN1d + LeakyReLU (+Dropout = id)
    out_x = lrelu(jnp.dot(h_ref[...], fcxw_ref[...],
                          preferred_element_type=jnp.float32)
                  * fcxs_ref[...] + fcxb_ref[...])              # (B, 512) f32

    # infer_zm: two Linear + BN1d + LeakyReLU blocks
    out_z = lrelu(jnp.dot(zm_ref[...], z1w_ref[...],
                          preferred_element_type=jnp.float32)
                  * z1s_ref[...] + z1b_ref[...])                # (B, 128)
    out_z = lrelu(jnp.dot(out_z.astype(bf), z2w_ref[...],
                          preferred_element_type=jnp.float32)
                  * z2s_ref[...] + z2b_ref[...])                # (B, 128)

    # infer_joint: Linear(640->640) on cat([out_x, out_z]) as a split matmul
    # (avoids an in-kernel concatenate; mathematically identical).
    j = (jnp.dot(out_x.astype(bf), j1wx_ref[...],
                 preferred_element_type=jnp.float32)
         + jnp.dot(out_z.astype(bf), j1wz_ref[...],
                   preferred_element_type=jnp.float32))
    j = lrelu(j * j1s_ref[...] + j1b_ref[...])                  # (B, 640)

    # Final Linear(640 -> 1) + Sigmoid as a lane reduction (no N=1 MXU matmul)
    logit = jnp.sum(j * j2w_ref[...], axis=-1, keepdims=True) + j2b_ref[...]
    o_ref[...] = 1.0 / (1.0 + jnp.exp(-logit))                  # f32 sigmoid


def _bn_affine(gamma, beta, mean, var):
    s = gamma / jnp.sqrt(var + BN_EPS)
    return s, beta - mean * s


def _linear_bn_fold(lin_bias, gamma, beta, mean, var):
    s, b0 = _bn_affine(gamma, beta, mean, var)
    return s, lin_bias * s + b0


def mlp_tail(h, zm, p):
    b = h.shape[0]
    bf = jnp.bfloat16
    fcx_s, fcx_b = _linear_bn_fold(p['fcx_b'], p['bnx_g'], p['bnx_b'],
                                   p['bnx_m'], p['bnx_v'])
    z1_s, z1_b = _linear_bn_fold(p['zm1_b'], p['bnz1_g'], p['bnz1_b'],
                                 p['bnz1_m'], p['bnz1_v'])
    z2_s, z2_b = _linear_bn_fold(p['zm2_b'], p['bnz2_g'], p['bnz2_b'],
                                 p['bnz2_m'], p['bnz2_v'])
    j1_s, j1_b = _linear_bn_fold(p['j1_b'], p['bnj_g'], p['bnj_b'],
                                 p['bnj_m'], p['bnj_v'])

    fcx_w = p['fcx_w'].T.astype(bf)          # (ndf*256, 512)
    z1_w = p['zm1_w'].T.astype(bf)           # (dim_z_motion, 128)
    z2_w = p['zm2_w'].T.astype(bf)           # (128, 128)
    j1_wt = p['j1_w'].T                      # (640, 640), rows = joint inputs
    j1_wx = j1_wt[:512].astype(bf)           # out_x slice of joint
    j1_wz = j1_wt[512:].astype(bf)           # out_zm slice of joint
    j2_w = p['j2_w'].reshape(1, -1).astype(jnp.float32)
    j2_b = p['j2_b'].reshape(1, 1).astype(jnp.float32)

    row = lambda v: v.reshape(1, -1).astype(jnp.float32)
    vmem = pl.BlockSpec(memory_space=pltpu.MemorySpace.VMEM)
    return pl.pallas_call(
        _tail_kernel,
        out_shape=jax.ShapeDtypeStruct((b, 1), jnp.float32),
        in_specs=[vmem] * 17,
        out_specs=vmem,
    )(h.astype(bf), zm.astype(bf),
      fcx_w, row(fcx_s), row(fcx_b),
      z1_w, row(z1_s), row(z1_b),
      z2_w, row(z2_s), row(z2_b),
      j1_wx, j1_wz, row(j1_s), row(j1_b),
      j2_w, j2_b)


# ----------------------------------------------------------------------------
# Parameters (deterministic demo values; BN running stats threaded explicitly)
# ----------------------------------------------------------------------------
def init_params(key, n_channels, ndf, dim_z_motion):
    ks = iter(jax.random.split(key, 32))
    nrm = lambda shape, s=0.05: s * jax.random.normal(next(ks), shape,
                                                      jnp.float32)
    uni = lambda shape: jax.random.uniform(next(ks), shape, jnp.float32,
                                           0.5, 1.5)
    zeros = lambda n: jnp.zeros((n,), jnp.float32)
    ones = lambda n: jnp.ones((n,), jnp.float32)
    p = {}
    # ---- infer_x convs ----
    p['conv1_w'] = nrm((ndf, n_channels, 4, 4))
    p['conv2_w'] = nrm((ndf * 2, ndf, 4, 4))
    p['conv3_w'] = nrm((ndf * 4, ndf * 2, 4, 4))
    p['bn2_g'], p['bn2_b'] = uni((ndf * 2,)), nrm((ndf * 2,))
    p['bn2_m'], p['bn2_v'] = zeros(ndf * 2), ones(ndf * 2)
    p['bn3_g'], p['bn3_b'] = uni((ndf * 4,)), nrm((ndf * 4,))
    p['bn3_m'], p['bn3_v'] = zeros(ndf * 4), ones(ndf * 4)
    # ---- infer_x linear ----
    lin_in = ndf * 4 * 4 * 4 * 4           # Linear(ndf*4*4*4*4, 512) -> 64x64 images
    p['fcx_w'], p['fcx_b'] = nrm((512, lin_in)), nrm((512,))
    p['bnx_g'], p['bnx_b'] = uni((512,)), nrm((512,))
    p['bnx_m'], p['bnx_v'] = zeros(512), ones(512)
    # ---- infer_zm ----
    p['zm1_w'], p['zm1_b'] = nrm((128, dim_z_motion)), nrm((128,))
    p['bnz1_g'], p['bnz1_b'] = uni((128,)), nrm((128,))
    p['bnz1_m'], p['bnz1_v'] = zeros(128), ones(128)
    p['zm2_w'], p['zm2_b'] = nrm((128, 128)), nrm((128,))
    p['bnz2_g'], p['bnz2_b'] = uni((128,)), nrm((128,))
    p['bnz2_m'], p['bnz2_v'] = zeros(128), ones(128)
    # ---- infer_joint ----
    p['j1_w'], p['j1_b'] = nrm((640, 640)), nrm((640,))
    p['bnj_g'], p['bnj_b'] = uni((640,)), nrm((640,))
    p['bnj_m'], p['bnj_v'] = zeros(640), ones(640)
    p['j2_w'], p['j2_b'] = nrm((1, 640)), nrm((1,))
    return p


# ----------------------------------------------------------------------------
# Forward pass (ImageDiscriminator.forward, inference semantics)
# ----------------------------------------------------------------------------
def image_discriminator_forward(params, x, zm, ndf):
    p = params
    b = x.shape[0]
    # Channel-leading layout (C, B, H, W); bf16 activations between convs.
    h = jnp.transpose(x, (1, 0, 2, 3)).astype(jnp.bfloat16)

    # conv1 (no BN): identity affine
    h = conv_bn_lrelu(h, p['conv1_w'],
                      jnp.ones((ndf,), jnp.float32),
                      jnp.zeros((ndf,), jnp.float32), slope=0.2)
    s2, b2 = _bn_affine(p['bn2_g'], p['bn2_b'], p['bn2_m'], p['bn2_v'])
    h = conv_bn_lrelu(h, p['conv2_w'], s2, b2, slope=0.2)
    s3, b3 = _bn_affine(p['bn3_g'], p['bn3_b'], p['bn3_m'], p['bn3_v'])
    h = conv_bn_lrelu(h, p['conv3_w'], s3, b3, slope=0.2)   # (ndf*4, B, 8, 8)

    # torch Flatten: (B, C*H*W) channel-major per batch (tiny layout fixup).
    hflat = jnp.transpose(h, (1, 0, 2, 3)).reshape(b, -1)

    out = mlp_tail(hflat, zm, p)                            # (B, 1) f32
    return jnp.squeeze(out)                                 # (B,)


# ----------------------------------------------------------------------------
if __name__ == "__main__":
    # Small but architecture-consistent shapes: the hard-coded
    # Linear(ndf*4*4*4*4, 512) implies 64x64 input images.
    B = 2
    n_channels = 3
    ndf = 8
    H = W = 64
    dim_z_motion = 10
    dim_z_content = 50     # unused in forward
    dropout = 0.3          # eval mode -> identity

    key = jax.random.PRNGKey(0)
    kp, kx, kz = jax.random.split(key, 3)
    params = init_params(kp, n_channels, ndf, dim_z_motion)
    x = jax.random.normal(kx, (B, n_channels, H, W), jnp.float32)
    zm = jax.random.normal(kz, (B, dim_z_motion), jnp.float32)

    fwd = jax.jit(functools.partial(image_discriminator_forward, ndf=ndf))
    out = fwd(params, x, zm)
    out = jax.block_until_ready(out)

    assert out.shape == (B,), out.shape
    assert bool(jnp.all(jnp.isfinite(out)))
    assert bool(jnp.all((out >= 0.0) & (out <= 1.0)))   # sigmoid output
    print("KERNEL_OK")
</pallas_src>

<mosaic_0001>
module attributes {stable_mosaic.version = 11 : i64} {
  func.func @_conv_matmul_kernel(%arg0: i32, %arg1: memref<8x48xbf16, #tpu.memory_space<vmem>>, %arg2: memref<48x512xbf16, #tpu.memory_space<vmem>>, %arg3: memref<8x1xf32, #tpu.memory_space<vmem>>, %arg4: memref<8x1xf32, #tpu.memory_space<vmem>>, %arg5: memref<8x512xbf16, #tpu.memory_space<vmem>>) attributes {dimension_semantics = [#tpu.dimension_semantics<parallel>], iteration_bounds = array<i64: 4>, scalar_prefetch = 0 : i64, scratch_operands = 0 : i64, tpu.core_type = #tpu.core_type<tc>, window_params = [{pipeline_mode = #tpu.pipeline_mode<synchronous>, transform_indices = @transform_0, window_bounds = array<i64: 8, 48>}, {transform_indices = @transform_1, window_bounds = array<i64: 48, 512>}, {pipeline_mode = #tpu.pipeline_mode<synchronous>, transform_indices = @transform_2, window_bounds = array<i64: 8, 1>}, {pipeline_mode = #tpu.pipeline_mode<synchronous>, transform_indices = @transform_3, window_bounds = array<i64: 8, 1>}, {transform_indices = @transform_4, window_bounds = array<i64: 8, 512>}]} {
    %c0 = arith.constant 0 : index
    %c0_0 = arith.constant 0 : index
    %0 = vector.load %arg1[%c0, %c0_0] : memref<8x48xbf16, #tpu.memory_space<vmem>>, vector<8x48xbf16>
    %c0_1 = arith.constant 0 : index
    %c0_2 = arith.constant 0 : index
    %1 = vector.load %arg2[%c0_1, %c0_2] : memref<48x512xbf16, #tpu.memory_space<vmem>>, vector<48x512xbf16>
    %cst = arith.constant dense<0.000000e+00> : vector<8x512xf32>
    %2 = tpu.matmul %0, %1, %cst {dimension_numbers = #tpu.dot_dimension_numbers<[1], [0], [0], [1], [0, 0, 1, 1], [], []>} : vector<8x48xbf16>, vector<48x512xbf16>, vector<8x512xf32> -> vector<8x512xf32>
    %c0_3 = arith.constant 0 : index
    %c0_4 = arith.constant 0 : index
    %3 = vector.load %arg3[%c0_3, %c0_4] : memref<8x1xf32, #tpu.memory_space<vmem>>, vector<8x1xf32>
    %4 = vector.broadcast %3 : vector<8x1xf32> to vector<8x512xf32>
    %5 = arith.mulf %2, %4 : vector<8x512xf32>
    %c0_5 = arith.constant 0 : index
    %c0_6 = arith.constant 0 : index
    %6 = vector.load %arg4[%c0_5, %c0_6] : memref<8x1xf32, #tpu.memory_space<vmem>>, vector<8x1xf32>
    %7 = vector.broadcast %6 : vector<8x1xf32> to vector<8x512xf32>
    %8 = arith.addf %5, %7 : vector<8x512xf32>
    %cst_7 = arith.constant 0.000000e+00 : f32
    %9 = vector.broadcast %cst_7 : f32 to vector<8x512xf32>
    %10 = arith.cmpf oge, %8, %9 : vector<8x512xf32>
    %cst_8 = arith.constant 2.000000e-01 : f32
    %11 = vector.broadcast %cst_8 : f32 to vector<8x512xf32>
    %12 = arith.mulf %11, %8 : vector<8x512xf32>
    %13 = arith.select %10, %8, %12 : vector<8x512xi1>, vector<8x512xf32>
    %14 = arith.truncf %13 : vector<8x512xf32> to vector<8x512xbf16>
    %c0_9 = arith.constant 0 : index
    %c0_10 = arith.constant 0 : index
    %15 = vector.load %arg5[%c0_9, %c0_10] : memref<8x512xbf16, #tpu.memory_space<vmem>>, vector<8x512xbf16>
    tpu.vector_store %arg5[%c0_9, %c0_10], %14 {strides = array<i32>} : memref<8x512xbf16, #tpu.memory_space<vmem>>, vector<8x512xbf16>,
    return
  }
  func.func @transform_0(%arg0: i32) -> (i32, i32) {
    %c0_i32 = arith.constant 0 : i32
    %c0_i32_0 = arith.constant 0 : i32
    %c0_i32_1 = arith.constant 0 : i32
    return %c0_i32, %c0_i32_0 : i32, i32
  }
  func.func @transform_1(%arg0: i32) -> (i32, i32) {
    %c0_i32 = arith.constant 0 : i32
    %c0_i32_0 = arith.constant 0 : i32
    return %c0_i32, %arg0 : i32, i32
  }
  func.func @transform_2(%arg0: i32) -> (i32, i32) {
    %c0_i32 = arith.constant 0 : i32
    %c0_i32_0 = arith.constant 0 : i32
    %c0_i32_1 = arith.constant 0 : i32
    return %c0_i32, %c0_i32_0 : i32, i32
  }
  func.func @transform_3(%arg0: i32) -> (i32, i32) {
    %c0_i32 = arith.constant 0 : i32
    %c0_i32_0 = arith.constant 0 : i32
    %c0_i32_1 = arith.constant 0 : i32
    return %c0_i32, %c0_i32_0 : i32, i32
  }
  func.func @transform_4(%arg0: i32) -> (i32, i32) {
    %c0_i32 = arith.constant 0 : i32
    %c0_i32_0 = arith.constant 0 : i32
    return %c0_i32, %arg0 : i32, i32
  }
}

module attributes {stable_mosaic.version = 11 : i64} {
  func.func @_conv_matmul_kernel(%arg0: i32, %arg1: memref<16x128xbf16, #tpu.memory_space<vmem>>, %arg2: memref<128x512xbf16, #tpu.memory_space<vmem>>, %arg3: memref<16x1xf32, #tpu.memory_space<vmem>>, %arg4: memref<16x1xf32, #tpu.memory_space<vmem>>, %arg5: memref<16x512xbf16, #tpu.memory_space<vmem>>) attributes {dimension_semantics = [#tpu.dimension_semantics<parallel>], iteration_bounds = array<i64: 1>, scalar_prefetch = 0 : i64, scratch_operands = 0 : i64, tpu.core_type = #tpu.core_type<tc>, window_params = [{pipeline_mode = #tpu.pipeline_mode<synchronous>, transform_indices = @transform_0, window_bounds = array<i64: 16, 128>}, {transform_indices = @transform_1, window_bounds = array<i64: 128, 512>}, {pipeline_mode = #tpu.pipeline_mode<synchronous>, transform_indices = @transform_2, window_bounds = array<i64: 16, 1>}, {pipeline_mode = #tpu.pipeline_mode<synchronous>, transform_indices = @transform_3, window_bounds = array<i64: 16, 1>}, {transform_indices = @transform_4, window_bounds = array<i64: 16, 512>}]} {
    %c0 = arith.constant 0 : index
    %c0_0 = arith.constant 0 : index
    %0 = vector.load %arg1[%c0, %c0_0] : memref<16x128xbf16, #tpu.memory_space<vmem>>, vector<16x128xbf16>
    %c0_1 = arith.constant 0 : index
    %c0_2 = arith.constant 0 : index
    %1 = vector.load %arg2[%c0_1, %c0_2] : memref<128x512xbf16, #tpu.memory_space<vmem>>, vector<128x512xbf16>
    %cst = arith.constant dense<0.000000e+00> : vector<16x512xf32>
    %2 = tpu.matmul %0, %1, %cst {dimension_numbers = #tpu.dot_dimension_numbers<[1], [0], [0], [1], [0, 0, 1, 1], [], []>} : vector<16x128xbf16>, vector<128x512xbf16>, vector<16x512xf32> -> vector<16x512xf32>
    %c0_3 = arith.constant 0 : index
    %c0_4 = arith.constant 0 : index
    %3 = vector.load %arg3[%c0_3, %c0_4] : memref<16x1xf32, #tpu.memory_space<vmem>>, vector<16x1xf32>
    %4 = vector.broadcast %3 : vector<16x1xf32> to vector<16x512xf32>
    %5 = arith.mulf %2, %4 : vector<16x512xf32>
    %c0_5 = arith.constant 0 : index
    %c0_6 = arith.constant 0 : index
    %6 = vector.load %arg4[%c0_5, %c0_6] : memref<16x1xf32, #tpu.memory_space<vmem>>, vector<16x1xf32>
    %7 = vector.broadcast %6 : vector<16x1xf32> to vector<16x512xf32>
    %8 = arith.addf %5, %7 : vector<16x512xf32>
    %cst_7 = arith.constant 0.000000e+00 : f32
    %9 = vector.broadcast %cst_7 : f32 to vector<16x512xf32>
    %10 = arith.cmpf oge, %8, %9 : vector<16x512xf32>
    %cst_8 = arith.constant 2.000000e-01 : f32
    %11 = vector.broadcast %cst_8 : f32 to vector<16x512xf32>
    %12 = arith.mulf %11, %8 : vector<16x512xf32>
    %13 = arith.select %10, %8, %12 : vector<16x512xi1>, vector<16x512xf32>
    %14 = arith.truncf %13 : vector<16x512xf32> to vector<16x512xbf16>
    %c0_9 = arith.constant 0 : index
    %c0_10 = arith.constant 0 : index
    %15 = vector.load %arg5[%c0_9, %c0_10] : memref<16x512xbf16, #tpu.memory_space<vmem>>, vector<16x512xbf16>
    tpu.vector_store %arg5[%c0_9, %c0_10], %14 {strides = array<i32>} : memref<16x512xbf16, #tpu.memory_space<vmem>>, vector<16x512xbf16>,
    return
  }
  func.func @transform_0(%arg0: i32) -> (i32, i32) {
    %c0_i32 = arith.constant 0 : i32
    %c0_i32_0 = arith.constant 0 : i32
    %c0_i32_1 = arith.constant 0 : i32
    return %c0_i32, %c0_i32_0 : i32, i32
  }
  func.func @transform_1(%arg0: i32) -> (i32, i32) {
    %c0_i32 = arith.constant 0 : i32
    %c0_i32_0 = arith.constant 0 : i32
    return %c0_i32, %arg0 : i32, i32
  }
  func.func @transform_2(%arg0: i32) -> (i32, i32) {
    %c0_i32 = arith.constant 0 : i32
    %c0_i32_0 = arith.constant 0 : i32
    %c0_i32_1 = arith.constant 0 : i32
    return %c0_i32, %c0_i32_0 : i32, i32
  }
  func.func @transform_3(%arg0: i32) -> (i32, i32) {
    %c0_i32 = arith.constant 0 : i32
    %c0_i32_0 = arith.constant 0 : i32
    %c0_i32_1 = arith.constant 0 : i32
    return %c0_i32, %c0_i32_0 : i32, i32
  }
  func.func @transform_4(%arg0: i32) -> (i32, i32) {
    %c0_i32 = arith.constant 0 : i32
    %c0_i32_0 = arith.constant 0 : i32
    return %c0_i32, %arg0 : i32, i32
  }
}

module attributes {stable_mosaic.version = 11 : i64} {
  func.func @_conv_matmul_kernel(%arg0: i32, %arg1: memref<32x256xbf16, #tpu.memory_space<vmem>>, %arg2: memref<256x128xbf16, #tpu.memory_space<vmem>>, %arg3: memref<32x1xf32, #tpu.memory_space<vmem>>, %arg4: memref<32x1xf32, #tpu.memory_space<vmem>>, %arg5: memref<32x128xbf16, #tpu.memory_space<vmem>>) attributes {dimension_semantics = [#tpu.dimension_semantics<parallel>], iteration_bounds = array<i64: 1>, scalar_prefetch = 0 : i64, scratch_operands = 0 : i64, tpu.core_type = #tpu.core_type<tc>, window_params = [{pipeline_mode = #tpu.pipeline_mode<synchronous>, transform_indices = @transform_0, window_bounds = array<i64: 32, 256>}, {transform_indices = @transform_1, window_bounds = array<i64: 256, 128>}, {pipeline_mode = #tpu.pipeline_mode<synchronous>, transform_indices = @transform_2, window_bounds = array<i64: 32, 1>}, {pipeline_mode = #tpu.pipeline_mode<synchronous>, transform_indices = @transform_3, window_bounds = array<i64: 32, 1>}, {transform_indices = @transform_4, window_bounds = array<i64: 32, 128>}]} {
    %c0 = arith.constant 0 : index
    %c0_0 = arith.constant 0 : index
    %0 = vector.load %arg1[%c0, %c0_0] : memref<32x256xbf16, #tpu.memory_space<vmem>>, vector<32x256xbf16>
    %c0_1 = arith.constant 0 : index
    %c0_2 = arith.constant 0 : index
    %1 = vector.load %arg2[%c0_1, %c0_2] : memref<256x128xbf16, #tpu.memory_space<vmem>>, vector<256x128xbf16>
    %cst = arith.constant dense<0.000000e+00> : vector<32x128xf32>
    %2 = tpu.matmul %0, %1, %cst {dimension_numbers = #tpu.dot_dimension_numbers<[1], [0], [0], [1], [0, 0, 1, 1], [], []>} : vector<32x256xbf16>, vector<256x128xbf16>, vector<32x128xf32> -> vector<32x128xf32>
    %c0_3 = arith.constant 0 : index
    %c0_4 = arith.constant 0 : index
    %3 = vector.load %arg3[%c0_3, %c0_4] : memref<32x1xf32, #tpu.memory_space<vmem>>, vector<32x1xf32>
    %4 = vector.broadcast %3 : vector<32x1xf32> to vector<32x128xf32>
    %5 = arith.mulf %2, %4 : vector<32x128xf32>
    %c0_5 = arith.constant 0 : index
    %c0_6 = arith.constant 0 : index
    %6 = vector.load %arg4[%c0_5, %c0_6] : memref<32x1xf32, #tpu.memory_space<vmem>>, vector<32x1xf32>
    %7 = vector.broadcast %6 : vector<32x1xf32> to vector<32x128xf32>
    %8 = arith.addf %5, %7 : vector<32x128xf32>
    %cst_7 = arith.constant 0.000000e+00 : f32
    %9 = vector.broadcast %cst_7 : f32 to vector<32x128xf32>
    %10 = arith.cmpf oge, %8, %9 : vector<32x128xf32>
    %cst_8 = arith.constant 2.000000e-01 : f32
    %11 = vector.broadcast %cst_8 : f32 to vector<32x128xf32>
    %12 = arith.mulf %11, %8 : vector<32x128xf32>
    %13 = arith.select %10, %8, %12 : vector<32x128xi1>, vector<32x128xf32>
    %14 = arith.truncf %13 : vector<32x128xf32> to vector<32x128xbf16>
    %c0_9 = arith.constant 0 : index
    %c0_10 = arith.constant 0 : index
    %15 = vector.load %arg5[%c0_9, %c0_10] : memref<32x128xbf16, #tpu.memory_space<vmem>>, vector<32x128xbf16>
    tpu.vector_store %arg5[%c0_9, %c0_10], %14 {strides = array<i32>} : memref<32x128xbf16, #tpu.memory_space<vmem>>, vector<32x128xbf16>,
    return
  }
  func.func @transform_0(%arg0: i32) -> (i32, i32) {
    %c0_i32 = arith.constant 0 : i32
    %c0_i32_0 = arith.constant 0 : i32
    %c0_i32_1 = arith.constant 0 : i32
    return %c0_i32, %c0_i32_0 : i32, i32
  }
  func.func @transform_1(%arg0: i32) -> (i32, i32) {
    %c0_i32 = arith.constant 0 : i32
    %c0_i32_0 = arith.constant 0 : i32
    return %c0_i32, %arg0 : i32, i32
  }
  func.func @transform_2(%arg0: i32) -> (i32, i32) {
    %c0_i32 = arith.constant 0 : i32
    %c0_i32_0 = arith.constant 0 : i32
    %c0_i32_1 = arith.constant 0 : i32
    return %c0_i32, %c0_i32_0 : i32, i32
  }
  func.func @transform_3(%arg0: i32) -> (i32, i32) {
    %c0_i32 = arith.constant 0 : i32
    %c0_i32_0 = arith.constant 0 : i32
    %c0_i32_1 = arith.constant 0 : i32
    return %c0_i32, %c0_i32_0 : i32, i32
  }
  func.func @transform_4(%arg0: i32) -> (i32, i32) {
    %c0_i32 = arith.constant 0 : i32
    %c0_i32_0 = arith.constant 0 : i32
    return %c0_i32, %arg0 : i32, i32
  }
}

module attributes {stable_mosaic.version = 11 : i64} {
  func.func @_tail_kernel(%arg0: memref<2x2048xbf16, #tpu.memory_space<vmem>>, %arg1: memref<2x10xbf16, #tpu.memory_space<vmem>>, %arg2: memref<2048x512xbf16, #tpu.memory_space<vmem>>, %arg3: memref<1x512xf32, #tpu.memory_space<vmem>>, %arg4: memref<1x512xf32, #tpu.memory_space<vmem>>, %arg5: memref<10x128xbf16, #tpu.memory_space<vmem>>, %arg6: memref<1x128xf32, #tpu.memory_space<vmem>>, %arg7: memref<1x128xf32, #tpu.memory_space<vmem>>, %arg8: memref<128x128xbf16, #tpu.memory_space<vmem>>, %arg9: memref<1x128xf32, #tpu.memory_space<vmem>>, %arg10: memref<1x128xf32, #tpu.memory_space<vmem>>, %arg11: memref<512x640xbf16, #tpu.memory_space<vmem>>, %arg12: memref<128x640xbf16, #tpu.memory_space<vmem>>, %arg13: memref<1x640xf32, #tpu.memory_space<vmem>>, %arg14: memref<1x640xf32, #tpu.memory_space<vmem>>, %arg15: memref<1x640xf32, #tpu.memory_space<vmem>>, %arg16: memref<1x1xf32, #tpu.memory_space<vmem>>, %arg17: memref<2x1xf32, #tpu.memory_space<vmem>>) attributes {dimension_semantics = [], scalar_prefetch = 0 : i64, scratch_operands = 0 : i64, tpu.core_type = #tpu.core_type<tc>} {
    %c0 = arith.constant 0 : index
    %c0_0 = arith.constant 0 : index
    %0 = vector.load %arg0[%c0, %c0_0] : memref<2x2048xbf16, #tpu.memory_space<vmem>>, vector<2x2048xbf16>
    %c0_1 = arith.constant 0 : index
    %c0_2 = arith.constant 0 : index
    %1 = vector.load %arg2[%c0_1, %c0_2] : memref<2048x512xbf16, #tpu.memory_space<vmem>>, vector<2048x512xbf16>
    %cst = arith.constant dense<0.000000e+00> : vector<2x512xf32>
    %2 = tpu.matmul %0, %1, %cst {dimension_numbers = #tpu.dot_dimension_numbers<[1], [0], [0], [1], [0, 0, 1, 1], [], []>} : vector<2x2048xbf16>, vector<2048x512xbf16>, vector<2x512xf32> -> vector<2x512xf32>
    %c0_3 = arith.constant 0 : index
    %c0_4 = arith.constant 0 : index
    %3 = vector.load %arg3[%c0_3, %c0_4] : memref<1x512xf32, #tpu.memory_space<vmem>>, vector<1x512xf32>
    %4 = vector.broadcast %3 : vector<1x512xf32> to vector<2x512xf32>
    %5 = arith.mulf %2, %4 : vector<2x512xf32>
    %c0_5 = arith.constant 0 : index
    %c0_6 = arith.constant 0 : index
    %6 = vector.load %arg4[%c0_5, %c0_6] : memref<1x512xf32, #tpu.memory_space<vmem>>, vector<1x512xf32>
    %7 = vector.broadcast %6 : vector<1x512xf32> to vector<2x512xf32>
    %8 = arith.addf %5, %7 : vector<2x512xf32>
    %cst_7 = arith.constant 0.000000e+00 : f32
    %9 = vector.broadcast %cst_7 : f32 to vector<2x512xf32>
    %10 = arith.cmpf oge, %8, %9 : vector<2x512xf32>
    %cst_8 = arith.constant 0.00999999977 : f32
    %11 = vector.broadcast %cst_8 : f32 to vector<2x512xf32>
    %12 = arith.mulf %11, %8 : vector<2x512xf32>
    %13 = arith.select %10, %8, %12 : vector<2x512xi1>, vector<2x512xf32>
    %c0_9 = arith.constant 0 : index
    %c0_10 = arith.constant 0 : index
    %14 = vector.load %arg1[%c0_9, %c0_10] : memref<2x10xbf16, #tpu.memory_space<vmem>>, vector<2x10xbf16>
    %c0_11 = arith.constant 0 : index
    %c0_12 = arith.constant 0 : index
    %15 = vector.load %arg5[%c0_11, %c0_12] : memref<10x128xbf16, #tpu.memory_space<vmem>>, vector<10x128xbf16>
    %cst_13 = arith.constant dense<0.000000e+00> : vector<2x128xf32>
    %16 = tpu.matmul %14, %15, %cst_13 {dimension_numbers = #tpu.dot_dimension_numbers<[1], [0], [0], [1], [0, 0, 1, 1], [], []>} : vector<2x10xbf16>, vector<10x128xbf16>, vector<2x128xf32> -> vector<2x128xf32>
    %c0_14 = arith.constant 0 : index
    %c0_15 = arith.constant 0 : index
    %17 = vector.load %arg6[%c0_14, %c0_15] : memref<1x128xf32, #tpu.memory_space<vmem>>, vector<1x128xf32>
    %18 = vector.broadcast %17 : vector<1x128xf32> to vector<2x128xf32>
    %19 = arith.mulf %16, %18 : vector<2x128xf32>
    %c0_16 = arith.constant 0 : index
    %c0_17 = arith.constant 0 : index
    %20 = vector.load %arg7[%c0_16, %c0_17] : memref<1x128xf32, #tpu.memory_space<vmem>>, vector<1x128xf32>
    %21 = vector.broadcast %20 : vector<1x128xf32> to vector<2x128xf32>
    %22 = arith.addf %19, %21 : vector<2x128xf32>
    %cst_18 = arith.constant 0.000000e+00 : f32
    %23 = vector.broadcast %cst_18 : f32 to vector<2x128xf32>
    %24 = arith.cmpf oge, %22, %23 : vector<2x128xf32>
    %cst_19 = arith.constant 0.00999999977 : f32
    %25 = vector.broadcast %cst_19 : f32 to vector<2x128xf32>
    %26 = arith.mulf %25, %22 : vector<2x128xf32>
    %27 = arith.select %24, %22, %26 : vector<2x128xi1>, vector<2x128xf32>
    %28 = arith.truncf %27 : vector<2x128xf32> to vector<2x128xbf16>
    %c0_20 = arith.constant 0 : index
    %c0_21 = arith.constant 0 : index
    %29 = vector.load %arg8[%c0_20, %c0_21] : memref<128x128xbf16, #tpu.memory_space<vmem>>, vector<128x128xbf16>
    %cst_22 = arith.constant dense<0.000000e+00> : vector<2x128xf32>
    %30 = tpu.matmul %28, %29, %cst_22 {dimension_numbers = #tpu.dot_dimension_numbers<[1], [0], [0], [1], [0, 0, 1, 1], [], []>} : vector<2x128xbf16>, vector<128x128xbf16>, vector<2x128xf32> -> vector<2x128xf32>
    %c0_23 = arith.constant 0 : index
    %c0_24 = arith.constant 0 : index
    %31 = vector.load %arg9[%c0_23, %c0_24] : memref<1x128xf32, #tpu.memory_space<vmem>>, vector<1x128xf32>
    %32 = vector.broadcast %31 : vector<1x128xf32> to vector<2x128xf32>
    %33 = arith.mulf %30, %32 : vector<2x128xf32>
    %c0_25 = arith.constant 0 : index
    %c0_26 = arith.constant 0 : index
    %34 = vector.load %arg10[%c0_25, %c0_26] : memref<1x128xf32, #tpu.memory_space<vmem>>, vector<1x128xf32>
    %35 = vector.broadcast %34 : vector<1x128xf32> to vector<2x128xf32>
    %36 = arith.addf %33, %35 : vector<2x128xf32>
    %cst_27 = arith.constant 0.000000e+00 : f32
    %37 = vector.broadcast %cst_27 : f32 to vector<2x128xf32>
    %38 = arith.cmpf oge, %36, %37 : vector<2x128xf32>
    %cst_28 = arith.constant 0.00999999977 : f32
    %39 = vector.broadcast %cst_28 : f32 to vector<2x128xf32>
    %40 = arith.mulf %39, %36 : vector<2x128xf32>
    %41 = arith.select %38, %36, %40 : vector<2x128xi1>, vector<2x128xf32>
    %42 = arith.truncf %13 : vector<2x512xf32> to vector<2x512xbf16>
    %c0_29 = arith.constant 0 : index
    %c0_30 = arith.constant 0 : index
    %43 = vector.load %arg11[%c0_29, %c0_30] : memref<512x640xbf16, #tpu.memory_space<vmem>>, vector<512x640xbf16>
    %cst_31 = arith.constant dense<0.000000e+00> : vector<2x640xf32>
    %44 = tpu.matmul %42, %43, %cst_31 {dimension_numbers = #tpu.dot_dimension_numbers<[1], [0], [0], [1], [0, 0, 1, 1], [], []>} : vector<2x512xbf16>, vector<512x640xbf16>, vector<2x640xf32> -> vector<2x640xf32>
    %45 = arith.truncf %41 : vector<2x128xf32> to vector<2x128xbf16>
    %c0_32 = arith.constant 0 : index
    %c0_33 = arith.constant 0 : index
    %46 = vector.load %arg12[%c0_32, %c0_33] : memref<128x640xbf16, #tpu.memory_space<vmem>>, vector<128x640xbf16>
    %cst_34 = arith.constant dense<0.000000e+00> : vector<2x640xf32>
    %47 = tpu.matmul %45, %46, %cst_34 {dimension_numbers = #tpu.dot_dimension_numbers<[1], [0], [0], [1], [0, 0, 1, 1], [], []>} : vector<2x128xbf16>, vector<128x640xbf16>, vector<2x640xf32> -> vector<2x640xf32>
    %48 = arith.addf %44, %47 : vector<2x640xf32>
    %c0_35 = arith.constant 0 : index
    %c0_36 = arith.constant 0 : index
    %49 = vector.load %arg13[%c0_35, %c0_36] : memref<1x640xf32, #tpu.memory_space<vmem>>, vector<1x640xf32>
    %50 = vector.broadcast %49 : vector<1x640xf32> to vector<2x640xf32>
    %51 = arith.mulf %48, %50 : vector<2x640xf32>
    %c0_37 = arith.constant 0 : index
    %c0_38 = arith.constant 0 : index
    %52 = vector.load %arg14[%c0_37, %c0_38] : memref<1x640xf32, #tpu.memory_space<vmem>>, vector<1x640xf32>
    %53 = vector.broadcast %52 : vector<1x640xf32> to vector<2x640xf32>
    %54 = arith.addf %51, %53 : vector<2x640xf32>
    %cst_39 = arith.constant 0.000000e+00 : f32
    %55 = vector.broadcast %cst_39 : f32 to vector<2x640xf32>
    %56 = arith.cmpf oge, %54, %55 : vector<2x640xf32>
    %cst_40 = arith.constant 0.00999999977 : f32
    %57 = vector.broadcast %cst_40 : f32 to vector<2x640xf32>
    %58 = arith.mulf %57, %54 : vector<2x640xf32>
    %59 = arith.select %56, %54, %58 : vector<2x640xi1>, vector<2x640xf32>
    %c0_41 = arith.constant 0 : index
    %c0_42 = arith.constant 0 : index
    %60 = vector.load %arg15[%c0_41, %c0_42] : memref<1x640xf32, #tpu.memory_space<vmem>>, vector<1x640xf32>
    %61 = vector.broadcast %60 : vector<1x640xf32> to vector<2x640xf32>
    %62 = arith.mulf %59, %61 : vector<2x640xf32>
    %cst_43 = arith.constant dense<0.000000e+00> : vector<2xf32>
    %63 = vector.multi_reduction <add>, %62, %cst_43 [1] : vector<2x640xf32> to vector<2xf32>
    %64 = vector.shape_cast %63 : vector<2xf32> to vector<2x1xf32>
    %c0_44 = arith.constant 0 : index
    %c0_45 = arith.constant 0 : index
    %65 = vector.load %arg16[%c0_44, %c0_45] : memref<1x1xf32, #tpu.memory_space<vmem>>, vector<1x1xf32>
    %66 = vector.broadcast %65 : vector<1x1xf32> to vector<2x1xf32>
    %67 = arith.addf %64, %66 : vector<2x1xf32>
    %cst_46 = arith.constant 0.000000e+00 : f32
    %68 = vector.broadcast %cst_46 : f32 to vector<2x1xf32>
    %69 = arith.subf %68, %67 : vector<2x1xf32>
    %70 = math.exp %69 : vector<2x1xf32>
    %cst_47 = arith.constant 1.000000e+00 : f32
    %71 = vector.broadcast %cst_47 : f32 to vector<2x1xf32>
    %72 = arith.addf %71, %70 : vector<2x1xf32>
    %cst_48 = arith.constant 1.000000e+00 : f32
    %73 = vector.broadcast %cst_48 : f32 to vector<2x1xf32>
    %74 = arith.divf %73, %72 : vector<2x1xf32>
    %c0_49 = arith.constant 0 : index
    %c0_50 = arith.constant 0 : index
    %75 = vector.load %arg17[%c0_49, %c0_50] : memref<2x1xf32, #tpu.memory_space<vmem>>, vector<2x1xf32>
    tpu.vector_store %arg17[%c0_49, %c0_50], %74 {strides = array<i32>} : memref<2x1xf32, #tpu.memory_space<vmem>>, vector<2x1xf32>,
    return
  }
}

</mosaic_0001>

<bundles_post_ra>
// kernel: image_discriminator_forward.4
= control target key start
LH: loop header
LB: loop body
LE: loop exit
PB: predicated region body
PF: predicated region fallthrough
CT: control target
= control target key end

     0   :  { %s640_s15 = smov 0   ;;  %s642_s16 = smov 0   ;;  %s701_s0 = inlined_call_operand.vmem [shape: bf16[8,48], index: 0, kind: input, shape index: {}]   ;;  %s702_s1 = inlined_call_operand.vmem [shape: bf16[48,2048], index: 1, kind: input, shape index: {}]   ;;  %s703_s2 = inlined_call_operand.vmem [shape: f32[8,1], index: 2, kind: input, shape index: {}]   ;;  %s704_s3 = inlined_call_operand.vmem [shape: f32[8,1], index: 3, kind: input, shape index: {}]   ;;  %s705_s4 = inlined_call_operand.vmem [shape: bf16[8,2048], index: 4, kind: output, shape index: {}]  }
   0x1   :  { %s644_s17 = smov 0  }
   0x2 LB: > { %s514_s18 = sadd.s32 4294967295, %s612_s17   ;;  %s657_s19 = sadd.s32 1, %s612_s17   ;;  %s612_s17 = sphi %s644_s17, %s708_s17   ;;  %s608_s16 = sphi %s642_s16, %s707_s16   ;;  %s604_s15 = sphi %s640_s15, %s706_s15  }
   0x3   : > { %s39_s20 = ssub.s32 %s612_s17, %s657_s19  ;;  %s42_s21 = sadd.s32 1, %s608_s16 }
   0x4   : > { %p40_p0 = scmp.eq.s32.totalorder %s39_s20, 0  ;;  %p49_p1 = scmp.ne.s32.totalorder %s608_s16, %s604_s15 }
   0x5   : > { %p50_p2 = scmp.eq.s32.totalorder %s612_s17, 0  ;;  %p517_p4 = scmp.ge.s32.totalorder %s612_s17, 4 }
   0x6   : > { %s666_s22 = scalar_select %p40_p0, %s608_s16, %s42_s21  }
   0x7   : > { %p51_p3 = por %p50_p2, %p49_p1  ;;  %152 = sbr.rel (%p517_p4) target bundleno = 24 (0x18), region = 28 }
   0xe   : > { %155 = sbr.rel (!%p51_p3) target bundleno = 24 (0x18), region = 32  ;;  %s157_s23 = sand.u32 (%p51_p3), 1, %s608_s16  }
   0xf   : > { %s541_s24 = sshll.u32 (%p51_p3), %s612_s17, 4  ;;  %s544_s25 = smul.u32 (%p51_p3), 96, %s157_s23 }
  0x10   : > { %s162_s28 = scalar_lea.vmem (%p51_p3), %s702_s1, %s541_s24 }
  0x11   : > { %v175_v0 = vld [vmem:[%s162_s28] sm:$0xff] (%p51_p3)  ;;  %v177_v1 = vld [vmem:[%s162_s28 + $0x8] sm:$0xff] (%p51_p3)  ;;  %s159_s29 = scalar_lea.vmem (%p51_p3), [#allocation2], %s544_s25 }
  0x12   : > { %v179_v2 = vld [vmem:[%s162_s28 + $0x40] sm:$0xff] (%p51_p3)  ;;  %v181_v3 = vld [vmem:[%s162_s28 + $0x48] sm:$0xff] (%p51_p3)  ;;  %176 = vst [vmem:[%s159_s29] sm:$0xff] (%p51_p3), %v175_v0  ;;  %178 = vst [vmem:[%s159_s29 + $0x8] sm:$0xff] (%p51_p3), %v177_v1 }
  0x13   : > { %v183_v4 = vld [vmem:[%s162_s28 + $0x80] sm:$0xff] (%p51_p3)  ;;  %v185_v5 = vld [vmem:[%s162_s28 + $0x88] sm:$0xff] (%p51_p3)  ;;  %180 = vst [vmem:[%s159_s29 + $0x10] sm:$0xff] (%p51_p3), %v179_v2  ;;  %182 = vst [vmem:[%s159_s29 + $0x18] sm:$0xff] (%p51_p3), %v181_v3 }
  0x14   : > { %184 = vst [vmem:[%s159_s29 + $0x20] sm:$0xff] (%p51_p3), %v183_v4  ;;  %186 = vst [vmem:[%s159_s29 + $0x28] sm:$0xff] (%p51_p3), %v185_v5  ;;  %v187_v6 = vld [vmem:[%s162_s28 + $0xc0] sm:$0xff] (%p51_p3)  ;;  %v189_v7 = vld [vmem:[%s162_s28 + $0xc8] sm:$0xff] (%p51_p3) }
  0x15   : > { %v191_v8 = vld [vmem:[%s162_s28 + $0x100] sm:$0xff]  ;;  %188 = vst [vmem:[%s159_s29 + $0x30] sm:$0xff] %v187_v6  ;;  %190 = vst [vmem:[%s159_s29 + $0x38] sm:$0xff] %v189_v7  ;;  %v193_v9 = vld [vmem:[%s162_s28 + $0x108] sm:$0xff] }
  0x16   : > { %192 = vst [vmem:[%s159_s29 + $0x40] sm:$0xff] %v191_v8  ;;  %v195_v10 = vld [vmem:[%s162_s28 + $0x140] sm:$0xff]  ;;  %v197_v11 = vld [vmem:[%s162_s28 + $0x148] sm:$0xff]  ;;  %194 = vst [vmem:[%s159_s29 + $0x48] sm:$0xff] %v193_v9 }
  0x17   : > { %196 = vst [vmem:[%s159_s29 + $0x50] sm:$0xff] %v195_v10  ;;  %198 = vst [vmem:[%s159_s29 + $0x58] sm:$0xff] %v197_v11 }
  0x18 PF: > { %p520_p5 = scmp.ge.s32.totalorder %s612_s17, 1  ;;  %p203_p6 = scmp.lt.s32.totalorder %s612_s17, 5 }
  0x1a   : > { %p204_p7 = pnand %p520_p5, %p203_p6 }
  0x1b   : > { %s210_s30 = sand.u32 (!%p204_p7), 1, %s604_s15   ;;  %v402_v12 = vld [vmem:[%s703_s2] sm:$0xff] (!%p204_p7)  ;;  %v614_v13 = vmov (!%p204_p7), 0   ;;  %vm316_vm0 = vcmask (!%p204_p7), 392192   ;;  %s521_s13 = sshll.u32 (!%p204_p7), %s514_s18, 2 }
  0x1c   : > { %207 = sbr.rel (%p204_p7) target bundleno = 269 (0x10d), region = 55  ;;  %352 = vmatprep.mubr.bf16.mxu0 (!%p204_p7), %v614_v13  ;;  %393 = vmatprep.mubr.bf16.mxu1 (!%p204_p7), %v614_v13  ;;  %v412_v14 = vld [vmem:[%s704_s3] sm:$0xff] (!%p204_p7)  ;;  %p237_p8 = scmp.lt.s32.totalorder (!%p204_p7), %s521_s13, 15 }
  0x1d   : > { %s545_s7 = smul.u32 (!%p204_p7), 96, %s210_s30  ;;  %571 = vset.pattern.permute.xlu0 (!%p204_p7), %v614_v13  ;;  %v243_v27 = vld [vmem:[%s701_s0] sm:$0xf] (!%p204_p7) }
  0x1e   : > { %405 = vperm.xlu0 (!%p204_p7), %571, %v402_v12  }
  0x1f   : > { %s212_s10 = scalar_lea.vmem (!%p204_p7), [#allocation2], %s545_s7 }
  0x20   : > { %v572_v15 = vld [vmem:[%s212_s10 + $0x4] ss:$16 sps:$4 sm:$0xff] (!%p204_p7)   ;;  %v574_v16 = vld [vmem:[%s212_s10 + $0xc] ss:$16 sps:$4 sm:$0xff] (!%p204_p7)   ;;  %v576_v17 = vld [vmem:[%s212_s10] ss:$16 sps:$4 sm:$0xff] (!%p204_p7)  }
  0x21   : > { %320 = vmatprep.subr.bf16.mxu0 (!%p204_p7), %v572_v15  ;;  %v577_v18 = vld [vmem:[%s212_s10 + $0x8] ss:$16 sps:$4 sm:$0xff] (!%p204_p7)   ;;  %361 = vmatprep.subr.bf16.mxu1 (!%p204_p7), %v574_v16  ;;  %v578_v19 = vld [vmem:[%s212_s10 + $0x24] ss:$16 sps:$4 sm:$0xff] (!%p204_p7)   ;;  %v580_v20 = vld [vmem:[%s212_s10 + $0x2c] ss:$16 sps:$4 sm:$0xff] (!%p204_p7)  }
  0x22   : > { %415 = vperm.xlu0 (!%p204_p7), %571, %v412_v14   ;;  %321 = vmatpush1.bf16.msra.mxu0 (!%p204_p7), %v576_v17  ;;  %v582_v21 = vld [vmem:[%s212_s10 + $0x20] ss:$16 sps:$4 sm:$0xff] (!%p204_p7)   ;;  %v583_v22 = vld [vmem:[%s212_s10 + $0x28] ss:$16 sps:$4 sm:$0xff] (!%p204_p7)   ;;  %v584_v23 = vld [vmem:[%s212_s10 + $0x44] ss:$16 sps:$4 sm:$0xff] (!%p204_p7)  }
  0x23   : > { %362 = vmatpush1.bf16.msra.mxu1 %v577_v18  ;;  %322 = vmatprep.subr.bf16.mxu0 %v578_v19  ;;  %v586_v24 = vld [vmem:[%s212_s10 + $0x4c] ss:$16 sps:$4 sm:$0xff]   ;;  %v588_v25 = vld [vmem:[%s212_s10 + $0x40] ss:$16 sps:$4 sm:$0xff]   ;;  %v589_v26 = vld [vmem:[%s212_s10 + $0x48] ss:$16 sps:$4 sm:$0xff]  }
  0x24   : > { %363 = vmatprep.subr.bf16.mxu1 %v580_v20  ;;  %s710_s13 = smov (!%p237_p8, %s521_s13), 15 }
  0x25   : > { %s522_s14 = sshll.u32 %s710_s13, 2 }
  0x26   : > { %323 = vmatpush1.bf16.msra.mxu0 %v582_v21  ;;  %s240_s18 = scalar_lea.vmem %s705_s4, %s522_s14 }
  0x27   : > { %364 = vmatpush1.bf16.msra.mxu1 %v583_v22  ;;  %324 = vmatprep.subr.bf16.mxu0 %v584_v23 }
  0x28   : > { %365 = vmatprep.subr.bf16.mxu1 %v586_v24 }
  0x2a   : > { %325 = vmatpush1.bf16.msra.mxu0 %v588_v25 }
  0x2b   : > { %366 = vmatpush1.bf16.msra.mxu1 %v589_v26 }
  0x2d   : > { %535 = vmatmul.mubr.msk.bf16.vlgmr.msra.gmra.mrb[0].mxu0 %vm316_vm0, %v243_v27 }
  0x2e   : > { %536 = vmatmul.mubr.msk.bf16.vlgmr.msra.gmra.mrb[0].mxu1 %vm316_vm0, %v243_v27 }
  0x9d   : > { %v406_v28 = vpop.permute.xlu0 %405 }
  0xa1   : > { %v416_v29 = vpop.permute.xlu0 %415 }
 0x100   : > { %v354_v30 = vpop.f32.mrb[0].mxu0 }
 0x101   : > { %v395_v31 = vpop.f32.mrb[0].mxu1  ;;  %v408_v32 = vmul.f32 %v406_v28, %v354_v30  ;;  %v356_v34 = vpop.f32.mrb[1].mxu0 }
 0x102   : > { %v410_v33 = vmul.f32 %v406_v28, %v395_v31  ;;  %v397_v35 = vpop.f32.mrb[1].mxu1  ;;  %v409_v36 = vmul.f32 %v406_v28, %v356_v34  ;;  %v358_v38 = vpop.f32.mrb[2].mxu0 }
 0x103   : > { %v411_v37 = vmul.f32 %v406_v28, %v397_v35  ;;  %v399_v39 = vpop.f32.mrb[2].mxu1  ;;  %v418_v40 = vadd.f32 %v416_v29, %v408_v32  ;;  %v359_v42 = vpop.f32.mrb[3].mxu0 }
 0x104   : > { %v420_v41 = vadd.f32 %v416_v29, %v410_v33  ;;  %v400_v43 = vpop.f32.mrb[3].mxu1  ;;  %v419_v44 = vadd.f32 %v416_v29, %v409_v36 }
 0x105   : > { %v421_v45 = vadd.f32 %v416_v29, %v411_v37  ;;  %vm422_vm1 = vcmp.ge.f32.partialorder %v418_v40, 0.0  ;;  %v426_v46 = vmul.f32 0.2, %v418_v40 }
 0x106   : > { %vm424_vm2 = vcmp.ge.f32.partialorder %v420_v41, 0.0  ;;  %v428_v47 = vmul.f32 0.2, %v420_v41  ;;  %vm423_vm3 = vcmp.ge.f32.partialorder %v419_v44, 0.0  ;;  %v427_v48 = vmul.f32 0.2, %v419_v44 }
 0x107   : > { %vm425_vm4 = vcmp.ge.f32.partialorder %v421_v45, 0.0  ;;  %v429_v49 = vmul.f32 0.2, %v421_v45  ;;  %v430_v50 = vsel %vm422_vm1, %v418_v40, %v426_v46 }
 0x108   : > { %v432_v51 = vsel %vm424_vm2, %v420_v41, %v428_v47  ;;  %v431_v52 = vsel %vm423_vm3, %v419_v44, %v427_v48 }
 0x109   : > { %v433_v53 = vsel %vm425_vm4, %v421_v45, %v429_v49  ;;  %v542_v54 = vpack.c.bf16 %v431_v52, %v430_v50 }
 0x10a   : > { %v543_v55 = vpack.c.bf16 %v433_v53, %v432_v51 }
 0x10b   : > { %450 = vst [vmem:[%s240_s18] sm:$0xff] %v542_v54 }
 0x10c   : > { %451 = vst [vmem:[%s240_s18 + $0x8] sm:$0xff] %v543_v55 }
 0x10d PF: > { %p11_p9 = scmp.ge.s32.totalorder %s657_s19, 6   ;;  %s706_s15 = smov %s608_s16 }
 0x10e   : > { %s707_s16 = smov %s666_s22  ;;  %s708_s17 = smov %s657_s19 }
 0x10f   :  { %13 = sbr.rel (!%p11_p9) target bundleno = 2 (0x2), region = 94 }

// kernel: image_discriminator_forward.5
= control target key start
LH: loop header
LB: loop body
LE: loop exit
PB: predicated region body
PF: predicated region fallthrough
CT: control target
= control target key end

     0   :  { %v493_v1 = vmov 0   ;;  %s642_s1 = inlined_call_operand.vmem [shape: bf16[128,512], index: 1, kind: input, shape index: {}]   ;;  %s643_s2 = inlined_call_operand.vmem [shape: f32[16,1], index: 2, kind: input, shape index: {}]   ;;  %s644_s3 = inlined_call_operand.vmem [shape: f32[16,1], index: 3, kind: input, shape index: {}]   ;;  %s645_s0 = inlined_call_operand.vmem [shape: bf16[16,128], index: 0, kind: input, shape index: {}]   ;;  %s646_s4 = inlined_call_operand.vmem [shape: bf16[16,512], index: 4, kind: output, shape index: {}]  }
   0x1   :  { %v444_v0 = vld [vmem:[%s642_s1 + $0x4] ss:$16 sps:$4 sm:$0xff]   ;;  %250 = vmatprep.mubr.bf16.mxu0 %v493_v1  ;;  %293 = vmatprep.mubr.bf16.mxu1 %v493_v1  ;;  %v446_v2 = vld [vmem:[%s642_s1 + $0xc] ss:$16 sps:$4 sm:$0xff]   ;;  %v448_v3 = vld [vmem:[%s642_s1] ss:$16 sps:$4 sm:$0xff]  }
   0x2   :  { %442 = vset.pattern.permute.xlu0 %v493_v1  ;;  %443 = vset.pattern.permute.xlu1 %v493_v1  ;;  %v449_v4 = vld [vmem:[%s642_s1 + $0x8] ss:$16 sps:$4 sm:$0xff]   ;;  %v450_v5 = vld [vmem:[%s642_s1 + $0x24] ss:$16 sps:$4 sm:$0xff]   ;;  %v452_v6 = vld [vmem:[%s642_s1 + $0x2c] ss:$16 sps:$4 sm:$0xff]  }
   0x3   :  { %218 = vmatprep.subr.bf16.mxu0 %v444_v0  ;;  %261 = vmatprep.subr.bf16.mxu1 %v446_v2  ;;  %v454_v7 = vld [vmem:[%s642_s1 + $0x20] ss:$16 sps:$4 sm:$0xff]   ;;  %v455_v8 = vld [vmem:[%s642_s1 + $0x28] ss:$16 sps:$4 sm:$0xff]   ;;  %v456_v9 = vld [vmem:[%s642_s1 + $0x44] ss:$16 sps:$4 sm:$0xff]  }
   0x4   :  { %219 = vmatpush1.bf16.msra.mxu0 %v448_v3  ;;  %262 = vmatpush1.bf16.msra.mxu1 %v449_v4  ;;  %v458_v10 = vld [vmem:[%s642_s1 + $0x4c] ss:$16 sps:$4 sm:$0xff]   ;;  %v460_v11 = vld [vmem:[%s642_s1 + $0x40] ss:$16 sps:$4 sm:$0xff]   ;;  %v461_v12 = vld [vmem:[%s642_s1 + $0x48] ss:$16 sps:$4 sm:$0xff]  }
   0x5   :  { %220 = vmatprep.subr.bf16.mxu0 %v450_v5  ;;  %263 = vmatprep.subr.bf16.mxu1 %v452_v6  ;;  %v462_v13 = vld [vmem:[%s642_s1 + $0x64] ss:$16 sps:$4 sm:$0xff]   ;;  %v464_v14 = vld [vmem:[%s642_s1 + $0x6c] ss:$16 sps:$4 sm:$0xff]   ;;  %v466_v15 = vld [vmem:[%s642_s1 + $0x60] ss:$16 sps:$4 sm:$0xff]  }
   0x6   :  { %v467_v16 = vld [vmem:[%s642_s1 + $0x68] ss:$16 sps:$4 sm:$0xff]   ;;  %v468_v17 = vld [vmem:[%s642_s1 + $0x84] ss:$16 sps:$4 sm:$0xff]   ;;  %v470_v18 = vld [vmem:[%s642_s1 + $0x8c] ss:$16 sps:$4 sm:$0xff]  }
   0x7   :  { %v472_v19 = vld [vmem:[%s642_s1 + $0x80] ss:$16 sps:$4 sm:$0xff]   ;;  %v473_v20 = vld [vmem:[%s642_s1 + $0x88] ss:$16 sps:$4 sm:$0xff]   ;;  %v474_v21 = vld [vmem:[%s642_s1 + $0xa4] ss:$16 sps:$4 sm:$0xff]  }
   0x8   :  { %221 = vmatpush1.bf16.msra.mxu0 %v454_v7  ;;  %264 = vmatpush1.bf16.msra.mxu1 %v455_v8  ;;  %v476_v22 = vld [vmem:[%s642_s1 + $0xac] ss:$16 sps:$4 sm:$0xff]   ;;  %v478_v23 = vld [vmem:[%s642_s1 + $0xa0] ss:$16 sps:$4 sm:$0xff]   ;;  %v479_v24 = vld [vmem:[%s642_s1 + $0xa8] ss:$16 sps:$4 sm:$0xff]  }
   0x9   :  { %222 = vmatprep.subr.bf16.mxu0 %v456_v9  ;;  %265 = vmatprep.subr.bf16.mxu1 %v458_v10  ;;  %v480_v25 = vld [vmem:[%s642_s1 + $0xc4] ss:$16 sps:$4 sm:$0xff]   ;;  %v482_v26 = vld [vmem:[%s642_s1 + $0xcc] ss:$16 sps:$4 sm:$0xff]   ;;  %v484_v29 = vld [vmem:[%s642_s1 + $0xc0] ss:$16 sps:$4 sm:$0xff]  }
   0xa   :  { %v304_v27 = vld [vmem:[%s643_s2] sm:$0xff]  ;;  %v485_v30 = vld [vmem:[%s642_s1 + $0xc8] ss:$16 sps:$4 sm:$0xff]   ;;  %v488_v34 = vld [vmem:[%s642_s1 + $0xec] ss:$16 sps:$4 sm:$0xff]  }
   0xb   :  { %v324_v28 = vld [vmem:[%s644_s3] sm:$0xff]  ;;  %308 = vperm.xlu0 %442, %v304_v27   ;;  %v305_v31 = vld [vmem:[%s643_s2 + $0x8] sm:$0xff] }
   0xc   :  { %223 = vmatpush1.bf16.msra.mxu0 %v460_v11  ;;  %266 = vmatpush1.bf16.msra.mxu1 %v461_v12  ;;  %v325_v32 = vld [vmem:[%s644_s3 + $0x8] sm:$0xff]  ;;  %v486_v33 = vld [vmem:[%s642_s1 + $0xe4] ss:$16 sps:$4 sm:$0xff]   ;;  %v490_v35 = vld [vmem:[%s642_s1 + $0xe0] ss:$16 sps:$4 sm:$0xff]  }
   0xd   :  { %224 = vmatprep.subr.bf16.mxu0 %v462_v13  ;;  %267 = vmatprep.subr.bf16.mxu1 %v464_v14  ;;  %v491_v36 = vld [vmem:[%s642_s1 + $0xe8] ss:$16 sps:$4 sm:$0xff]   ;;  %v492_v37 = vld [vmem:[%s645_s0] sm:$0xff]  }
   0xe   :  { %328 = vperm.xlu1 %443, %v324_v28  }
   0xf   :  { %313 = vperm.xlu0 %442, %v305_v31  }
  0x10   :  { %225 = vmatpush1.bf16.msra.mxu0 %v466_v15  ;;  %268 = vmatpush1.bf16.msra.mxu1 %v467_v16 }
  0x11   :  { %226 = vmatprep.subr.bf16.mxu0 %v468_v17  ;;  %269 = vmatprep.subr.bf16.mxu1 %v470_v18 }
  0x12   :  { %333 = vperm.xlu1 %443, %v325_v32  }
  0x14   :  { %227 = vmatpush1.bf16.msra.mxu0 %v472_v19  ;;  %270 = vmatpush1.bf16.msra.mxu1 %v473_v20 }
  0x15   :  { %228 = vmatprep.subr.bf16.mxu0 %v474_v21  ;;  %271 = vmatprep.subr.bf16.mxu1 %v476_v22 }
  0x18   :  { %229 = vmatpush1.bf16.msra.mxu0 %v478_v23  ;;  %272 = vmatpush1.bf16.msra.mxu1 %v479_v24 }
  0x19   :  { %230 = vmatprep.subr.bf16.mxu0 %v480_v25  ;;  %273 = vmatprep.subr.bf16.mxu1 %v482_v26 }
  0x1c   :  { %231 = vmatpush1.bf16.msra.mxu0 %v484_v29  ;;  %274 = vmatpush1.bf16.msra.mxu1 %v485_v30 }
  0x1d   :  { %232 = vmatprep.subr.bf16.mxu0 %v486_v33  ;;  %275 = vmatprep.subr.bf16.mxu1 %v488_v34 }
  0x20   :  { %233 = vmatpush1.bf16.msra.mxu0 %v490_v35  ;;  %276 = vmatpush1.bf16.msra.mxu1 %v491_v36 }
  0x23   :  { %251 = vmatmul.mubr.bf16.vlgmr.msra.gmra.mrb[0].mxu0 %v492_v37  ;;  %294 = vmatmul.mubr.bf16.vlgmr.msra.gmra.mrb[0].mxu1 %v492_v37 }
  0x8a   :  { %v309_v38 = vpop.permute.xlu0 %308 }
  0x8d   :  { %v329_v39 = vpop.permute.xlu1 %328 }
  0x8e   :  { %v314_v40 = vpop.permute.xlu0 %313 }
  0x91   :  { %v334_v63 = vpop.permute.xlu1 %333 }
  0xf6   :  { %v252_v41 = vpop.f32.mrb[0].mxu0  ;;  %v295_v42 = vpop.f32.mrb[0].mxu1 }
  0xf7   :  { %v316_v43 = vmul.f32 %v309_v38, %v252_v41  ;;  %v318_v44 = vmul.f32 %v309_v38, %v295_v42  ;;  %v254_v45 = vpop.f32.mrb[1].mxu0  ;;  %v297_v46 = vpop.f32.mrb[1].mxu1 }
  0xf8   :  { %v317_v47 = vmul.f32 %v309_v38, %v254_v45  ;;  %v319_v48 = vmul.f32 %v309_v38, %v297_v46  ;;  %v256_v49 = vpop.f32.mrb[2].mxu0  ;;  %v299_v50 = vpop.f32.mrb[2].mxu1 }
  0xf9   :  { %v336_v51 = vadd.f32 %v329_v39, %v316_v43  ;;  %v338_v52 = vadd.f32 %v329_v39, %v318_v44  ;;  %v320_v53 = vmul.f32 %v314_v40, %v256_v49  ;;  %v322_v54 = vmul.f32 %v314_v40, %v299_v50  ;;  %v258_v55 = vpop.f32.mrb[3].mxu0  ;;  %v301_v56 = vpop.f32.mrb[3].mxu1 }
  0xfa   :  { %v337_v57 = vadd.f32 %v329_v39, %v317_v47  ;;  %v339_v58 = vadd.f32 %v329_v39, %v319_v48  ;;  %v321_v59 = vmul.f32 %v314_v40, %v258_v55  ;;  %v323_v60 = vmul.f32 %v314_v40, %v301_v56 }
  0xfb   :  { %vm344_vm0 = vcmp.ge.f32.partialorder %v336_v51, 0.0  ;;  %v352_v61 = vmul.f32 0.2, %v336_v51  ;;  %vm346_vm1 = vcmp.ge.f32.partialorder %v338_v52, 0.0  ;;  %v354_v62 = vmul.f32 0.2, %v338_v52 }
  0xfc   :  { %vm345_vm2 = vcmp.ge.f32.partialorder %v337_v57, 0.0  ;;  %v353_v0 = vmul.f32 0.2, %v337_v57  ;;  %vm347_vm3 = vcmp.ge.f32.partialorder %v339_v58, 0.0  ;;  %v355_v1 = vmul.f32 0.2, %v339_v58 }
  0xfd   :  { %v360_v2 = vsel %vm344_vm0, %v336_v51, %v352_v61  ;;  %v362_v3 = vsel %vm346_vm1, %v338_v52, %v354_v62  ;;  %v340_v4 = vadd.f32 %v334_v63, %v320_v53  ;;  %v342_v5 = vadd.f32 %v334_v63, %v322_v54 }
  0xfe   :  { %v361_v6 = vsel %vm345_vm2, %v337_v57, %v353_v0  ;;  %v363_v7 = vsel %vm347_vm3, %v339_v58, %v355_v1  ;;  %v341_v8 = vadd.f32 %v334_v63, %v321_v59  ;;  %v343_v9 = vadd.f32 %v334_v63, %v323_v60 }
  0xff   :  { %v437_v10 = vpack.c.bf16 %v361_v6, %v360_v2  ;;  %v438_v11 = vpack.c.bf16 %v363_v7, %v362_v3  ;;  %vm348_vm4 = vcmp.ge.f32.partialorder %v340_v4, 0.0  ;;  %v356_v12 = vmul.f32 0.2, %v340_v4 }
 0x100   :  { %vm350_vm5 = vcmp.ge.f32.partialorder %v342_v5, 0.0  ;;  %v358_v13 = vmul.f32 0.2, %v342_v5  ;;  %vm349_vm6 = vcmp.ge.f32.partialorder %v341_v8, 0.0  ;;  %v357_v14 = vmul.f32 0.2, %v341_v8 }
 0x101   :  { %392 = vst [vmem:[%s646_s4] sm:$0xff] %v437_v10  ;;  %393 = vst [vmem:[%s646_s4 + $0x8] sm:$0xff] %v438_v11  ;;  %v364_v15 = vsel %vm348_vm4, %v340_v4, %v356_v12  ;;  %vm351_vm7 = vcmp.ge.f32.partialorder %v343_v9, 0.0  ;;  %v359_v16 = vmul.f32 0.2, %v343_v9 }
 0x102   :  { %v366_v17 = vsel %vm350_vm5, %v342_v5, %v358_v13  ;;  %v365_v18 = vsel %vm349_vm6, %v341_v8, %v357_v14 }
 0x103   :  { %v439_v19 = vpack.c.bf16 %v365_v18, %v364_v15  ;;  %v367_v20 = vsel %vm351_vm7, %v343_v9, %v359_v16 }
 0x104   :  { %v440_v21 = vpack.c.bf16 %v367_v20, %v366_v17 }
 0x105   :  { %394 = vst [vmem:[%s646_s4 + $0x10] sm:$0xff] %v439_v19 }
 0x106   :  { %395 = vst [vmem:[%s646_s4 + $0x18] sm:$0xff] %v440_v21 }

// kernel: image_discriminator_forward.6
= control target key start
LH: loop header
LB: loop body
LE: loop exit
PB: predicated region body
PF: predicated region fallthrough
CT: control target
= control target key end

     0   :  { %v419_v1 = vmov 0   ;;  %s535_s1 = inlined_call_operand.vmem [shape: bf16[256,128], index: 1, kind: input, shape index: {}]   ;;  %s536_s0 = inlined_call_operand.vmem [shape: bf16[32,256], index: 0, kind: input, shape index: {}]   ;;  %s537_s2 = inlined_call_operand.vmem [shape: f32[32,1], index: 2, kind: input, shape index: {}]   ;;  %s538_s3 = inlined_call_operand.vmem [shape: f32[32,1], index: 3, kind: input, shape index: {}]   ;;  %s539_s4 = inlined_call_operand.vmem [shape: bf16[32,128], index: 4, kind: output, shape index: {}]  }
   0x1   :  { %v397_v0 = vld [vmem:[%s535_s1 + $0x40] sm:$0xff]   ;;  %396 = vset.pattern.permute.xlu1 %v419_v1  ;;  %395 = vset.pattern.permute.xlu0 %v419_v1  ;;  %v399_v3 = vld [vmem:[%s535_s1 + $0x48] sm:$0xff]   ;;  %v401_v5 = vld [vmem:[%s535_s1 + $0x50] sm:$0xff]  }
   0x2   :  { %v398_v2 = vld [vmem:[%s535_s1] sm:$0xff]   ;;  %350 = vmatprep.subr.bf16.mxu0 %v397_v0  ;;  %378 = vmatprep.subr.bf16.mxu1 %v397_v0  ;;  %v400_v4 = vld [vmem:[%s535_s1 + $0x8] sm:$0xff]   ;;  %v402_v6 = vld [vmem:[%s535_s1 + $0x10] sm:$0xff]  }
   0x3   :  { %351 = vmatpush3.bf16.msra.mxu0 %v398_v2  ;;  %386 = vmatpush3.bf16.msra.mxu1 %v398_v2  ;;  %v403_v7 = vld [vmem:[%s535_s1 + $0x58] sm:$0xff]   ;;  %v405_v9 = vld [vmem:[%s535_s1 + $0x60] sm:$0xff]   ;;  %v407_v11 = vld [vmem:[%s535_s1 + $0x68] sm:$0xff]  }
   0x4   :  { %352 = vmatprep.subr.bf16.mxu0 %v399_v3  ;;  %379 = vmatprep.subr.bf16.mxu1 %v399_v3  ;;  %v404_v8 = vld [vmem:[%s535_s1 + $0x18] sm:$0xff]   ;;  %v406_v10 = vld [vmem:[%s535_s1 + $0x20] sm:$0xff]   ;;  %v408_v14 = vld [vmem:[%s535_s1 + $0x28] sm:$0xff]  }
   0x5   :  { %v415_v12 = vld [vmem:[%s536_s0 + $0x4] ss:$8 sps:$4 sm:$0xff]   ;;  %v418_v13 = vld [vmem:[%s536_s0 + $0x14] ss:$8 sps:$4 sm:$0xff]   ;;  %v413_v25 = vld [vmem:[%s536_s0] ss:$8 sps:$4 sm:$0xff]  }
   0x6   :  { %v221_v15 = vld [vmem:[%s537_s2 + $0x10] sm:$0xff]  ;;  %v219_v16 = vld [vmem:[%s537_s2] sm:$0xff]  ;;  %202 = vmatprep.mubr.bf16.mxu0 %v415_v12  ;;  %210 = vmatprep.mubr.bf16.mxu1 %v418_v13  ;;  %v222_v19 = vld [vmem:[%s537_s2 + $0x18] sm:$0xff] }
   0x7   :  { %353 = vmatpush3.bf16.msra.mxu0 %v400_v4  ;;  %387 = vmatpush3.bf16.msra.mxu1 %v400_v4  ;;  %v409_v17 = vld [vmem:[%s535_s1 + $0x70] sm:$0xff]   ;;  %v220_v20 = vld [vmem:[%s537_s2 + $0x8] sm:$0xff]  ;;  %v411_v21 = vld [vmem:[%s535_s1 + $0x78] sm:$0xff]  }
   0x8   :  { %354 = vmatprep.subr.bf16.mxu0 %v401_v5  ;;  %380 = vmatprep.subr.bf16.mxu1 %v401_v5  ;;  %v410_v18 = vld [vmem:[%s535_s1 + $0x30] sm:$0xff]   ;;  %v412_v22 = vld [vmem:[%s535_s1 + $0x38] sm:$0xff]   ;;  %v248_v23 = vld [vmem:[%s538_s3 + $0x8] sm:$0xff] }
   0x9   :  { %235 = vperm.xlu1 %396, %v221_v15   ;;  %225 = vperm.xlu0 %395, %v219_v16   ;;  %v247_v24 = vld [vmem:[%s538_s3] sm:$0xff]  ;;  %v416_v26 = vld [vmem:[%s536_s0 + $0x10] ss:$8 sps:$4 sm:$0xff]  }
   0xa   :  { %v250_v27 = vld [vmem:[%s538_s3 + $0x18] sm:$0xff]  ;;  %v249_v28 = vld [vmem:[%s538_s3 + $0x10] sm:$0xff] }
   0xb   :  { %355 = vmatpush3.bf16.msra.mxu0 %v402_v6  ;;  %388 = vmatpush3.bf16.msra.mxu1 %v402_v6 }
   0xc   :  { %356 = vmatprep.subr.bf16.mxu0 %v403_v7  ;;  %381 = vmatprep.subr.bf16.mxu1 %v403_v7 }
   0xd   :  { %240 = vperm.xlu1 %396, %v222_v19   ;;  %230 = vperm.xlu0 %395, %v220_v20  }
   0xf   :  { %357 = vmatpush3.bf16.msra.mxu0 %v404_v8  ;;  %389 = vmatpush3.bf16.msra.mxu1 %v404_v8 }
  0x10   :  { %358 = vmatprep.subr.bf16.mxu0 %v405_v9  ;;  %382 = vmatprep.subr.bf16.mxu1 %v405_v9 }
  0x11   :  { %258 = vperm.xlu1 %396, %v248_v23   ;;  %253 = vperm.xlu0 %395, %v247_v24  }
  0x13   :  { %359 = vmatpush3.bf16.msra.mxu0 %v406_v10  ;;  %390 = vmatpush3.bf16.msra.mxu1 %v406_v10 }
  0x14   :  { %360 = vmatprep.subr.bf16.mxu0 %v407_v11  ;;  %383 = vmatprep.subr.bf16.mxu1 %v407_v11 }
  0x15   :  { %268 = vperm.xlu1 %396, %v250_v27   ;;  %263 = vperm.xlu0 %395, %v249_v28  }
  0x17   :  { %361 = vmatpush3.bf16.msra.mxu0 %v408_v14  ;;  %391 = vmatpush3.bf16.msra.mxu1 %v408_v14 }
  0x18   :  { %362 = vmatprep.subr.bf16.mxu0 %v409_v17  ;;  %384 = vmatprep.subr.bf16.mxu1 %v409_v17 }
  0x1b   :  { %363 = vmatpush3.bf16.msra.mxu0 %v410_v18  ;;  %392 = vmatpush3.bf16.msra.mxu1 %v410_v18 }
  0x1c   :  { %364 = vmatprep.subr.bf16.mxu0 %v411_v21  ;;  %385 = vmatprep.subr.bf16.mxu1 %v411_v21 }
  0x1f   :  { %365 = vmatpush3.bf16.msra.mxu0 %v412_v22  ;;  %393 = vmatpush3.bf16.msra.mxu1 %v412_v22 }
  0x22   :  { %203 = vmatmul.mubr.bf16.vlgmr.msra.gmra.mrb[0].mxu0 %v413_v25  ;;  %211 = vmatmul.mubr.bf16.vlgmr.msra.gmra.mrb[0].mxu1 %v416_v26 }
  0x88   :  { %v236_v29 = vpop.permute.xlu1 %235  ;;  %v226_v30 = vpop.permute.xlu0 %225 }
  0x8c   :  { %v241_v31 = vpop.permute.xlu1 %240  ;;  %v231_v32 = vpop.permute.xlu0 %230 }
  0x90   :  { %v259_v33 = vpop.permute.xlu1 %258  ;;  %v254_v34 = vpop.permute.xlu0 %253 }
  0x94   :  { %v264_v49 = vpop.permute.xlu0 %263  ;;  %v269_v54 = vpop.permute.xlu1 %268 }
  0xf5   :  { %v366_v35 = vpop.f32.mrb[0].mxu0  ;;  %v372_v36 = vpop.f32.mrb[0].mxu1 }
  0xf6   :  { %v367_v37 = vpop.f32.mrb[1].mxu0  ;;  %v373_v38 = vpop.f32.mrb[1].mxu1 }
  0xf7   :  { %v368_v39 = vadd.f32 %v367_v37, %v366_v35  ;;  %v374_v40 = vadd.f32 %v373_v38, %v372_v36  ;;  %v369_v41 = vpop.f32.mrb[2].mxu0  ;;  %v375_v42 = vpop.f32.mrb[2].mxu1 }
  0xf8   :  { %v370_v43 = vpop.f32.mrb[3].mxu0  ;;  %v376_v44 = vpop.f32.mrb[3].mxu1 }
  0xf9   :  { %v243_v45 = vmul.f32 %v368_v39, %v226_v30  ;;  %v245_v46 = vmul.f32 %v374_v40, %v236_v29  ;;  %v371_v47 = vadd.f32 %v370_v43, %v369_v41  ;;  %v377_v48 = vadd.f32 %v376_v44, %v375_v42 }
  0xfb   :  { %v271_v50 = vadd.f32 %v254_v34, %v243_v45  ;;  %v273_v51 = vadd.f32 %v264_v49, %v245_v46  ;;  %v244_v52 = vmul.f32 %v371_v47, %v231_v32  ;;  %v246_v53 = vmul.f32 %v377_v48, %v241_v31 }
  0xfd   :  { %v279_v55 = vmul.f32 0.2, %v271_v50  ;;  %v281_v56 = vmul.f32 0.2, %v273_v51  ;;  %v272_v57 = vadd.f32 %v259_v33, %v244_v52  ;;  %v274_v58 = vadd.f32 %v269_v54, %v246_v53 }
  0xfe   :  { %vm275_vm0 = vcmp.ge.f32.partialorder %v271_v50, 0.0  ;;  %vm277_vm1 = vcmp.ge.f32.partialorder %v273_v51, 0.0 }
  0xff   :  { %vm276_vm2 = vcmp.ge.f32.partialorder %v272_v57, 0.0  ;;  %v280_v59 = vmul.f32 0.2, %v272_v57  ;;  %vm278_vm3 = vcmp.ge.f32.partialorder %v274_v58, 0.0  ;;  %v282_v60 = vmul.f32 0.2, %v274_v58 }
 0x100   :  { %v283_v61 = vsel %vm275_vm0, %v271_v50, %v279_v55  ;;  %v285_v62 = vsel %vm277_vm1, %v273_v51, %v281_v56 }
 0x101   :  { %v284_v63 = vsel %vm276_vm2, %v272_v57, %v280_v59  ;;  %v286_v0 = vsel %vm278_vm3, %v274_v58, %v282_v60 }
 0x102   :  { %v342_v1 = vpack.c.bf16 %v284_v63, %v283_v61  ;;  %v347_v2 = vpack.c.bf16 %v286_v0, %v285_v62 }
 0x104   :  { %343 = vst [vmem:[%s539_s4] sm:$0xff] %v342_v1   ;;  %349 = vst [vmem:[%s539_s4 + $0x8] sm:$0xff] %v347_v2  }

// kernel: image_discriminator_forward.7
= control target key start
LH: loop header
LB: loop body
LE: loop exit
PB: predicated region body
PF: predicated region fallthrough
CT: control target
= control target key end

     0   :  { %v7938_v36 = vmov 1966171168   ;;  %v579_v38 = vlaneseq  ;;  %vm3981_vm0 = vcmask 1044480   ;;  %vm7940_vm1 = vmmov 0   ;;  %s10449_s2 = inlined_call_operand.vmem [shape: bf16[2048,512], index: 2, kind: input, shape index: {}]   ;;  %s10450_s0 = inlined_call_operand.vmem [shape: bf16[2,2048], index: 0, kind: input, shape index: {}]   ;;  %s10451_s5 = inlined_call_operand.vmem [shape: bf16[10,128], index: 5, kind: input, shape index: {}]   ;;  %s10452_s8 = inlined_call_operand.vmem [shape: bf16[128,128], index: 8, kind: input, shape index: {}]   ;;  %s10453_s1 = inlined_call_operand.vmem [shape: bf16[2,10], index: 1, kind: input, shape index: {}]   ;;  %s10454_s12 = inlined_call_operand.vmem [shape: bf16[128,640], index: 12, kind: input, shape index: {}]   ;;  %s10455_s3 = inlined_call_operand.vmem [shape: f32[1,512], index: 3, kind: input, shape index: {}]   ;;  %s10456_s4 = inlined_call_operand.vmem [shape: f32[1,512], index: 4, kind: input, shape index: {}]   ;;  %s10457_s6 = inlined_call_operand.vmem [shape: f32[1,128], index: 6, kind: input, shape index: {}]   ;;  %s10458_s7 = inlined_call_operand.vmem [shape: f32[1,128], index: 7, kind: input, shape index: {}]   ;;  %s10459_s11 = inlined_call_operand.vmem [shape: bf16[512,640], index: 11, kind: input, shape index: {}]   ;;  %s10460_s9 = inlined_call_operand.vmem [shape: f32[1,128], index: 9, kind: input, shape index: {}]   ;;  %s10461_s10 = inlined_call_operand.vmem [shape: f32[1,128], index: 10, kind: input, shape index: {}]   ;;  %s10462_s16 = inlined_call_operand.<no memory space> [shape: f32[1,1], index: 16, kind: input, shape index: {}]   ;;  %s10463_s13 = inlined_call_operand.vmem [shape: f32[1,640], index: 13, kind: input, shape index: {}]   ;;  %s10464_s14 = inlined_call_operand.vmem [shape: f32[1,640], index: 14, kind: input, shape index: {}]   ;;  %s10465_s15 = inlined_call_operand.vmem [shape: f32[1,640], index: 15, kind: input, shape index: {}]   ;;  %s10466_s17 = inlined_call_operand.vmem [shape: f32[2,1], index: 17, kind: output, shape index: {}]  }
   0x1   :  { %10469 = sst [smem:[#allocation3_spill]] %s10449_s2  ;;  %v577_v37 = vunpack.c.l.s4 %v7938_v36  ;;  %vm3977_vm2 = vcmask 80896   ;;  %vm5930_vm13 = vcmask 1041408   ;;  %vm5956_vm15 = vcmask 1024  }
   0x2   :  { %10470 = sst [smem:[#allocation4_spill]] %s10450_s0  ;;  %s10471_s26 = sld [smem:[#allocation3_spill]]  ;;  %v8149_v43 = vshrl.u32 %v579_v38, 7 }
   0x3   :  { %v578_v42 = vunpack.c.0.s8 %v577_v37  ;;  %s10472_s20 = sld [smem:[#allocation4_spill]] }
   0x5   :  { %v8167_v49 = vsub.s32 %v578_v42, %v8149_v43 }
   0x8   :  { %v6875_v0 = vld [vmem:[%s10471_s26 + $0x4] ss:$16 sps:$4 sm:$0xff]   ;;  %v6877_v1 = vld [vmem:[%s10471_s26 + $0xc] ss:$16 sps:$4 sm:$0xff]   ;;  %v6879_v2 = vld [vmem:[%s10471_s26] ss:$16 sps:$4 sm:$0xff]  }
   0x9   :  { %3249 = vmatprep.subr.bf16.mxu0 %v6875_v0  ;;  %v6880_v3 = vld [vmem:[%s10471_s26 + $0x8] ss:$16 sps:$4 sm:$0xff]   ;;  %3577 = vmatprep.subr.bf16.mxu1 %v6877_v1  ;;  %v6881_v4 = vld [vmem:[%s10471_s26 + $0x24] ss:$16 sps:$4 sm:$0xff]   ;;  %v6883_v5 = vld [vmem:[%s10471_s26 + $0x2c] ss:$16 sps:$4 sm:$0xff]  }
   0xa   :  { %3250 = vmatpush1.bf16.msra.mxu0 %v6879_v2  ;;  %3578 = vmatpush1.bf16.msra.mxu1 %v6880_v3  ;;  %v6885_v6 = vld [vmem:[%s10471_s26 + $0x20] ss:$16 sps:$4 sm:$0xff]   ;;  %v6886_v7 = vld [vmem:[%s10471_s26 + $0x28] ss:$16 sps:$4 sm:$0xff]   ;;  %v6887_v8 = vld [vmem:[%s10471_s26 + $0x44] ss:$16 sps:$4 sm:$0xff]  }
   0xb   :  { %3251 = vmatprep.subr.bf16.mxu0 %v6881_v4  ;;  %3579 = vmatprep.subr.bf16.mxu1 %v6883_v5  ;;  %v6889_v9 = vld [vmem:[%s10471_s26 + $0x4c] ss:$16 sps:$4 sm:$0xff]   ;;  %v6891_v10 = vld [vmem:[%s10471_s26 + $0x40] ss:$16 sps:$4 sm:$0xff]   ;;  %v6892_v11 = vld [vmem:[%s10471_s26 + $0x48] ss:$16 sps:$4 sm:$0xff]  }
   0xc   :  { %v6893_v12 = vld [vmem:[%s10471_s26 + $0x64] ss:$16 sps:$4 sm:$0xff]   ;;  %v6895_v13 = vld [vmem:[%s10471_s26 + $0x6c] ss:$16 sps:$4 sm:$0xff]   ;;  %v6897_v14 = vld [vmem:[%s10471_s26 + $0x60] ss:$16 sps:$4 sm:$0xff]  }
   0xd   :  { %v6898_v15 = vld [vmem:[%s10471_s26 + $0x68] ss:$16 sps:$4 sm:$0xff]   ;;  %v6899_v16 = vld [vmem:[%s10471_s26 + $0x84] ss:$16 sps:$4 sm:$0xff]   ;;  %v6901_v17 = vld [vmem:[%s10471_s26 + $0x8c] ss:$16 sps:$4 sm:$0xff]  }
   0xe   :  { %3252 = vmatpush1.bf16.msra.mxu0 %v6885_v6  ;;  %3580 = vmatpush1.bf16.msra.mxu1 %v6886_v7  ;;  %v6903_v18 = vld [vmem:[%s10471_s26 + $0x80] ss:$16 sps:$4 sm:$0xff]   ;;  %v6904_v19 = vld [vmem:[%s10471_s26 + $0x88] ss:$16 sps:$4 sm:$0xff]   ;;  %v6905_v20 = vld [vmem:[%s10471_s26 + $0xa4] ss:$16 sps:$4 sm:$0xff]  }
   0xf   :  { %3253 = vmatprep.subr.bf16.mxu0 %v6887_v8  ;;  %3581 = vmatprep.subr.bf16.mxu1 %v6889_v9  ;;  %v6907_v21 = vld [vmem:[%s10471_s26 + $0xac] ss:$16 sps:$4 sm:$0xff]   ;;  %v6909_v22 = vld [vmem:[%s10471_s26 + $0xa0] ss:$16 sps:$4 sm:$0xff]   ;;  %v6910_v23 = vld [vmem:[%s10471_s26 + $0xa8] ss:$16 sps:$4 sm:$0xff]  }
  0x10   :  { %v6911_v24 = vld [vmem:[%s10471_s26 + $0xc4] ss:$16 sps:$4 sm:$0xff]   ;;  %v6913_v25 = vld [vmem:[%s10471_s26 + $0xcc] ss:$16 sps:$4 sm:$0xff]   ;;  %v6915_v26 = vld [vmem:[%s10471_s26 + $0xc0] ss:$16 sps:$4 sm:$0xff]  }
  0x11   :  { %v6916_v27 = vld [vmem:[%s10471_s26 + $0xc8] ss:$16 sps:$4 sm:$0xff]   ;;  %v6917_v28 = vld [vmem:[%s10471_s26 + $0xe4] ss:$16 sps:$4 sm:$0xff]   ;;  %v6919_v29 = vld [vmem:[%s10471_s26 + $0xec] ss:$16 sps:$4 sm:$0xff]  }
  0x12   :  { %3254 = vmatpush1.bf16.msra.mxu0 %v6891_v10  ;;  %3582 = vmatpush1.bf16.msra.mxu1 %v6892_v11  ;;  %v6921_v30 = vld [vmem:[%s10471_s26 + $0xe0] ss:$16 sps:$4 sm:$0xff]   ;;  %v6922_v31 = vld [vmem:[%s10471_s26 + $0xe8] ss:$16 sps:$4 sm:$0xff]   ;;  %v6923_v32 = vld [vmem:[%s10471_s26 + $0x104] ss:$16 sps:$4 sm:$0xff]  }
  0x13   :  { %3255 = vmatprep.subr.bf16.mxu0 %v6893_v12  ;;  %3583 = vmatprep.subr.bf16.mxu1 %v6895_v13  ;;  %v6925_v33 = vld [vmem:[%s10471_s26 + $0x10c] ss:$16 sps:$4 sm:$0xff]   ;;  %v6927_v34 = vld [vmem:[%s10471_s26 + $0x100] ss:$16 sps:$4 sm:$0xff]   ;;  %v6928_v35 = vld [vmem:[%s10471_s26 + $0x108] ss:$16 sps:$4 sm:$0xff]  }
  0x14   :  { %v6929_v39 = vld [vmem:[%s10471_s26 + $0x124] ss:$16 sps:$4 sm:$0xff]   ;;  %v6931_v40 = vld [vmem:[%s10471_s26 + $0x12c] ss:$16 sps:$4 sm:$0xff]   ;;  %v6933_v41 = vld [vmem:[%s10471_s26 + $0x120] ss:$16 sps:$4 sm:$0xff]  }
  0x15   :  { %v6934_v44 = vld [vmem:[%s10471_s26 + $0x128] ss:$16 sps:$4 sm:$0xff]   ;;  %v6935_v45 = vld [vmem:[%s10471_s26 + $0x144] ss:$16 sps:$4 sm:$0xff]   ;;  %v6937_v46 = vld [vmem:[%s10471_s26 + $0x14c] ss:$16 sps:$4 sm:$0xff]  }
  0x16   :  { %3256 = vmatpush1.bf16.msra.mxu0 %v6897_v14  ;;  %3584 = vmatpush1.bf16.msra.mxu1 %v6898_v15  ;;  %v6939_v47 = vld [vmem:[%s10471_s26 + $0x140] ss:$16 sps:$4 sm:$0xff]   ;;  %v6940_v48 = vld [vmem:[%s10471_s26 + $0x148] ss:$16 sps:$4 sm:$0xff]   ;;  %v6941_v50 = vld [vmem:[%s10471_s26 + $0x164] ss:$16 sps:$4 sm:$0xff]  }
  0x17   :  { %3257 = vmatprep.subr.bf16.mxu0 %v6899_v16  ;;  %3585 = vmatprep.subr.bf16.mxu1 %v6901_v17  ;;  %v6943_v51 = vld [vmem:[%s10471_s26 + $0x16c] ss:$16 sps:$4 sm:$0xff]   ;;  %v8178_v52 = vld [vmem:[%s10472_s20] sm:$0xff]  ;;  %v6946_v55 = vld [vmem:[%s10471_s26 + $0x168] ss:$16 sps:$4 sm:$0xff]  }
  0x18   :  { %v6945_v53 = vld [vmem:[%s10471_s26 + $0x160] ss:$16 sps:$4 sm:$0xff]   ;;  %v582_v54 = vrot.slane %v8178_v52, %v8167_v49  ;;  %v6947_v56 = vld [vmem:[%s10471_s26 + $0x184] ss:$16 sps:$4 sm:$0xff]   ;;  %v6949_v57 = vld [vmem:[%s10471_s26 + $0x18c] ss:$16 sps:$4 sm:$0xff]  }
  0x19   :  { %v6951_v59 = vld [vmem:[%s10471_s26 + $0x180] ss:$16 sps:$4 sm:$0xff]   ;;  %v6952_v61 = vld [vmem:[%s10471_s26 + $0x188] ss:$16 sps:$4 sm:$0xff]   ;;  %v6953_v62 = vld [vmem:[%s10471_s26 + $0x1a4] ss:$16 sps:$4 sm:$0xff]  }
  0x1a   :  { %3258 = vmatpush1.bf16.msra.mxu0 %v6903_v18  ;;  %3586 = vmatpush1.bf16.msra.mxu1 %v6904_v19  ;;  %v590_v58 = vcombine.high %v582_v54, %v582_v54  ;;  %v6955_v63 = vld [vmem:[%s10471_s26 + $0x1ac] ss:$16 sps:$4 sm:$0xff]   ;;  %v6957_v0 = vld [vmem:[%s10471_s26 + $0x1a0] ss:$16 sps:$4 sm:$0xff]   ;;  %v6958_v1 = vld [vmem:[%s10471_s26 + $0x1a8] ss:$16 sps:$4 sm:$0xff]   ;;  %v8247_v13 = vrot.slane %v582_v54, %v8167_v49 }
  0x1b   :  { %3259 = vmatprep.subr.bf16.mxu0 %v6905_v20  ;;  %3587 = vmatprep.subr.bf16.mxu1 %v6907_v21  ;;  %v6959_v2 = vld [vmem:[%s10471_s26 + $0x1c4] ss:$16 sps:$4 sm:$0xff]   ;;  %v6961_v3 = vld [vmem:[%s10471_s26 + $0x1cc] ss:$16 sps:$4 sm:$0xff]   ;;  %v6963_v4 = vld [vmem:[%s10471_s26 + $0x1c0] ss:$16 sps:$4 sm:$0xff]  }
  0x1c   :  { %v612_v60 = vrot.slane %v590_v58, %v8167_v49  ;;  %v6964_v5 = vld [vmem:[%s10471_s26 + $0x1c8] ss:$16 sps:$4 sm:$0xff]   ;;  %v6965_v6 = vld [vmem:[%s10471_s26 + $0x1e4] ss:$16 sps:$4 sm:$0xff]   ;;  %v6967_v7 = vld [vmem:[%s10471_s26 + $0x1ec] ss:$16 sps:$4 sm:$0xff]  }
  0x1d   :  { %v6969_v8 = vld [vmem:[%s10471_s26 + $0x1e0] ss:$16 sps:$4 sm:$0xff]   ;;  %v6970_v9 = vld [vmem:[%s10471_s26 + $0x1e8] ss:$16 sps:$4 sm:$0xff]   ;;  %v6973_v10 = vld [vmem:[%s10471_s26 + $0x204] ss:$16 sps:$4 sm:$0xff]  }
  0x1e   :  { %3260 = vmatpush1.bf16.msra.mxu0 %v6909_v22  ;;  %3588 = vmatpush1.bf16.msra.mxu1 %v6910_v23  ;;  %v6976_v11 = vld [vmem:[%s10471_s26 + $0x20c] ss:$16 sps:$4 sm:$0xff]   ;;  %v6971_v12 = vld [vmem:[%s10471_s26 + $0x200] ss:$16 sps:$4 sm:$0xff]   ;;  %v6974_v14 = vld [vmem:[%s10471_s26 + $0x208] ss:$16 sps:$4 sm:$0xff]   ;;  %v622_v17 = vcombine.high %v612_v60, %v612_v60 }
  0x1f   :  { %3261 = vmatprep.subr.bf16.mxu0 %v6911_v24  ;;  %3589 = vmatprep.subr.bf16.mxu1 %v6913_v25  ;;  %v6979_v15 = vld [vmem:[%s10471_s26 + $0x224] ss:$16 sps:$4 sm:$0xff]   ;;  %v6982_v16 = vld [vmem:[%s10471_s26 + $0x22c] ss:$16 sps:$4 sm:$0xff]   ;;  %v6977_v18 = vld [vmem:[%s10471_s26 + $0x220] ss:$16 sps:$4 sm:$0xff]  }
  0x20   :  { %3281 = vmatprep.mubr.bf16.mxu0 %v612_v60  ;;  %3609 = vmatprep.mubr.bf16.mxu1 %v612_v60  ;;  %v6980_v19 = vld [vmem:[%s10471_s26 + $0x228] ss:$16 sps:$4 sm:$0xff]   ;;  %v6985_v20 = vld [vmem:[%s10471_s26 + $0x244] ss:$16 sps:$4 sm:$0xff]   ;;  %v6988_v21 = vld [vmem:[%s10471_s26 + $0x24c] ss:$16 sps:$4 sm:$0xff]  }
  0x21   :  { %v6983_v22 = vld [vmem:[%s10471_s26 + $0x240] ss:$16 sps:$4 sm:$0xff]   ;;  %v6986_v23 = vld [vmem:[%s10471_s26 + $0x248] ss:$16 sps:$4 sm:$0xff]   ;;  %v6991_v24 = vld [vmem:[%s10471_s26 + $0x264] ss:$16 sps:$4 sm:$0xff]  }
  0x22   :  { %3262 = vmatpush1.bf16.msra.mxu0 %v6915_v26  ;;  %3590 = vmatpush1.bf16.msra.mxu1 %v6916_v27  ;;  %v6994_v25 = vld [vmem:[%s10471_s26 + $0x26c] ss:$16 sps:$4 sm:$0xff]   ;;  %v6989_v26 = vld [vmem:[%s10471_s26 + $0x260] ss:$16 sps:$4 sm:$0xff]   ;;  %v6992_v27 = vld [vmem:[%s10471_s26 + $0x268] ss:$16 sps:$4 sm:$0xff]  }
  0x23   :  { %3263 = vmatprep.subr.bf16.mxu0 %v6917_v28  ;;  %3591 = vmatprep.subr.bf16.mxu1 %v6919_v29  ;;  %v6997_v28 = vld [vmem:[%s10471_s26 + $0x284] ss:$16 sps:$4 sm:$0xff]   ;;  %v7000_v29 = vld [vmem:[%s10471_s26 + $0x28c] ss:$16 sps:$4 sm:$0xff]   ;;  %v7007_v38 = vld [vmem:[%s10471_s26 + $0x2c0] ss:$16 sps:$4 sm:$0xff]  }
  0x24   :  { %v7009_v36 = vld [vmem:[%s10471_s26 + $0x2c4] ss:$16 sps:$4 sm:$0xff]   ;;  %v7012_v37 = vld [vmem:[%s10471_s26 + $0x2cc] ss:$16 sps:$4 sm:$0xff]   ;;  %v7013_v42 = vld [vmem:[%s10471_s26 + $0x2e0] ss:$16 sps:$4 sm:$0xff]  }
  0x25   :  { %v7028_v54 = vld [vmem:[%s10471_s26 + $0x328] ss:$16 sps:$4 sm:$0xff]   ;;  %v7042_v60 = vld [vmem:[%s10471_s26 + $0x36c] ss:$16 sps:$4 sm:$0xff]  }
  0x26   :  { %3264 = vmatpush1.bf16.msra.mxu0 %v6921_v30  ;;  %3592 = vmatpush1.bf16.msra.mxu1 %v6922_v31  ;;  %v6995_v30 = vld [vmem:[%s10471_s26 + $0x280] ss:$16 sps:$4 sm:$0xff]   ;;  %v6998_v31 = vld [vmem:[%s10471_s26 + $0x288] ss:$16 sps:$4 sm:$0xff]  }
  0x27   :  { %3265 = vmatprep.subr.bf16.mxu0 %v6923_v32  ;;  %3593 = vmatprep.subr.bf16.mxu1 %v6925_v33  ;;  %v7003_v32 = vld [vmem:[%s10471_s26 + $0x2a4] ss:$16 sps:$4 sm:$0xff]   ;;  %v7006_v33 = vld [vmem:[%s10471_s26 + $0x2ac] ss:$16 sps:$4 sm:$0xff]   ;;  %v7034_v58 = vld [vmem:[%s10471_s26 + $0x348] ss:$16 sps:$4 sm:$0xff]  }
  0x2a   :  { %3266 = vmatpush1.bf16.msra.mxu0 %v6927_v34  ;;  %3594 = vmatpush1.bf16.msra.mxu1 %v6928_v35  ;;  %v7001_v34 = vld [vmem:[%s10471_s26 + $0x2a0] ss:$16 sps:$4 sm:$0xff]   ;;  %v7004_v35 = vld [vmem:[%s10471_s26 + $0x2a8] ss:$16 sps:$4 sm:$0xff]  }
  0x2b   :  { %3267 = vmatprep.subr.bf16.mxu0 %v6929_v39  ;;  %3595 = vmatprep.subr.bf16.mxu1 %v6931_v40  ;;  %v7010_v39 = vld [vmem:[%s10471_s26 + $0x2c8] ss:$16 sps:$4 sm:$0xff]   ;;  %v7015_v40 = vld [vmem:[%s10471_s26 + $0x2e4] ss:$16 sps:$4 sm:$0xff]  }
  0x2e   :  { %3268 = vmatpush1.bf16.msra.mxu0 %v6933_v41  ;;  %3596 = vmatpush1.bf16.msra.mxu1 %v6934_v44  ;;  %v7018_v41 = vld [vmem:[%s10471_s26 + $0x2ec] ss:$16 sps:$4 sm:$0xff]   ;;  %v7016_v44 = vld [vmem:[%s10471_s26 + $0x2e8] ss:$16 sps:$4 sm:$0xff]  }
  0x2f   :  { %3269 = vmatprep.subr.bf16.mxu0 %v6935_v45  ;;  %3597 = vmatprep.subr.bf16.mxu1 %v6937_v46  ;;  %v7021_v45 = vld [vmem:[%s10471_s26 + $0x304] ss:$16 sps:$4 sm:$0xff]   ;;  %v7024_v46 = vld [vmem:[%s10471_s26 + $0x30c] ss:$16 sps:$4 sm:$0xff]  }
  0x32   :  { %3270 = vmatpush1.bf16.msra.mxu0 %v6939_v47  ;;  %3598 = vmatpush1.bf16.msra.mxu1 %v6940_v48  ;;  %v7019_v47 = vld [vmem:[%s10471_s26 + $0x300] ss:$16 sps:$4 sm:$0xff]   ;;  %v7022_v48 = vld [vmem:[%s10471_s26 + $0x308] ss:$16 sps:$4 sm:$0xff]  }
  0x33   :  { %3271 = vmatprep.subr.bf16.mxu0 %v6941_v50  ;;  %3599 = vmatprep.subr.bf16.mxu1 %v6943_v51  ;;  %v7027_v50 = vld [vmem:[%s10471_s26 + $0x324] ss:$16 sps:$4 sm:$0xff]   ;;  %v7030_v51 = vld [vmem:[%s10471_s26 + $0x32c] ss:$16 sps:$4 sm:$0xff]  }
  0x36   :  { %3272 = vmatpush1.bf16.msra.mxu0 %v6945_v53  ;;  %3600 = vmatpush1.bf16.msra.mxu1 %v6946_v55  ;;  %v7025_v53 = vld [vmem:[%s10471_s26 + $0x320] ss:$16 sps:$4 sm:$0xff]   ;;  %v7033_v55 = vld [vmem:[%s10471_s26 + $0x344] ss:$16 sps:$4 sm:$0xff]  }
  0x37   :  { %3273 = vmatprep.subr.bf16.mxu0 %v6947_v56  ;;  %3601 = vmatprep.subr.bf16.mxu1 %v6949_v57  ;;  %v7036_v56 = vld [vmem:[%s10471_s26 + $0x34c] ss:$16 sps:$4 sm:$0xff]   ;;  %v7031_v57 = vld [vmem:[%s10471_s26 + $0x340] ss:$16 sps:$4 sm:$0xff]  }
  0x3a   :  { %3274 = vmatpush1.bf16.msra.mxu0 %v6951_v59  ;;  %3602 = vmatpush1.bf16.msra.mxu1 %v6952_v61  ;;  %v7039_v59 = vld [vmem:[%s10471_s26 + $0x364] ss:$16 sps:$4 sm:$0xff]   ;;  %v7037_v61 = vld [vmem:[%s10471_s26 + $0x360] ss:$16 sps:$4 sm:$0xff]  }
  0x3b   :  { %3275 = vmatprep.subr.bf16.mxu0 %v6953_v62  ;;  %3603 = vmatprep.subr.bf16.mxu1 %v6955_v63  ;;  %v7040_v62 = vld [vmem:[%s10471_s26 + $0x368] ss:$16 sps:$4 sm:$0xff]   ;;  %v7045_v63 = vld [vmem:[%s10471_s26 + $0x384] ss:$16 sps:$4 sm:$0xff]  }
  0x3e   :  { %3276 = vmatpush1.bf16.msra.mxu0 %v6957_v0  ;;  %3604 = vmatpush1.bf16.msra.mxu1 %v6958_v1  ;;  %v7048_v0 = vld [vmem:[%s10471_s26 + $0x38c] ss:$16 sps:$4 sm:$0xff]   ;;  %v7043_v1 = vld [vmem:[%s10471_s26 + $0x380] ss:$16 sps:$4 sm:$0xff]  }
  0x3f   :  { %3277 = vmatprep.subr.bf16.mxu0 %v6959_v2  ;;  %3605 = vmatprep.subr.bf16.mxu1 %v6961_v3  ;;  %v7046_v2 = vld [vmem:[%s10471_s26 + $0x388] ss:$16 sps:$4 sm:$0xff]   ;;  %v7051_v3 = vld [vmem:[%s10471_s26 + $0x3a4] ss:$16 sps:$4 sm:$0xff]  }
  0x42   :  { %3278 = vmatpush1.bf16.msra.mxu0 %v6963_v4  ;;  %3606 = vmatpush1.bf16.msra.mxu1 %v6964_v5  ;;  %v7054_v4 = vld [vmem:[%s10471_s26 + $0x3ac] ss:$16 sps:$4 sm:$0xff]   ;;  %v7049_v5 = vld [vmem:[%s10471_s26 + $0x3a0] ss:$16 sps:$4 sm:$0xff]  }
  0x43   :  { %3279 = vmatprep.subr.bf16.mxu0 %v6965_v6  ;;  %3607 = vmatprep.subr.bf16.mxu1 %v6967_v7  ;;  %v7052_v6 = vld [vmem:[%s10471_s26 + $0x3a8] ss:$16 sps:$4 sm:$0xff]   ;;  %v7057_v7 = vld [vmem:[%s10471_s26 + $0x3c4] ss:$16 sps:$4 sm:$0xff]  }
  0x46   :  { %3280 = vmatpush1.bf16.msra.mxu0 %v6969_v8  ;;  %3608 = vmatpush1.bf16.msra.mxu1 %v6970_v9  ;;  %v7060_v8 = vld [vmem:[%s10471_s26 + $0x3cc] ss:$16 sps:$4 sm:$0xff]   ;;  %v575_v9 = vcombine.high %v8178_v52, %v8178_v52 }
  0x47   :  { %3290 = vmatprep.subr.bf16.mxu0 %v6973_v10  ;;  %3618 = vmatprep.subr.bf16.mxu1 %v6976_v11  ;;  %v7055_v10 = vld [vmem:[%s10471_s26 + $0x3c0] ss:$16 sps:$4 sm:$0xff]   ;;  %v7058_v11 = vld [vmem:[%s10471_s26 + $0x3c8] ss:$16 sps:$4 sm:$0xff]   ;;  %v7066_v52 = vld [vmem:[%s10471_s26 + $0x3ec] ss:$16 sps:$4 sm:$0xff]  }
  0x49   :  { %3282 = vmatmul.mubr.bf16.vlgmr.msra.gmra.mrb[0].mxu0 %v8247_v13  ;;  %3610 = vmatmul.mubr.bf16.vlgmr.msra.gmra.mrb[0].mxu1 %v8247_v13 }
  0x4a   :  { %3291 = vmatpush1.bf16.msra.mxu0 %v6971_v12  ;;  %3619 = vmatpush1.bf16.msra.mxu1 %v6974_v14  ;;  %v7063_v12 = vld [vmem:[%s10471_s26 + $0x3e4] ss:$16 sps:$4 sm:$0xff]   ;;  %v8431_v14 = vrot.slane %v575_v9, %v8167_v49  ;;  %v7142_v9 = vld [vmem:[%s10471_s26 + $0x588] ss:$16 sps:$4 sm:$0xff]  }
  0x4b   :  { %3292 = vmatprep.subr.bf16.mxu0 %v6979_v15  ;;  %3620 = vmatprep.subr.bf16.mxu1 %v6982_v16  ;;  %v7061_v15 = vld [vmem:[%s10471_s26 + $0x3e0] ss:$16 sps:$4 sm:$0xff]   ;;  %v7064_v16 = vld [vmem:[%s10471_s26 + $0x3e8] ss:$16 sps:$4 sm:$0xff]  }
  0x4c   :  { %3322 = vmatprep.mubr.bf16.mxu0 %v622_v17  ;;  %3650 = vmatprep.mubr.bf16.mxu1 %v622_v17  ;;  %v7069_v17 = vld [vmem:[%s10471_s26 + $0x404] ss:$16 sps:$4 sm:$0xff]  }
  0x4e   :  { %3293 = vmatpush1.bf16.msra.mxu0 %v6977_v18  ;;  %3621 = vmatpush1.bf16.msra.mxu1 %v6980_v19  ;;  %v7072_v18 = vld [vmem:[%s10471_s26 + $0x40c] ss:$16 sps:$4 sm:$0xff]   ;;  %v591_v19 = vcombine.high %v8431_v14, %v8431_v14 }
  0x4f   :  { %3294 = vmatprep.subr.bf16.mxu0 %v6985_v20  ;;  %3622 = vmatprep.subr.bf16.mxu1 %v6988_v21  ;;  %v7067_v20 = vld [vmem:[%s10471_s26 + $0x400] ss:$16 sps:$4 sm:$0xff]   ;;  %v620_v21 = vcombine.high %v8247_v13, %v8247_v13 }
  0x50   :  { %v7073_v13 = vld [vmem:[%s10471_s26 + $0x420] ss:$16 sps:$4 sm:$0xff]  }
  0x52   :  { %3295 = vmatpush1.bf16.msra.mxu0 %v6983_v22  ;;  %3623 = vmatpush1.bf16.msra.mxu1 %v6986_v23  ;;  %v7070_v22 = vld [vmem:[%s10471_s26 + $0x408] ss:$16 sps:$4 sm:$0xff]   ;;  %v7075_v23 = vld [vmem:[%s10471_s26 + $0x424] ss:$16 sps:$4 sm:$0xff]  }
  0x53   :  { %3296 = vmatprep.subr.bf16.mxu0 %v6991_v24  ;;  %3624 = vmatprep.subr.bf16.mxu1 %v6994_v25  ;;  %v7078_v24 = vld [vmem:[%s10471_s26 + $0x42c] ss:$16 sps:$4 sm:$0xff]   ;;  %v8462_v25 = vrot.slane %v591_v19, %v8167_v49  ;;  %v7159_v19 = vld [vmem:[%s10471_s26 + $0x5e4] ss:$16 sps:$4 sm:$0xff]  }
  0x56   :  { %3297 = vmatpush1.bf16.msra.mxu0 %v6989_v26  ;;  %3625 = vmatpush1.bf16.msra.mxu1 %v6992_v27  ;;  %v7076_v26 = vld [vmem:[%s10471_s26 + $0x428] ss:$16 sps:$4 sm:$0xff]   ;;  %v7081_v27 = vld [vmem:[%s10471_s26 + $0x444] ss:$16 sps:$4 sm:$0xff]  }
  0x57   :  { %3298 = vmatprep.subr.bf16.mxu0 %v6997_v28  ;;  %3626 = vmatprep.subr.bf16.mxu1 %v7000_v29  ;;  %v7084_v28 = vld [vmem:[%s10471_s26 + $0x44c] ss:$16 sps:$4 sm:$0xff]   ;;  %v7079_v29 = vld [vmem:[%s10471_s26 + $0x440] ss:$16 sps:$4 sm:$0xff]  }
  0x5a   :  { %3299 = vmatpush1.bf16.msra.mxu0 %v6995_v30  ;;  %3627 = vmatpush1.bf16.msra.mxu1 %v6998_v31  ;;  %v7082_v30 = vld [vmem:[%s10471_s26 + $0x448] ss:$16 sps:$4 sm:$0xff]   ;;  %v7087_v31 = vld [vmem:[%s10471_s26 + $0x464] ss:$16 sps:$4 sm:$0xff]  }
  0x5b   :  { %3300 = vmatprep.subr.bf16.mxu0 %v7003_v32  ;;  %3628 = vmatprep.subr.bf16.mxu1 %v7006_v33  ;;  %v7090_v32 = vld [vmem:[%s10471_s26 + $0x46c] ss:$16 sps:$4 sm:$0xff]   ;;  %v7085_v33 = vld [vmem:[%s10471_s26 + $0x460] ss:$16 sps:$4 sm:$0xff]  }
  0x5e   :  { %3301 = vmatpush1.bf16.msra.mxu0 %v7001_v34  ;;  %3629 = vmatpush1.bf16.msra.mxu1 %v7004_v35  ;;  %v7088_v34 = vld [vmem:[%s10471_s26 + $0x468] ss:$16 sps:$4 sm:$0xff]   ;;  %v7093_v35 = vld [vmem:[%s10471_s26 + $0x484] ss:$16 sps:$4 sm:$0xff]  }
  0x5f   :  { %3302 = vmatprep.subr.bf16.mxu0 %v7009_v36  ;;  %3630 = vmatprep.subr.bf16.mxu1 %v7012_v37  ;;  %v7096_v36 = vld [vmem:[%s10471_s26 + $0x48c] ss:$16 sps:$4 sm:$0xff]   ;;  %v7091_v37 = vld [vmem:[%s10471_s26 + $0x480] ss:$16 sps:$4 sm:$0xff]  }
  0x62   :  { %3303 = vmatpush1.bf16.msra.mxu0 %v7007_v38  ;;  %3631 = vmatpush1.bf16.msra.mxu1 %v7010_v39  ;;  %v7094_v38 = vld [vmem:[%s10471_s26 + $0x488] ss:$16 sps:$4 sm:$0xff]   ;;  %v7099_v39 = vld [vmem:[%s10471_s26 + $0x4a4] ss:$16 sps:$4 sm:$0xff]  }
  0x63   :  { %3304 = vmatprep.subr.bf16.mxu0 %v7015_v40  ;;  %3632 = vmatprep.subr.bf16.mxu1 %v7018_v41  ;;  %v7102_v40 = vld [vmem:[%s10471_s26 + $0x4ac] ss:$16 sps:$4 sm:$0xff]   ;;  %v7097_v41 = vld [vmem:[%s10471_s26 + $0x4a0] ss:$16 sps:$4 sm:$0xff]  }
  0x66   :  { %3305 = vmatpush1.bf16.msra.mxu0 %v7013_v42  ;;  %3633 = vmatpush1.bf16.msra.mxu1 %v7016_v44  ;;  %v7100_v42 = vld [vmem:[%s10471_s26 + $0x4a8] ss:$16 sps:$4 sm:$0xff]   ;;  %v7105_v44 = vld [vmem:[%s10471_s26 + $0x4c4] ss:$16 sps:$4 sm:$0xff]  }
  0x67   :  { %3306 = vmatprep.subr.bf16.mxu0 %v7021_v45  ;;  %3634 = vmatprep.subr.bf16.mxu1 %v7024_v46  ;;  %v7108_v45 = vld [vmem:[%s10471_s26 + $0x4cc] ss:$16 sps:$4 sm:$0xff]   ;;  %v7103_v46 = vld [vmem:[%s10471_s26 + $0x4c0] ss:$16 sps:$4 sm:$0xff]  }
  0x6a   :  { %3307 = vmatpush1.bf16.msra.mxu0 %v7019_v47  ;;  %3635 = vmatpush1.bf16.msra.mxu1 %v7022_v48  ;;  %v7106_v47 = vld [vmem:[%s10471_s26 + $0x4c8] ss:$16 sps:$4 sm:$0xff]   ;;  %v7111_v48 = vld [vmem:[%s10471_s26 + $0x4e4] ss:$16 sps:$4 sm:$0xff]  }
  0x6b   :  { %3308 = vmatprep.subr.bf16.mxu0 %v7027_v50  ;;  %3636 = vmatprep.subr.bf16.mxu1 %v7030_v51  ;;  %v7114_v50 = vld [vmem:[%s10471_s26 + $0x4ec] ss:$16 sps:$4 sm:$0xff]   ;;  %v7109_v51 = vld [vmem:[%s10471_s26 + $0x4e0] ss:$16 sps:$4 sm:$0xff]  }
  0x6e   :  { %3309 = vmatpush1.bf16.msra.mxu0 %v7025_v53  ;;  %3637 = vmatpush1.bf16.msra.mxu1 %v7028_v54  ;;  %v7112_v53 = vld [vmem:[%s10471_s26 + $0x4e8] ss:$16 sps:$4 sm:$0xff]   ;;  %v7117_v54 = vld [vmem:[%s10471_s26 + $0x504] ss:$16 sps:$4 sm:$0xff]  }
  0x6f   :  { %3310 = vmatprep.subr.bf16.mxu0 %v7033_v55  ;;  %3638 = vmatprep.subr.bf16.mxu1 %v7036_v56  ;;  %v7120_v55 = vld [vmem:[%s10471_s26 + $0x50c] ss:$16 sps:$4 sm:$0xff]   ;;  %v7115_v56 = vld [vmem:[%s10471_s26 + $0x500] ss:$16 sps:$4 sm:$0xff]  }
  0x72   :  { %3311 = vmatpush1.bf16.msra.mxu0 %v7031_v57  ;;  %3639 = vmatpush1.bf16.msra.mxu1 %v7034_v58  ;;  %v7118_v57 = vld [vmem:[%s10471_s26 + $0x508] ss:$16 sps:$4 sm:$0xff]   ;;  %v7123_v58 = vld [vmem:[%s10471_s26 + $0x524] ss:$16 sps:$4 sm:$0xff]  }
  0x73   :  { %3312 = vmatprep.subr.bf16.mxu0 %v7039_v59  ;;  %3640 = vmatprep.subr.bf16.mxu1 %v7042_v60  ;;  %v7126_v59 = vld [vmem:[%s10471_s26 + $0x52c] ss:$16 sps:$4 sm:$0xff]   ;;  %v7121_v60 = vld [vmem:[%s10471_s26 + $0x520] ss:$16 sps:$4 sm:$0xff]  }
  0x76   :  { %3313 = vmatpush1.bf16.msra.mxu0 %v7037_v61  ;;  %3641 = vmatpush1.bf16.msra.mxu1 %v7040_v62  ;;  %v7124_v61 = vld [vmem:[%s10471_s26 + $0x528] ss:$16 sps:$4 sm:$0xff]   ;;  %v7129_v62 = vld [vmem:[%s10471_s26 + $0x544] ss:$16 sps:$4 sm:$0xff]  }
  0x77   :  { %3314 = vmatprep.subr.bf16.mxu0 %v7045_v63  ;;  %3642 = vmatprep.subr.bf16.mxu1 %v7048_v0  ;;  %v7132_v63 = vld [vmem:[%s10471_s26 + $0x54c] ss:$16 sps:$4 sm:$0xff]   ;;  %v7127_v0 = vld [vmem:[%s10471_s26 + $0x540] ss:$16 sps:$4 sm:$0xff]  }
  0x7a   :  { %3315 = vmatpush1.bf16.msra.mxu0 %v7043_v1  ;;  %3643 = vmatpush1.bf16.msra.mxu1 %v7046_v2  ;;  %v7130_v1 = vld [vmem:[%s10471_s26 + $0x548] ss:$16 sps:$4 sm:$0xff]   ;;  %v7135_v2 = vld [vmem:[%s10471_s26 + $0x564] ss:$16 sps:$4 sm:$0xff]  }
  0x7b   :  { %3316 = vmatprep.subr.bf16.mxu0 %v7051_v3  ;;  %3644 = vmatprep.subr.bf16.mxu1 %v7054_v4  ;;  %v7138_v3 = vld [vmem:[%s10471_s26 + $0x56c] ss:$16 sps:$4 sm:$0xff]   ;;  %v7133_v4 = vld [vmem:[%s10471_s26 + $0x560] ss:$16 sps:$4 sm:$0xff]  }
  0x7e   :  { %3317 = vmatpush1.bf16.msra.mxu0 %v7049_v5  ;;  %3645 = vmatpush1.bf16.msra.mxu1 %v7052_v6  ;;  %v7136_v5 = vld [vmem:[%s10471_s26 + $0x568] ss:$16 sps:$4 sm:$0xff]   ;;  %v7141_v6 = vld [vmem:[%s10471_s26 + $0x584] ss:$16 sps:$4 sm:$0xff]  }
  0x7f   :  { %3318 = vmatprep.subr.bf16.mxu0 %v7057_v7  ;;  %3646 = vmatprep.subr.bf16.mxu1 %v7060_v8  ;;  %v7144_v7 = vld [vmem:[%s10471_s26 + $0x58c] ss:$16 sps:$4 sm:$0xff]   ;;  %v7139_v8 = vld [vmem:[%s10471_s26 + $0x580] ss:$16 sps:$4 sm:$0xff]  }
  0x82   :  { %3319 = vmatpush1.bf16.msra.mxu0 %v7055_v10  ;;  %3647 = vmatpush1.bf16.msra.mxu1 %v7058_v11  ;;  %v7147_v10 = vld [vmem:[%s10471_s26 + $0x5a4] ss:$16 sps:$4 sm:$0xff]   ;;  %v7150_v11 = vld [vmem:[%s10471_s26 + $0x5ac] ss:$16 sps:$4 sm:$0xff]  }
  0x83   :  { %3320 = vmatprep.subr.bf16.mxu0 %v7063_v12  ;;  %3648 = vmatprep.subr.bf16.mxu1 %v7066_v52  ;;  %v7145_v12 = vld [vmem:[%s10471_s26 + $0x5a0] ss:$16 sps:$4 sm:$0xff]   ;;  %v7148_v52 = vld [vmem:[%s10471_s26 + $0x5a8] ss:$16 sps:$4 sm:$0xff]  }
  0x86   :  { %3321 = vmatpush1.bf16.msra.mxu0 %v7061_v15  ;;  %3649 = vmatpush1.bf16.msra.mxu1 %v7064_v16  ;;  %v7153_v15 = vld [vmem:[%s10471_s26 + $0x5c4] ss:$16 sps:$4 sm:$0xff]   ;;  %v7156_v16 = vld [vmem:[%s10471_s26 + $0x5cc] ss:$16 sps:$4 sm:$0xff]  }
  0x87   :  { %3331 = vmatprep.subr.bf16.mxu0 %v7069_v17  ;;  %3659 = vmatprep.subr.bf16.mxu1 %v7072_v18  ;;  %v7151_v17 = vld [vmem:[%s10471_s26 + $0x5c0] ss:$16 sps:$4 sm:$0xff]   ;;  %v7154_v18 = vld [vmem:[%s10471_s26 + $0x5c8] ss:$16 sps:$4 sm:$0xff]  }
  0x89   :  { %3323 = vmatmul.mubr.bf16.vlgmr.msra.gmra.mrb[0].mxu0 %v620_v21  ;;  %3651 = vmatmul.mubr.bf16.vlgmr.msra.gmra.mrb[0].mxu1 %v620_v21  ;;  %v7157_v21 = vld [vmem:[%s10471_s26 + $0x5e0] ss:$16 sps:$4 sm:$0xff]  }
  0x8a   :  { %3332 = vmatpush1.bf16.msra.mxu0 %v7067_v20  ;;  %3660 = vmatpush1.bf16.msra.mxu1 %v7070_v22  ;;  %v7162_v20 = vld [vmem:[%s10471_s26 + $0x5ec] ss:$16 sps:$4 sm:$0xff]   ;;  %v7160_v22 = vld [vmem:[%s10471_s26 + $0x5e8] ss:$16 sps:$4 sm:$0xff]  }
  0x8b   :  { %3333 = vmatprep.subr.bf16.mxu0 %v7075_v23  ;;  %3661 = vmatprep.subr.bf16.mxu1 %v7078_v24  ;;  %v7166_v23 = vld [vmem:[%s10471_s26 + $0x604] ss:$16 sps:$4 sm:$0xff]   ;;  %v7169_v24 = vld [vmem:[%s10471_s26 + $0x60c] ss:$16 sps:$4 sm:$0xff]  }
  0x8c   :  { %3363 = vmatprep.mubr.bf16.mxu0 %v8462_v25  ;;  %3691 = vmatprep.mubr.bf16.mxu1 %v8462_v25 }
  0x8e   :  { %3334 = vmatpush1.bf16.msra.mxu0 %v7073_v13  ;;  %3662 = vmatpush1.bf16.msra.mxu1 %v7076_v26  ;;  %v7164_v13 = vld [vmem:[%s10471_s26 + $0x600] ss:$16 sps:$4 sm:$0xff]   ;;  %v8651_v26 = vrot.slane %v8431_v14, %v8167_v49  ;;  %v623_v14 = vcombine.high %v8462_v25, %v8462_v25  ;;  %v7178_v25 = vld [vmem:[%s10471_s26 + $0x644] ss:$16 sps:$4 sm:$0xff]  }
  0x8f   :  { %3335 = vmatprep.subr.bf16.mxu0 %v7081_v27  ;;  %3663 = vmatprep.subr.bf16.mxu1 %v7084_v28  ;;  %v7167_v27 = vld [vmem:[%s10471_s26 + $0x608] ss:$16 sps:$4 sm:$0xff]   ;;  %v7172_v28 = vld [vmem:[%s10471_s26 + $0x624] ss:$16 sps:$4 sm:$0xff]  }
  0x92   :  { %3336 = vmatpush1.bf16.msra.mxu0 %v7079_v29  ;;  %3664 = vmatpush1.bf16.msra.mxu1 %v7082_v30  ;;  %v7175_v29 = vld [vmem:[%s10471_s26 + $0x62c] ss:$16 sps:$4 sm:$0xff]   ;;  %v7170_v30 = vld [vmem:[%s10471_s26 + $0x620] ss:$16 sps:$4 sm:$0xff]  }
  0x93   :  { %3337 = vmatprep.subr.bf16.mxu0 %v7087_v31  ;;  %3665 = vmatprep.subr.bf16.mxu1 %v7090_v32  ;;  %v7173_v31 = vld [vmem:[%s10471_s26 + $0x628] ss:$16 sps:$4 sm:$0xff]   ;;  %v7181_v32 = vld [vmem:[%s10471_s26 + $0x64c] ss:$16 sps:$4 sm:$0xff]  }
  0x96   :  { %3338 = vmatpush1.bf16.msra.mxu0 %v7085_v33  ;;  %3666 = vmatpush1.bf16.msra.mxu1 %v7088_v34  ;;  %v7176_v33 = vld [vmem:[%s10471_s26 + $0x640] ss:$16 sps:$4 sm:$0xff]   ;;  %v7179_v34 = vld [vmem:[%s10471_s26 + $0x648] ss:$16 sps:$4 sm:$0xff]  }
  0x97   :  { %3339 = vmatprep.subr.bf16.mxu0 %v7093_v35  ;;  %3667 = vmatprep.subr.bf16.mxu1 %v7096_v36  ;;  %v7184_v35 = vld [vmem:[%s10471_s26 + $0x664] ss:$16 sps:$4 sm:$0xff]   ;;  %v7187_v36 = vld [vmem:[%s10471_s26 + $0x66c] ss:$16 sps:$4 sm:$0xff]  }
  0x9a   :  { %3340 = vmatpush1.bf16.msra.mxu0 %v7091_v37  ;;  %3668 = vmatpush1.bf16.msra.mxu1 %v7094_v38  ;;  %v7182_v37 = vld [vmem:[%s10471_s26 + $0x660] ss:$16 sps:$4 sm:$0xff]   ;;  %v7185_v38 = vld [vmem:[%s10471_s26 + $0x668] ss:$16 sps:$4 sm:$0xff]  }
  0x9b   :  { %3341 = vmatprep.subr.bf16.mxu0 %v7099_v39  ;;  %3669 = vmatprep.subr.bf16.mxu1 %v7102_v40  ;;  %v7190_v39 = vld [vmem:[%s10471_s26 + $0x684] ss:$16 sps:$4 sm:$0xff]   ;;  %v7193_v40 = vld [vmem:[%s10471_s26 + $0x68c] ss:$16 sps:$4 sm:$0xff]  }
  0x9e   :  { %3342 = vmatpush1.bf16.msra.mxu0 %v7097_v41  ;;  %3670 = vmatpush1.bf16.msra.mxu1 %v7100_v42  ;;  %v7188_v41 = vld [vmem:[%s10471_s26 + $0x680] ss:$16 sps:$4 sm:$0xff]   ;;  %v7191_v42 = vld [vmem:[%s10471_s26 + $0x688] ss:$16 sps:$4 sm:$0xff]  }
  0x9f   :  { %3343 = vmatprep.subr.bf16.mxu0 %v7105_v44  ;;  %3671 = vmatprep.subr.bf16.mxu1 %v7108_v45  ;;  %v7196_v44 = vld [vmem:[%s10471_s26 + $0x6a4] ss:$16 sps:$4 sm:$0xff]   ;;  %v7199_v45 = vld [vmem:[%s10471_s26 + $0x6ac] ss:$16 sps:$4 sm:$0xff]  }
  0xa2   :  { %3344 = vmatpush1.bf16.msra.mxu0 %v7103_v46  ;;  %3672 = vmatpush1.bf16.msra.mxu1 %v7106_v47  ;;  %v7194_v46 = vld [vmem:[%s10471_s26 + $0x6a0] ss:$16 sps:$4 sm:$0xff]   ;;  %v7197_v47 = vld [vmem:[%s10471_s26 + $0x6a8] ss:$16 sps:$4 sm:$0xff]  }
  0xa3   :  { %3345 = vmatprep.subr.bf16.mxu0 %v7111_v48  ;;  %3673 = vmatprep.subr.bf16.mxu1 %v7114_v50  ;;  %v7202_v48 = vld [vmem:[%s10471_s26 + $0x6c4] ss:$16 sps:$4 sm:$0xff]   ;;  %v7205_v50 = vld [vmem:[%s10471_s26 + $0x6cc] ss:$16 sps:$4 sm:$0xff]  }
  0xa6   :  { %3346 = vmatpush1.bf16.msra.mxu0 %v7109_v51  ;;  %3674 = vmatpush1.bf16.msra.mxu1 %v7112_v53  ;;  %v7200_v51 = vld [vmem:[%s10471_s26 + $0x6c0] ss:$16 sps:$4 sm:$0xff]   ;;  %v7203_v53 = vld [vmem:[%s10471_s26 + $0x6c8] ss:$16 sps:$4 sm:$0xff]  }
  0xa7   :  { %3347 = vmatprep.subr.bf16.mxu0 %v7117_v54  ;;  %3675 = vmatprep.subr.bf16.mxu1 %v7120_v55  ;;  %v7208_v54 = vld [vmem:[%s10471_s26 + $0x6e4] ss:$16 sps:$4 sm:$0xff]   ;;  %v7211_v55 = vld [vmem:[%s10471_s26 + $0x6ec] ss:$16 sps:$4 sm:$0xff]  }
  0xaa   :  { %3348 = vmatpush1.bf16.msra.mxu0 %v7115_v56  ;;  %3676 = vmatpush1.bf16.msra.mxu1 %v7118_v57  ;;  %v7206_v56 = vld [vmem:[%s10471_s26 + $0x6e0] ss:$16 sps:$4 sm:$0xff]   ;;  %v7209_v57 = vld [vmem:[%s10471_s26 + $0x6e8] ss:$16 sps:$4 sm:$0xff]  }
  0xab   :  { %3349 = vmatprep.subr.bf16.mxu0 %v7123_v58  ;;  %3677 = vmatprep.subr.bf16.mxu1 %v7126_v59  ;;  %v7214_v58 = vld [vmem:[%s10471_s26 + $0x704] ss:$16 sps:$4 sm:$0xff]   ;;  %v7217_v59 = vld [vmem:[%s10471_s26 + $0x70c] ss:$16 sps:$4 sm:$0xff]  }
  0xae   :  { %3350 = vmatpush1.bf16.msra.mxu0 %v7121_v60  ;;  %3678 = vmatpush1.bf16.msra.mxu1 %v7124_v61  ;;  %v7212_v60 = vld [vmem:[%s10471_s26 + $0x700] ss:$16 sps:$4 sm:$0xff]   ;;  %v7215_v61 = vld [vmem:[%s10471_s26 + $0x708] ss:$16 sps:$4 sm:$0xff]  }
  0xaf   :  { %3351 = vmatprep.subr.bf16.mxu0 %v7129_v62  ;;  %3679 = vmatprep.subr.bf16.mxu1 %v7132_v63  ;;  %v7220_v62 = vld [vmem:[%s10471_s26 + $0x724] ss:$16 sps:$4 sm:$0xff]   ;;  %v7223_v63 = vld [vmem:[%s10471_s26 + $0x72c] ss:$16 sps:$4 sm:$0xff]  }
  0xb2   :  { %3352 = vmatpush1.bf16.msra.mxu0 %v7127_v0  ;;  %3680 = vmatpush1.bf16.msra.mxu1 %v7130_v1  ;;  %v7218_v0 = vld [vmem:[%s10471_s26 + $0x720] ss:$16 sps:$4 sm:$0xff]   ;;  %v7221_v1 = vld [vmem:[%s10471_s26 + $0x728] ss:$16 sps:$4 sm:$0xff]  }
  0xb3   :  { %3353 = vmatprep.subr.bf16.mxu0 %v7135_v2  ;;  %3681 = vmatprep.subr.bf16.mxu1 %v7138_v3  ;;  %v7226_v2 = vld [vmem:[%s10471_s26 + $0x744] ss:$16 sps:$4 sm:$0xff]   ;;  %v7229_v3 = vld [vmem:[%s10471_s26 + $0x74c] ss:$16 sps:$4 sm:$0xff]  }
  0xb6   :  { %3354 = vmatpush1.bf16.msra.mxu0 %v7133_v4  ;;  %3682 = vmatpush1.bf16.msra.mxu1 %v7136_v5  ;;  %v7224_v4 = vld [vmem:[%s10471_s26 + $0x740] ss:$16 sps:$4 sm:$0xff]   ;;  %v7227_v5 = vld [vmem:[%s10471_s26 + $0x748] ss:$16 sps:$4 sm:$0xff]  }
  0xb7   :  { %3355 = vmatprep.subr.bf16.mxu0 %v7141_v6  ;;  %3683 = vmatprep.subr.bf16.mxu1 %v7144_v7  ;;  %v7232_v6 = vld [vmem:[%s10471_s26 + $0x764] ss:$16 sps:$4 sm:$0xff]   ;;  %v7235_v7 = vld [vmem:[%s10471_s26 + $0x76c] ss:$16 sps:$4 sm:$0xff]  }
  0xba   :  { %3356 = vmatpush1.bf16.msra.mxu0 %v7139_v8  ;;  %3684 = vmatpush1.bf16.msra.mxu1 %v7142_v9  ;;  %v7230_v8 = vld [vmem:[%s10471_s26 + $0x760] ss:$16 sps:$4 sm:$0xff]   ;;  %v7233_v9 = vld [vmem:[%s10471_s26 + $0x768] ss:$16 sps:$4 sm:$0xff]  }
  0xbb   :  { %3357 = vmatprep.subr.bf16.mxu0 %v7147_v10  ;;  %3685 = vmatprep.subr.bf16.mxu1 %v7150_v11  ;;  %v7238_v10 = vld [vmem:[%s10471_s26 + $0x784] ss:$16 sps:$4 sm:$0xff]   ;;  %v7241_v11 = vld [vmem:[%s10471_s26 + $0x78c] ss:$16 sps:$4 sm:$0xff]  }
  0xbe   :  { %3358 = vmatpush1.bf16.msra.mxu0 %v7145_v12  ;;  %3686 = vmatpush1.bf16.msra.mxu1 %v7148_v52  ;;  %v7236_v12 = vld [vmem:[%s10471_s26 + $0x780] ss:$16 sps:$4 sm:$0xff]   ;;  %v7239_v52 = vld [vmem:[%s10471_s26 + $0x788] ss:$16 sps:$4 sm:$0xff]  }
  0xbf   :  { %3359 = vmatprep.subr.bf16.mxu0 %v7153_v15  ;;  %3687 = vmatprep.subr.bf16.mxu1 %v7156_v16  ;;  %v7244_v15 = vld [vmem:[%s10471_s26 + $0x7a4] ss:$16 sps:$4 sm:$0xff]   ;;  %v7247_v16 = vld [vmem:[%s10471_s26 + $0x7ac] ss:$16 sps:$4 sm:$0xff]  }
  0xc2   :  { %3360 = vmatpush1.bf16.msra.mxu0 %v7151_v17  ;;  %3688 = vmatpush1.bf16.msra.mxu1 %v7154_v18  ;;  %v7242_v17 = vld [vmem:[%s10471_s26 + $0x7a0] ss:$16 sps:$4 sm:$0xff]   ;;  %v7245_v18 = vld [vmem:[%s10471_s26 + $0x7a8] ss:$16 sps:$4 sm:$0xff]  }
  0xc3   :  { %3361 = vmatprep.subr.bf16.mxu0 %v7159_v19  ;;  %3689 = vmatprep.subr.bf16.mxu1 %v7162_v20  ;;  %v7250_v19 = vld [vmem:[%s10471_s26 + $0x7c4] ss:$16 sps:$4 sm:$0xff]   ;;  %v7253_v20 = vld [vmem:[%s10471_s26 + $0x7cc] ss:$16 sps:$4 sm:$0xff]  }
  0xc6   :  { %3362 = vmatpush1.bf16.msra.mxu0 %v7157_v21  ;;  %3690 = vmatpush1.bf16.msra.mxu1 %v7160_v22  ;;  %v8825_v21 = vld [vmem:[%s10472_s20 + $0x8] sm:$0xff]  ;;  %v7248_v22 = vld [vmem:[%s10471_s26 + $0x7c0] ss:$16 sps:$4 sm:$0xff]  }
  0xc7   :  { %3372 = vmatprep.subr.bf16.mxu0 %v7166_v23  ;;  %3700 = vmatprep.subr.bf16.mxu1 %v7169_v24  ;;  %v7251_v23 = vld [vmem:[%s10471_s26 + $0x7c8] ss:$16 sps:$4 sm:$0xff]   ;;  %v7256_v24 = vld [vmem:[%s10471_s26 + $0x7e4] ss:$16 sps:$4 sm:$0xff]  }
  0xc9   :  { %3364 = vmatmul.mubr.bf16.vlgmr.msra.gmra.mrb[0].mxu0 %v8651_v26  ;;  %3692 = vmatmul.mubr.bf16.vlgmr.msra.gmra.mrb[0].mxu1 %v8651_v26 }
  0xca   :  { %3373 = vmatpush1.bf16.msra.mxu0 %v7164_v13  ;;  %3701 = vmatpush1.bf16.msra.mxu1 %v7167_v27  ;;  %v7259_v13 = vld [vmem:[%s10471_s26 + $0x7ec] ss:$16 sps:$4 sm:$0xff]   ;;  %v8841_v27 = vrot.slane %v8825_v21, %v8167_v49 }
  0xcb   :  { %3374 = vmatprep.subr.bf16.mxu0 %v7172_v28  ;;  %3702 = vmatprep.subr.bf16.mxu1 %v7175_v29  ;;  %v7254_v28 = vld [vmem:[%s10471_s26 + $0x7e0] ss:$16 sps:$4 sm:$0xff]   ;;  %v7257_v29 = vld [vmem:[%s10471_s26 + $0x7e8] ss:$16 sps:$4 sm:$0xff]  }
  0xcc   :  { %3404 = vmatprep.mubr.bf16.mxu0 %v623_v14  ;;  %3732 = vmatprep.mubr.bf16.mxu1 %v623_v14  ;;  %v7262_v14 = vld [vmem:[%s10471_s26 + $0x804] ss:$16 sps:$4 sm:$0xff]  }
  0xce   :  { %3375 = vmatpush1.bf16.msra.mxu0 %v7170_v30  ;;  %3703 = vmatpush1.bf16.msra.mxu1 %v7173_v31  ;;  %v7265_v30 = vld [vmem:[%s10471_s26 + $0x80c] ss:$16 sps:$4 sm:$0xff]   ;;  %v639_v31 = vcombine.high %v8841_v27, %v8841_v27 }
  0xcf   :  { %3376 = vmatprep.subr.bf16.mxu0 %v7178_v25  ;;  %3704 = vmatprep.subr.bf16.mxu1 %v7181_v32  ;;  %v621_v25 = vcombine.high %v8651_v26, %v8651_v26  ;;  %v7260_v32 = vld [vmem:[%s10471_s26 + $0x800] ss:$16 sps:$4 sm:$0xff]   ;;  %v7271_v26 = vld [vmem:[%s10471_s26 + $0x82c] ss:$16 sps:$4 sm:$0xff]  }
  0xd2   :  { %3377 = vmatpush1.bf16.msra.mxu0 %v7176_v33  ;;  %3705 = vmatpush1.bf16.msra.mxu1 %v7179_v34  ;;  %v7263_v33 = vld [vmem:[%s10471_s26 + $0x808] ss:$16 sps:$4 sm:$0xff]   ;;  %v7268_v34 = vld [vmem:[%s10471_s26 + $0x824] ss:$16 sps:$4 sm:$0xff]  }
  0xd3   :  { %3378 = vmatprep.subr.bf16.mxu0 %v7184_v35  ;;  %3706 = vmatprep.subr.bf16.mxu1 %v7187_v36  ;;  %v8872_v35 = vrot.slane %v639_v31, %v8167_v49  ;;  %v7266_v36 = vld [vmem:[%s10471_s26 + $0x820] ss:$16 sps:$4 sm:$0xff]   ;;  %v7347_v31 = vld [vmem:[%s10471_s26 + $0x9c8] ss:$16 sps:$4 sm:$0xff]  }
  0xd6   :  { %3379 = vmatpush1.bf16.msra.mxu0 %v7182_v37  ;;  %3707 = vmatpush1.bf16.msra.mxu1 %v7185_v38  ;;  %v7269_v37 = vld [vmem:[%s10471_s26 + $0x828] ss:$16 sps:$4 sm:$0xff]   ;;  %v7274_v38 = vld [vmem:[%s10471_s26 + $0x844] ss:$16 sps:$4 sm:$0xff]  }
  0xd7   :  { %3380 = vmatprep.subr.bf16.mxu0 %v7190_v39  ;;  %3708 = vmatprep.subr.bf16.mxu1 %v7193_v40  ;;  %v7277_v39 = vld [vmem:[%s10471_s26 + $0x84c] ss:$16 sps:$4 sm:$0xff]   ;;  %v7272_v40 = vld [vmem:[%s10471_s26 + $0x840] ss:$16 sps:$4 sm:$0xff]  }
  0xda   :  { %3381 = vmatpush1.bf16.msra.mxu0 %v7188_v41  ;;  %3709 = vmatpush1.bf16.msra.mxu1 %v7191_v42  ;;  %v7275_v41 = vld [vmem:[%s10471_s26 + $0x848] ss:$16 sps:$4 sm:$0xff]   ;;  %v7280_v42 = vld [vmem:[%s10471_s26 + $0x864] ss:$16 sps:$4 sm:$0xff]  }
  0xdb   :  { %3382 = vmatprep.subr.bf16.mxu0 %v7196_v44  ;;  %3710 = vmatprep.subr.bf16.mxu1 %v7199_v45  ;;  %v7283_v44 = vld [vmem:[%s10471_s26 + $0x86c] ss:$16 sps:$4 sm:$0xff]   ;;  %v7278_v45 = vld [vmem:[%s10471_s26 + $0x860] ss:$16 sps:$4 sm:$0xff]  }
  0xde   :  { %3383 = vmatpush1.bf16.msra.mxu0 %v7194_v46  ;;  %3711 = vmatpush1.bf16.msra.mxu1 %v7197_v47  ;;  %v7281_v46 = vld [vmem:[%s10471_s26 + $0x868] ss:$16 sps:$4 sm:$0xff]   ;;  %v7286_v47 = vld [vmem:[%s10471_s26 + $0x884] ss:$16 sps:$4 sm:$0xff]  }
  0xdf   :  { %3384 = vmatprep.subr.bf16.mxu0 %v7202_v48  ;;  %3712 = vmatprep.subr.bf16.mxu1 %v7205_v50  ;;  %v7289_v48 = vld [vmem:[%s10471_s26 + $0x88c] ss:$16 sps:$4 sm:$0xff]   ;;  %v7284_v50 = vld [vmem:[%s10471_s26 + $0x880] ss:$16 sps:$4 sm:$0xff]  }
  0xe2   :  { %3385 = vmatpush1.bf16.msra.mxu0 %v7200_v51  ;;  %3713 = vmatpush1.bf16.msra.mxu1 %v7203_v53  ;;  %v7287_v51 = vld [vmem:[%s10471_s26 + $0x888] ss:$16 sps:$4 sm:$0xff]   ;;  %v7292_v53 = vld [vmem:[%s10471_s26 + $0x8a4] ss:$16 sps:$4 sm:$0xff]  }
  0xe3   :  { %3386 = vmatprep.subr.bf16.mxu0 %v7208_v54  ;;  %3714 = vmatprep.subr.bf16.mxu1 %v7211_v55  ;;  %v7295_v54 = vld [vmem:[%s10471_s26 + $0x8ac] ss:$16 sps:$4 sm:$0xff]   ;;  %v7290_v55 = vld [vmem:[%s10471_s26 + $0x8a0] ss:$16 sps:$4 sm:$0xff]  }
  0xe6   :  { %3387 = vmatpush1.bf16.msra.mxu0 %v7206_v56  ;;  %3715 = vmatpush1.bf16.msra.mxu1 %v7209_v57  ;;  %v7293_v56 = vld [vmem:[%s10471_s26 + $0x8a8] ss:$16 sps:$4 sm:$0xff]   ;;  %v7298_v57 = vld [vmem:[%s10471_s26 + $0x8c4] ss:$16 sps:$4 sm:$0xff]  }
  0xe7   :  { %3388 = vmatprep.subr.bf16.mxu0 %v7214_v58  ;;  %3716 = vmatprep.subr.bf16.mxu1 %v7217_v59  ;;  %v7301_v58 = vld [vmem:[%s10471_s26 + $0x8cc] ss:$16 sps:$4 sm:$0xff]   ;;  %v7296_v59 = vld [vmem:[%s10471_s26 + $0x8c0] ss:$16 sps:$4 sm:$0xff]  }
  0xea   :  { %3389 = vmatpush1.bf16.msra.mxu0 %v7212_v60  ;;  %3717 = vmatpush1.bf16.msra.mxu1 %v7215_v61  ;;  %v7299_v60 = vld [vmem:[%s10471_s26 + $0x8c8] ss:$16 sps:$4 sm:$0xff]   ;;  %v7304_v61 = vld [vmem:[%s10471_s26 + $0x8e4] ss:$16 sps:$4 sm:$0xff]  }
  0xeb   :  { %3390 = vmatprep.subr.bf16.mxu0 %v7220_v62  ;;  %3718 = vmatprep.subr.bf16.mxu1 %v7223_v63  ;;  %v7307_v62 = vld [vmem:[%s10471_s26 + $0x8ec] ss:$16 sps:$4 sm:$0xff]   ;;  %v7302_v63 = vld [vmem:[%s10471_s26 + $0x8e0] ss:$16 sps:$4 sm:$0xff]  }
  0xee   :  { %3391 = vmatpush1.bf16.msra.mxu0 %v7218_v0  ;;  %3719 = vmatpush1.bf16.msra.mxu1 %v7221_v1  ;;  %v7305_v0 = vld [vmem:[%s10471_s26 + $0x8e8] ss:$16 sps:$4 sm:$0xff]   ;;  %v7310_v1 = vld [vmem:[%s10471_s26 + $0x904] ss:$16 sps:$4 sm:$0xff]  }
  0xef   :  { %3392 = vmatprep.subr.bf16.mxu0 %v7226_v2  ;;  %3720 = vmatprep.subr.bf16.mxu1 %v7229_v3  ;;  %v7313_v2 = vld [vmem:[%s10471_s26 + $0x90c] ss:$16 sps:$4 sm:$0xff]   ;;  %v7308_v3 = vld [vmem:[%s10471_s26 + $0x900] ss:$16 sps:$4 sm:$0xff]  }
  0xf2   :  { %3393 = vmatpush1.bf16.msra.mxu0 %v7224_v4  ;;  %3721 = vmatpush1.bf16.msra.mxu1 %v7227_v5  ;;  %v7311_v4 = vld [vmem:[%s10471_s26 + $0x908] ss:$16 sps:$4 sm:$0xff]   ;;  %v7316_v5 = vld [vmem:[%s10471_s26 + $0x924] ss:$16 sps:$4 sm:$0xff]  }
  0xf3   :  { %3394 = vmatprep.subr.bf16.mxu0 %v7232_v6  ;;  %3722 = vmatprep.subr.bf16.mxu1 %v7235_v7  ;;  %v7319_v6 = vld [vmem:[%s10471_s26 + $0x92c] ss:$16 sps:$4 sm:$0xff]   ;;  %v7314_v7 = vld [vmem:[%s10471_s26 + $0x920] ss:$16 sps:$4 sm:$0xff]  }
  0xf6   :  { %3395 = vmatpush1.bf16.msra.mxu0 %v7230_v8  ;;  %3723 = vmatpush1.bf16.msra.mxu1 %v7233_v9  ;;  %v7317_v8 = vld [vmem:[%s10471_s26 + $0x928] ss:$16 sps:$4 sm:$0xff]   ;;  %v7322_v9 = vld [vmem:[%s10471_s26 + $0x944] ss:$16 sps:$4 sm:$0xff]  }
  0xf7   :  { %3396 = vmatprep.subr.bf16.mxu0 %v7238_v10  ;;  %3724 = vmatprep.subr.bf16.mxu1 %v7241_v11  ;;  %v7325_v10 = vld [vmem:[%s10471_s26 + $0x94c] ss:$16 sps:$4 sm:$0xff]   ;;  %v7320_v11 = vld [vmem:[%s10471_s26 + $0x940] ss:$16 sps:$4 sm:$0xff]  }
  0xfa   :  { %3397 = vmatpush1.bf16.msra.mxu0 %v7236_v12  ;;  %3725 = vmatpush1.bf16.msra.mxu1 %v7239_v52  ;;  %v7323_v12 = vld [vmem:[%s10471_s26 + $0x948] ss:$16 sps:$4 sm:$0xff]   ;;  %v7328_v52 = vld [vmem:[%s10471_s26 + $0x964] ss:$16 sps:$4 sm:$0xff]  }
  0xfb   :  { %3398 = vmatprep.subr.bf16.mxu0 %v7244_v15  ;;  %3726 = vmatprep.subr.bf16.mxu1 %v7247_v16  ;;  %v7331_v15 = vld [vmem:[%s10471_s26 + $0x96c] ss:$16 sps:$4 sm:$0xff]   ;;  %v7326_v16 = vld [vmem:[%s10471_s26 + $0x960] ss:$16 sps:$4 sm:$0xff]  }
  0xfe   :  { %3399 = vmatpush1.bf16.msra.mxu0 %v7242_v17  ;;  %3727 = vmatpush1.bf16.msra.mxu1 %v7245_v18  ;;  %v7329_v17 = vld [vmem:[%s10471_s26 + $0x968] ss:$16 sps:$4 sm:$0xff]   ;;  %v7334_v18 = vld [vmem:[%s10471_s26 + $0x984] ss:$16 sps:$4 sm:$0xff]  }
  0xff   :  { %3400 = vmatprep.subr.bf16.mxu0 %v7250_v19  ;;  %3728 = vmatprep.subr.bf16.mxu1 %v7253_v20  ;;  %v7337_v19 = vld [vmem:[%s10471_s26 + $0x98c] ss:$16 sps:$4 sm:$0xff]   ;;  %v7332_v20 = vld [vmem:[%s10471_s26 + $0x980] ss:$16 sps:$4 sm:$0xff]  }
 0x102   :  { %3401 = vmatpush1.bf16.msra.mxu0 %v7248_v22  ;;  %3729 = vmatpush1.bf16.msra.mxu1 %v7251_v23  ;;  %v7335_v22 = vld [vmem:[%s10471_s26 + $0x988] ss:$16 sps:$4 sm:$0xff]   ;;  %v7340_v23 = vld [vmem:[%s10471_s26 + $0x9a4] ss:$16 sps:$4 sm:$0xff]  }
 0x103   :  { %3402 = vmatprep.subr.bf16.mxu0 %v7256_v24  ;;  %3730 = vmatprep.subr.bf16.mxu1 %v7259_v13  ;;  %v7343_v24 = vld [vmem:[%s10471_s26 + $0x9ac] ss:$16 sps:$4 sm:$0xff]   ;;  %v7338_v13 = vld [vmem:[%s10471_s26 + $0x9a0] ss:$16 sps:$4 sm:$0xff]  }
 0x106   :  { %3403 = vmatpush1.bf16.msra.mxu0 %v7254_v28  ;;  %3731 = vmatpush1.bf16.msra.mxu1 %v7257_v29  ;;  %v7341_v28 = vld [vmem:[%s10471_s26 + $0x9a8] ss:$16 sps:$4 sm:$0xff]   ;;  %v7346_v29 = vld [vmem:[%s10471_s26 + $0x9c4] ss:$16 sps:$4 sm:$0xff]  }
 0x107   :  { %3413 = vmatprep.subr.bf16.mxu0 %v7262_v14  ;;  %3741 = vmatprep.subr.bf16.mxu1 %v7265_v30  ;;  %v7349_v14 = vld [vmem:[%s10471_s26 + $0x9cc] ss:$16 sps:$4 sm:$0xff]   ;;  %v7344_v30 = vld [vmem:[%s10471_s26 + $0x9c0] ss:$16 sps:$4 sm:$0xff]  }
 0x109   :  { %3405 = vmatmul.mubr.bf16.vlgmr.msra.gmra.mrb[0].mxu0 %v621_v25  ;;  %3733 = vmatmul.mubr.bf16.vlgmr.msra.gmra.mrb[0].mxu1 %v621_v25  ;;  %v7352_v25 = vld [vmem:[%s10471_s26 + $0x9e4] ss:$16 sps:$4 sm:$0xff]  }
 0x10a   :  { %3414 = vmatpush1.bf16.msra.mxu0 %v7260_v32  ;;  %3742 = vmatpush1.bf16.msra.mxu1 %v7263_v33  ;;  %v7355_v32 = vld [vmem:[%s10471_s26 + $0x9ec] ss:$16 sps:$4 sm:$0xff]   ;;  %v7350_v33 = vld [vmem:[%s10471_s26 + $0x9e0] ss:$16 sps:$4 sm:$0xff]  }
 0x10b   :  { %3415 = vmatprep.subr.bf16.mxu0 %v7268_v34  ;;  %3743 = vmatprep.subr.bf16.mxu1 %v7271_v26  ;;  %v7353_v34 = vld [vmem:[%s10471_s26 + $0x9e8] ss:$16 sps:$4 sm:$0xff]   ;;  %v7358_v26 = vld [vmem:[%s10471_s26 + $0xa04] ss:$16 sps:$4 sm:$0xff]  }
 0x10c   :  { %3445 = vmatprep.mubr.bf16.mxu0 %v8872_v35  ;;  %3773 = vmatprep.mubr.bf16.mxu1 %v8872_v35 }
 0x10e   :  { %3416 = vmatpush1.bf16.msra.mxu0 %v7266_v36  ;;  %3744 = vmatpush1.bf16.msra.mxu1 %v7269_v37  ;;  %v7361_v36 = vld [vmem:[%s10471_s26 + $0xa0c] ss:$16 sps:$4 sm:$0xff]   ;;  %v9058_v37 = vrot.slane %v8841_v27, %v8167_v49 }
 0x10f   :  { %3417 = vmatprep.subr.bf16.mxu0 %v7274_v38  ;;  %3745 = vmatprep.subr.bf16.mxu1 %v7277_v39  ;;  %v7356_v38 = vld [vmem:[%s10471_s26 + $0xa00] ss:$16 sps:$4 sm:$0xff]   ;;  %v7359_v39 = vld [vmem:[%s10471_s26 + $0xa08] ss:$16 sps:$4 sm:$0xff]   ;;  %v7367_v27 = vld [vmem:[%s10471_s26 + $0xa2c] ss:$16 sps:$4 sm:$0xff]  }
 0x112   :  { %3418 = vmatpush1.bf16.msra.mxu0 %v7272_v40  ;;  %3746 = vmatpush1.bf16.msra.mxu1 %v7275_v41  ;;  %v7364_v40 = vld [vmem:[%s10471_s26 + $0xa24] ss:$16 sps:$4 sm:$0xff]   ;;  %v671_v41 = vcombine.high %v8872_v35, %v8872_v35 }
 0x113   :  { %3419 = vmatprep.subr.bf16.mxu0 %v7280_v42  ;;  %3747 = vmatprep.subr.bf16.mxu1 %v7283_v44  ;;  %v7362_v42 = vld [vmem:[%s10471_s26 + $0xa20] ss:$16 sps:$4 sm:$0xff]   ;;  %v7365_v44 = vld [vmem:[%s10471_s26 + $0xa28] ss:$16 sps:$4 sm:$0xff]   ;;  %v7370_v35 = vld [vmem:[%s10471_s26 + $0xa44] ss:$16 sps:$4 sm:$0xff]  }
 0x116   :  { %3420 = vmatpush1.bf16.msra.mxu0 %v7278_v45  ;;  %3748 = vmatpush1.bf16.msra.mxu1 %v7281_v46  ;;  %v7373_v45 = vld [vmem:[%s10471_s26 + $0xa4c] ss:$16 sps:$4 sm:$0xff]   ;;  %v7368_v46 = vld [vmem:[%s10471_s26 + $0xa40] ss:$16 sps:$4 sm:$0xff]  }
 0x117   :  { %3421 = vmatprep.subr.bf16.mxu0 %v7286_v47  ;;  %3749 = vmatprep.subr.bf16.mxu1 %v7289_v48  ;;  %v7371_v47 = vld [vmem:[%s10471_s26 + $0xa48] ss:$16 sps:$4 sm:$0xff]   ;;  %v7376_v48 = vld [vmem:[%s10471_s26 + $0xa64] ss:$16 sps:$4 sm:$0xff]  }
 0x11a   :  { %3422 = vmatpush1.bf16.msra.mxu0 %v7284_v50  ;;  %3750 = vmatpush1.bf16.msra.mxu1 %v7287_v51  ;;  %v7379_v50 = vld [vmem:[%s10471_s26 + $0xa6c] ss:$16 sps:$4 sm:$0xff]   ;;  %v7374_v51 = vld [vmem:[%s10471_s26 + $0xa60] ss:$16 sps:$4 sm:$0xff]  }
 0x11b   :  { %3423 = vmatprep.subr.bf16.mxu0 %v7292_v53  ;;  %3751 = vmatprep.subr.bf16.mxu1 %v7295_v54  ;;  %v7377_v53 = vld [vmem:[%s10471_s26 + $0xa68] ss:$16 sps:$4 sm:$0xff]   ;;  %v7382_v54 = vld [vmem:[%s10471_s26 + $0xa84] ss:$16 sps:$4 sm:$0xff]  }
 0x11e   :  { %3424 = vmatpush1.bf16.msra.mxu0 %v7290_v55  ;;  %3752 = vmatpush1.bf16.msra.mxu1 %v7293_v56  ;;  %v7385_v55 = vld [vmem:[%s10471_s26 + $0xa8c] ss:$16 sps:$4 sm:$0xff]   ;;  %v7380_v56 = vld [vmem:[%s10471_s26 + $0xa80] ss:$16 sps:$4 sm:$0xff]  }
 0x11f   :  { %3425 = vmatprep.subr.bf16.mxu0 %v7298_v57  ;;  %3753 = vmatprep.subr.bf16.mxu1 %v7301_v58  ;;  %v7383_v57 = vld [vmem:[%s10471_s26 + $0xa88] ss:$16 sps:$4 sm:$0xff]   ;;  %v7388_v58 = vld [vmem:[%s10471_s26 + $0xaa4] ss:$16 sps:$4 sm:$0xff]  }
 0x122   :  { %3426 = vmatpush1.bf16.msra.mxu0 %v7296_v59  ;;  %3754 = vmatpush1.bf16.msra.mxu1 %v7299_v60  ;;  %v7391_v59 = vld [vmem:[%s10471_s26 + $0xaac] ss:$16 sps:$4 sm:$0xff]   ;;  %v7386_v60 = vld [vmem:[%s10471_s26 + $0xaa0] ss:$16 sps:$4 sm:$0xff]  }
 0x123   :  { %3427 = vmatprep.subr.bf16.mxu0 %v7304_v61  ;;  %3755 = vmatprep.subr.bf16.mxu1 %v7307_v62  ;;  %v7389_v61 = vld [vmem:[%s10471_s26 + $0xaa8] ss:$16 sps:$4 sm:$0xff]   ;;  %v7394_v62 = vld [vmem:[%s10471_s26 + $0xac4] ss:$16 sps:$4 sm:$0xff]  }
 0x126   :  { %3428 = vmatpush1.bf16.msra.mxu0 %v7302_v63  ;;  %3756 = vmatpush1.bf16.msra.mxu1 %v7305_v0  ;;  %v7397_v63 = vld [vmem:[%s10471_s26 + $0xacc] ss:$16 sps:$4 sm:$0xff]   ;;  %v7392_v0 = vld [vmem:[%s10471_s26 + $0xac0] ss:$16 sps:$4 sm:$0xff]  }
 0x127   :  { %3429 = vmatprep.subr.bf16.mxu0 %v7310_v1  ;;  %3757 = vmatprep.subr.bf16.mxu1 %v7313_v2  ;;  %v7395_v1 = vld [vmem:[%s10471_s26 + $0xac8] ss:$16 sps:$4 sm:$0xff]   ;;  %v7400_v2 = vld [vmem:[%s10471_s26 + $0xae4] ss:$16 sps:$4 sm:$0xff]  }
 0x12a   :  { %3430 = vmatpush1.bf16.msra.mxu0 %v7308_v3  ;;  %3758 = vmatpush1.bf16.msra.mxu1 %v7311_v4  ;;  %v7403_v3 = vld [vmem:[%s10471_s26 + $0xaec] ss:$16 sps:$4 sm:$0xff]   ;;  %v7398_v4 = vld [vmem:[%s10471_s26 + $0xae0] ss:$16 sps:$4 sm:$0xff]  }
 0x12b   :  { %3431 = vmatprep.subr.bf16.mxu0 %v7316_v5  ;;  %3759 = vmatprep.subr.bf16.mxu1 %v7319_v6  ;;  %v7401_v5 = vld [vmem:[%s10471_s26 + $0xae8] ss:$16 sps:$4 sm:$0xff]   ;;  %v7406_v6 = vld [vmem:[%s10471_s26 + $0xb04] ss:$16 sps:$4 sm:$0xff]  }
 0x12e   :  { %3432 = vmatpush1.bf16.msra.mxu0 %v7314_v7  ;;  %3760 = vmatpush1.bf16.msra.mxu1 %v7317_v8  ;;  %v7409_v7 = vld [vmem:[%s10471_s26 + $0xb0c] ss:$16 sps:$4 sm:$0xff]   ;;  %v7404_v8 = vld [vmem:[%s10471_s26 + $0xb00] ss:$16 sps:$4 sm:$0xff]  }
 0x12f   :  { %3433 = vmatprep.subr.bf16.mxu0 %v7322_v9  ;;  %3761 = vmatprep.subr.bf16.mxu1 %v7325_v10  ;;  %v7407_v9 = vld [vmem:[%s10471_s26 + $0xb08] ss:$16 sps:$4 sm:$0xff]   ;;  %v7412_v10 = vld [vmem:[%s10471_s26 + $0xb24] ss:$16 sps:$4 sm:$0xff]  }
 0x132   :  { %3434 = vmatpush1.bf16.msra.mxu0 %v7320_v11  ;;  %3762 = vmatpush1.bf16.msra.mxu1 %v7323_v12  ;;  %v7415_v11 = vld [vmem:[%s10471_s26 + $0xb2c] ss:$16 sps:$4 sm:$0xff]   ;;  %v7410_v12 = vld [vmem:[%s10471_s26 + $0xb20] ss:$16 sps:$4 sm:$0xff]  }
 0x133   :  { %3435 = vmatprep.subr.bf16.mxu0 %v7328_v52  ;;  %3763 = vmatprep.subr.bf16.mxu1 %v7331_v15  ;;  %v7413_v52 = vld [vmem:[%s10471_s26 + $0xb28] ss:$16 sps:$4 sm:$0xff]   ;;  %v7418_v15 = vld [vmem:[%s10471_s26 + $0xb44] ss:$16 sps:$4 sm:$0xff]  }
 0x136   :  { %3436 = vmatpush1.bf16.msra.mxu0 %v7326_v16  ;;  %3764 = vmatpush1.bf16.msra.mxu1 %v7329_v17  ;;  %v7421_v16 = vld [vmem:[%s10471_s26 + $0xb4c] ss:$16 sps:$4 sm:$0xff]   ;;  %v7416_v17 = vld [vmem:[%s10471_s26 + $0xb40] ss:$16 sps:$4 sm:$0xff]  }
 0x137   :  { %3437 = vmatprep.subr.bf16.mxu0 %v7334_v18  ;;  %3765 = vmatprep.subr.bf16.mxu1 %v7337_v19  ;;  %v7419_v18 = vld [vmem:[%s10471_s26 + $0xb48] ss:$16 sps:$4 sm:$0xff]   ;;  %v7424_v19 = vld [vmem:[%s10471_s26 + $0xb64] ss:$16 sps:$4 sm:$0xff]  }
 0x13a   :  { %3438 = vmatpush1.bf16.msra.mxu0 %v7332_v20  ;;  %3766 = vmatpush1.bf16.msra.mxu1 %v7335_v22  ;;  %v7427_v20 = vld [vmem:[%s10471_s26 + $0xb6c] ss:$16 sps:$4 sm:$0xff]   ;;  %v7422_v22 = vld [vmem:[%s10471_s26 + $0xb60] ss:$16 sps:$4 sm:$0xff]  }
 0x13b   :  { %3439 = vmatprep.subr.bf16.mxu0 %v7340_v23  ;;  %3767 = vmatprep.subr.bf16.mxu1 %v7343_v24  ;;  %v7425_v23 = vld [vmem:[%s10471_s26 + $0xb68] ss:$16 sps:$4 sm:$0xff]   ;;  %v7430_v24 = vld [vmem:[%s10471_s26 + $0xb84] ss:$16 sps:$4 sm:$0xff]  }
 0x13e   :  { %3440 = vmatpush1.bf16.msra.mxu0 %v7338_v13  ;;  %3768 = vmatpush1.bf16.msra.mxu1 %v7341_v28  ;;  %v7433_v13 = vld [vmem:[%s10471_s26 + $0xb8c] ss:$16 sps:$4 sm:$0xff]   ;;  %v7428_v28 = vld [vmem:[%s10471_s26 + $0xb80] ss:$16 sps:$4 sm:$0xff]  }
 0x13f   :  { %3441 = vmatprep.subr.bf16.mxu0 %v7346_v29  ;;  %3769 = vmatprep.subr.bf16.mxu1 %v7349_v14  ;;  %v7431_v29 = vld [vmem:[%s10471_s26 + $0xb88] ss:$16 sps:$4 sm:$0xff]   ;;  %v7436_v14 = vld [vmem:[%s10471_s26 + $0xba4] ss:$16 sps:$4 sm:$0xff]  }
 0x142   :  { %3442 = vmatpush1.bf16.msra.mxu0 %v7344_v30  ;;  %3770 = vmatpush1.bf16.msra.mxu1 %v7347_v31  ;;  %v7439_v30 = vld [vmem:[%s10471_s26 + $0xbac] ss:$16 sps:$4 sm:$0xff]   ;;  %v7434_v31 = vld [vmem:[%s10471_s26 + $0xba0] ss:$16 sps:$4 sm:$0xff]  }
 0x143   :  { %3443 = vmatprep.subr.bf16.mxu0 %v7352_v25  ;;  %3771 = vmatprep.subr.bf16.mxu1 %v7355_v32  ;;  %v7437_v25 = vld [vmem:[%s10471_s26 + $0xba8] ss:$16 sps:$4 sm:$0xff]   ;;  %v7442_v32 = vld [vmem:[%s10471_s26 + $0xbc4] ss:$16 sps:$4 sm:$0xff]  }
 0x146   :  { %3444 = vmatpush1.bf16.msra.mxu0 %v7350_v33  ;;  %3772 = vmatpush1.bf16.msra.mxu1 %v7353_v34  ;;  %v7445_v33 = vld [vmem:[%s10471_s26 + $0xbcc] ss:$16 sps:$4 sm:$0xff]   ;;  %v624_v34 = vcombine.high %v8825_v21, %v8825_v21 }
 0x147   :  { %3454 = vmatprep.subr.bf16.mxu0 %v7358_v26  ;;  %3782 = vmatprep.subr.bf16.mxu1 %v7361_v36  ;;  %v7440_v26 = vld [vmem:[%s10471_s26 + $0xbc0] ss:$16 sps:$4 sm:$0xff]   ;;  %v7443_v36 = vld [vmem:[%s10471_s26 + $0xbc8] ss:$16 sps:$4 sm:$0xff]   ;;  %v7451_v21 = vld [vmem:[%s10471_s26 + $0xbec] ss:$16 sps:$4 sm:$0xff]  }
 0x149   :  { %3446 = vmatmul.mubr.bf16.vlgmr.msra.gmra.mrb[0].mxu0 %v9058_v37  ;;  %3774 = vmatmul.mubr.bf16.vlgmr.msra.gmra.mrb[0].mxu1 %v9058_v37 }
 0x14a   :  { %3455 = vmatpush1.bf16.msra.mxu0 %v7356_v38  ;;  %3783 = vmatpush1.bf16.msra.mxu1 %v7359_v39  ;;  %v7448_v38 = vld [vmem:[%s10471_s26 + $0xbe4] ss:$16 sps:$4 sm:$0xff]   ;;  %v9247_v39 = vrot.slane %v624_v34, %v8167_v49  ;;  %v7527_v34 = vld [vmem:[%s10471_s26 + $0xd88] ss:$16 sps:$4 sm:$0xff]  }
 0x14b   :  { %3456 = vmatprep.subr.bf16.mxu0 %v7364_v40  ;;  %3784 = vmatprep.subr.bf16.mxu1 %v7367_v27  ;;  %v7446_v40 = vld [vmem:[%s10471_s26 + $0xbe0] ss:$16 sps:$4 sm:$0xff]   ;;  %v7449_v27 = vld [vmem:[%s10471_s26 + $0xbe8] ss:$16 sps:$4 sm:$0xff]  }
 0x14c   :  { %3486 = vmatprep.mubr.bf16.mxu0 %v671_v41  ;;  %3814 = vmatprep.mubr.bf16.mxu1 %v671_v41  ;;  %v7454_v41 = vld [vmem:[%s10471_s26 + $0xc04] ss:$16 sps:$4 sm:$0xff]  }
 0x14e   :  { %3457 = vmatpush1.bf16.msra.mxu0 %v7362_v42  ;;  %3785 = vmatpush1.bf16.msra.mxu1 %v7365_v44  ;;  %v7457_v42 = vld [vmem:[%s10471_s26 + $0xc0c] ss:$16 sps:$4 sm:$0xff]   ;;  %v640_v44 = vcombine.high %v9247_v39, %v9247_v39 }
 0x14f   :  { %3458 = vmatprep.subr.bf16.mxu0 %v7370_v35  ;;  %3786 = vmatprep.subr.bf16.mxu1 %v7373_v45  ;;  %v669_v35 = vcombine.high %v9058_v37, %v9058_v37  ;;  %v7452_v45 = vld [vmem:[%s10471_s26 + $0xc00] ss:$16 sps:$4 sm:$0xff]   ;;  %v7463_v37 = vld [vmem:[%s10471_s26 + $0xc2c] ss:$16 sps:$4 sm:$0xff]  }
 0x152   :  { %3459 = vmatpush1.bf16.msra.mxu0 %v7368_v46  ;;  %3787 = vmatpush1.bf16.msra.mxu1 %v7371_v47  ;;  %v7455_v46 = vld [vmem:[%s10471_s26 + $0xc08] ss:$16 sps:$4 sm:$0xff]   ;;  %v7460_v47 = vld [vmem:[%s10471_s26 + $0xc24] ss:$16 sps:$4 sm:$0xff]  }
 0x153   :  { %3460 = vmatprep.subr.bf16.mxu0 %v7376_v48  ;;  %3788 = vmatprep.subr.bf16.mxu1 %v7379_v50  ;;  %v9278_v48 = vrot.slane %v640_v44, %v8167_v49  ;;  %v7458_v50 = vld [vmem:[%s10471_s26 + $0xc20] ss:$16 sps:$4 sm:$0xff]   ;;  %v7544_v44 = vld [vmem:[%s10471_s26 + $0xde4] ss:$16 sps:$4 sm:$0xff]  }
 0x156   :  { %3461 = vmatpush1.bf16.msra.mxu0 %v7374_v51  ;;  %3789 = vmatpush1.bf16.msra.mxu1 %v7377_v53  ;;  %v7461_v51 = vld [vmem:[%s10471_s26 + $0xc28] ss:$16 sps:$4 sm:$0xff]   ;;  %v7466_v53 = vld [vmem:[%s10471_s26 + $0xc44] ss:$16 sps:$4 sm:$0xff]  }
 0x157   :  { %3462 = vmatprep.subr.bf16.mxu0 %v7382_v54  ;;  %3790 = vmatprep.subr.bf16.mxu1 %v7385_v55  ;;  %v7469_v54 = vld [vmem:[%s10471_s26 + $0xc4c] ss:$16 sps:$4 sm:$0xff]   ;;  %v7464_v55 = vld [vmem:[%s10471_s26 + $0xc40] ss:$16 sps:$4 sm:$0xff]  }
 0x15a   :  { %3463 = vmatpush1.bf16.msra.mxu0 %v7380_v56  ;;  %3791 = vmatpush1.bf16.msra.mxu1 %v7383_v57  ;;  %v7467_v56 = vld [vmem:[%s10471_s26 + $0xc48] ss:$16 sps:$4 sm:$0xff]   ;;  %v7472_v57 = vld [vmem:[%s10471_s26 + $0xc64] ss:$16 sps:$4 sm:$0xff]  }
 0x15b   :  { %3464 = vmatprep.subr.bf16.mxu0 %v7388_v58  ;;  %3792 = vmatprep.subr.bf16.mxu1 %v7391_v59  ;;  %v7475_v58 = vld [vmem:[%s10471_s26 + $0xc6c] ss:$16 sps:$4 sm:$0xff]   ;;  %v7470_v59 = vld [vmem:[%s10471_s26 + $0xc60] ss:$16 sps:$4 sm:$0xff]  }
 0x15e   :  { %3465 = vmatpush1.bf16.msra.mxu0 %v7386_v60  ;;  %3793 = vmatpush1.bf16.msra.mxu1 %v7389_v61  ;;  %v7473_v60 = vld [vmem:[%s10471_s26 + $0xc68] ss:$16 sps:$4 sm:$0xff]   ;;  %v7478_v61 = vld [vmem:[%s10471_s26 + $0xc84] ss:$16 sps:$4 sm:$0xff]  }
 0x15f   :  { %3466 = vmatprep.subr.bf16.mxu0 %v7394_v62  ;;  %3794 = vmatprep.subr.bf16.mxu1 %v7397_v63  ;;  %v7481_v62 = vld [vmem:[%s10471_s26 + $0xc8c] ss:$16 sps:$4 sm:$0xff]   ;;  %v7476_v63 = vld [vmem:[%s10471_s26 + $0xc80] ss:$16 sps:$4 sm:$0xff]  }
 0x162   :  { %3467 = vmatpush1.bf16.msra.mxu0 %v7392_v0  ;;  %3795 = vmatpush1.bf16.msra.mxu1 %v7395_v1  ;;  %v7479_v0 = vld [vmem:[%s10471_s26 + $0xc88] ss:$16 sps:$4 sm:$0xff]   ;;  %v7484_v1 = vld [vmem:[%s10471_s26 + $0xca4] ss:$16 sps:$4 sm:$0xff]  }
 0x163   :  { %3468 = vmatprep.subr.bf16.mxu0 %v7400_v2  ;;  %3796 = vmatprep.subr.bf16.mxu1 %v7403_v3  ;;  %v7487_v2 = vld [vmem:[%s10471_s26 + $0xcac] ss:$16 sps:$4 sm:$0xff]   ;;  %v7482_v3 = vld [vmem:[%s10471_s26 + $0xca0] ss:$16 sps:$4 sm:$0xff]  }
 0x166   :  { %3469 = vmatpush1.bf16.msra.mxu0 %v7398_v4  ;;  %3797 = vmatpush1.bf16.msra.mxu1 %v7401_v5  ;;  %v7485_v4 = vld [vmem:[%s10471_s26 + $0xca8] ss:$16 sps:$4 sm:$0xff]   ;;  %v7490_v5 = vld [vmem:[%s10471_s26 + $0xcc4] ss:$16 sps:$4 sm:$0xff]  }
 0x167   :  { %3470 = vmatprep.subr.bf16.mxu0 %v7406_v6  ;;  %3798 = vmatprep.subr.bf16.mxu1 %v7409_v7  ;;  %v7493_v6 = vld [vmem:[%s10471_s26 + $0xccc] ss:$16 sps:$4 sm:$0xff]   ;;  %v7488_v7 = vld [vmem:[%s10471_s26 + $0xcc0] ss:$16 sps:$4 sm:$0xff]  }
 0x16a   :  { %3471 = vmatpush1.bf16.msra.mxu0 %v7404_v8  ;;  %3799 = vmatpush1.bf16.msra.mxu1 %v7407_v9  ;;  %v7491_v8 = vld [vmem:[%s10471_s26 + $0xcc8] ss:$16 sps:$4 sm:$0xff]   ;;  %v7496_v9 = vld [vmem:[%s10471_s26 + $0xce4] ss:$16 sps:$4 sm:$0xff]  }
 0x16b   :  { %3472 = vmatprep.subr.bf16.mxu0 %v7412_v10  ;;  %3800 = vmatprep.subr.bf16.mxu1 %v7415_v11  ;;  %v7499_v10 = vld [vmem:[%s10471_s26 + $0xcec] ss:$16 sps:$4 sm:$0xff]   ;;  %v7494_v11 = vld [vmem:[%s10471_s26 + $0xce0] ss:$16 sps:$4 sm:$0xff]  }
 0x16e   :  { %3473 = vmatpush1.bf16.msra.mxu0 %v7410_v12  ;;  %3801 = vmatpush1.bf16.msra.mxu1 %v7413_v52  ;;  %v7497_v12 = vld [vmem:[%s10471_s26 + $0xce8] ss:$16 sps:$4 sm:$0xff]   ;;  %v7502_v52 = vld [vmem:[%s10471_s26 + $0xd04] ss:$16 sps:$4 sm:$0xff]  }
 0x16f   :  { %3474 = vmatprep.subr.bf16.mxu0 %v7418_v15  ;;  %3802 = vmatprep.subr.bf16.mxu1 %v7421_v16  ;;  %v7505_v15 = vld [vmem:[%s10471_s26 + $0xd0c] ss:$16 sps:$4 sm:$0xff]   ;;  %v7500_v16 = vld [vmem:[%s10471_s26 + $0xd00] ss:$16 sps:$4 sm:$0xff]  }
 0x172   :  { %3475 = vmatpush1.bf16.msra.mxu0 %v7416_v17  ;;  %3803 = vmatpush1.bf16.msra.mxu1 %v7419_v18  ;;  %v7503_v17 = vld [vmem:[%s10471_s26 + $0xd08] ss:$16 sps:$4 sm:$0xff]   ;;  %v7508_v18 = vld [vmem:[%s10471_s26 + $0xd24] ss:$16 sps:$4 sm:$0xff]  }
 0x173   :  { %3476 = vmatprep.subr.bf16.mxu0 %v7424_v19  ;;  %3804 = vmatprep.subr.bf16.mxu1 %v7427_v20  ;;  %v7511_v19 = vld [vmem:[%s10471_s26 + $0xd2c] ss:$16 sps:$4 sm:$0xff]   ;;  %v7506_v20 = vld [vmem:[%s10471_s26 + $0xd20] ss:$16 sps:$4 sm:$0xff]  }
 0x176   :  { %3477 = vmatpush1.bf16.msra.mxu0 %v7422_v22  ;;  %3805 = vmatpush1.bf16.msra.mxu1 %v7425_v23  ;;  %v7509_v22 = vld [vmem:[%s10471_s26 + $0xd28] ss:$16 sps:$4 sm:$0xff]   ;;  %v7514_v23 = vld [vmem:[%s10471_s26 + $0xd44] ss:$16 sps:$4 sm:$0xff]  }
 0x177   :  { %3478 = vmatprep.subr.bf16.mxu0 %v7430_v24  ;;  %3806 = vmatprep.subr.bf16.mxu1 %v7433_v13  ;;  %v7517_v24 = vld [vmem:[%s10471_s26 + $0xd4c] ss:$16 sps:$4 sm:$0xff]   ;;  %v7512_v13 = vld [vmem:[%s10471_s26 + $0xd40] ss:$16 sps:$4 sm:$0xff]  }
 0x17a   :  { %3479 = vmatpush1.bf16.msra.mxu0 %v7428_v28  ;;  %3807 = vmatpush1.bf16.msra.mxu1 %v7431_v29  ;;  %v7515_v28 = vld [vmem:[%s10471_s26 + $0xd48] ss:$16 sps:$4 sm:$0xff]   ;;  %v7520_v29 = vld [vmem:[%s10471_s26 + $0xd64] ss:$16 sps:$4 sm:$0xff]  }
 0x17b   :  { %3480 = vmatprep.subr.bf16.mxu0 %v7436_v14  ;;  %3808 = vmatprep.subr.bf16.mxu1 %v7439_v30  ;;  %v7523_v14 = vld [vmem:[%s10471_s26 + $0xd6c] ss:$16 sps:$4 sm:$0xff]   ;;  %v7518_v30 = vld [vmem:[%s10471_s26 + $0xd60] ss:$16 sps:$4 sm:$0xff]  }
 0x17e   :  { %3481 = vmatpush1.bf16.msra.mxu0 %v7434_v31  ;;  %3809 = vmatpush1.bf16.msra.mxu1 %v7437_v25  ;;  %v7521_v31 = vld [vmem:[%s10471_s26 + $0xd68] ss:$16 sps:$4 sm:$0xff]   ;;  %v7526_v25 = vld [vmem:[%s10471_s26 + $0xd84] ss:$16 sps:$4 sm:$0xff]  }
 0x17f   :  { %3482 = vmatprep.subr.bf16.mxu0 %v7442_v32  ;;  %3810 = vmatprep.subr.bf16.mxu1 %v7445_v33  ;;  %v7529_v32 = vld [vmem:[%s10471_s26 + $0xd8c] ss:$16 sps:$4 sm:$0xff]   ;;  %v7524_v33 = vld [vmem:[%s10471_s26 + $0xd80] ss:$16 sps:$4 sm:$0xff]  }
 0x182   :  { %3483 = vmatpush1.bf16.msra.mxu0 %v7440_v26  ;;  %3811 = vmatpush1.bf16.msra.mxu1 %v7443_v36  ;;  %v7532_v26 = vld [vmem:[%s10471_s26 + $0xda4] ss:$16 sps:$4 sm:$0xff]   ;;  %v7535_v36 = vld [vmem:[%s10471_s26 + $0xdac] ss:$16 sps:$4 sm:$0xff]  }
 0x183   :  { %3484 = vmatprep.subr.bf16.mxu0 %v7448_v38  ;;  %3812 = vmatprep.subr.bf16.mxu1 %v7451_v21  ;;  %v7530_v38 = vld [vmem:[%s10471_s26 + $0xda0] ss:$16 sps:$4 sm:$0xff]   ;;  %v7533_v21 = vld [vmem:[%s10471_s26 + $0xda8] ss:$16 sps:$4 sm:$0xff]  }
 0x186   :  { %3485 = vmatpush1.bf16.msra.mxu0 %v7446_v40  ;;  %3813 = vmatpush1.bf16.msra.mxu1 %v7449_v27  ;;  %v7538_v40 = vld [vmem:[%s10471_s26 + $0xdc4] ss:$16 sps:$4 sm:$0xff]   ;;  %v7541_v27 = vld [vmem:[%s10471_s26 + $0xdcc] ss:$16 sps:$4 sm:$0xff]  }
 0x187   :  { %3495 = vmatprep.subr.bf16.mxu0 %v7454_v41  ;;  %3823 = vmatprep.subr.bf16.mxu1 %v7457_v42  ;;  %v7536_v41 = vld [vmem:[%s10471_s26 + $0xdc0] ss:$16 sps:$4 sm:$0xff]   ;;  %v7539_v42 = vld [vmem:[%s10471_s26 + $0xdc8] ss:$16 sps:$4 sm:$0xff]  }
 0x189   :  { %3487 = vmatmul.mubr.bf16.vlgmr.msra.gmra.mrb[0].mxu0 %v669_v35  ;;  %3815 = vmatmul.mubr.bf16.vlgmr.msra.gmra.mrb[0].mxu1 %v669_v35  ;;  %v7547_v35 = vld [vmem:[%s10471_s26 + $0xdec] ss:$16 sps:$4 sm:$0xff]  }
 0x18a   :  { %3496 = vmatpush1.bf16.msra.mxu0 %v7452_v45  ;;  %3824 = vmatpush1.bf16.msra.mxu1 %v7455_v46  ;;  %v7542_v45 = vld [vmem:[%s10471_s26 + $0xde0] ss:$16 sps:$4 sm:$0xff]   ;;  %v7545_v46 = vld [vmem:[%s10471_s26 + $0xde8] ss:$16 sps:$4 sm:$0xff]  }
 0x18b   :  { %3497 = vmatprep.subr.bf16.mxu0 %v7460_v47  ;;  %3825 = vmatprep.subr.bf16.mxu1 %v7463_v37  ;;  %v7551_v47 = vld [vmem:[%s10471_s26 + $0xe04] ss:$16 sps:$4 sm:$0xff]   ;;  %v7554_v37 = vld [vmem:[%s10471_s26 + $0xe0c] ss:$16 sps:$4 sm:$0xff]  }
 0x18c   :  { %3527 = vmatprep.mubr.bf16.mxu0 %v9278_v48  ;;  %3855 = vmatprep.mubr.bf16.mxu1 %v9278_v48 }
 0x18e   :  { %3498 = vmatpush1.bf16.msra.mxu0 %v7458_v50  ;;  %3826 = vmatpush1.bf16.msra.mxu1 %v7461_v51  ;;  %v9464_v50 = vrot.slane %v9247_v39, %v8167_v49  ;;  %v7549_v51 = vld [vmem:[%s10471_s26 + $0xe00] ss:$16 sps:$4 sm:$0xff]   ;;  %v7560_v49 = vld [vmem:[%s10471_s26 + $0xe2c] ss:$16 sps:$4 sm:$0xff]   ;;  %v672_v39 = vcombine.high %v9278_v48, %v9278_v48  ;;  %v7563_v48 = vld [vmem:[%s10471_s26 + $0xe44] ss:$16 sps:$4 sm:$0xff]  }
 0x18f   :  { %3499 = vmatprep.subr.bf16.mxu0 %v7466_v53  ;;  %3827 = vmatprep.subr.bf16.mxu1 %v7469_v54  ;;  %v7552_v53 = vld [vmem:[%s10471_s26 + $0xe08] ss:$16 sps:$4 sm:$0xff]   ;;  %v7557_v54 = vld [vmem:[%s10471_s26 + $0xe24] ss:$16 sps:$4 sm:$0xff]  }
 0x192   :  { %3500 = vmatpush1.bf16.msra.mxu0 %v7464_v55  ;;  %3828 = vmatpush1.bf16.msra.mxu1 %v7467_v56  ;;  %v7555_v55 = vld [vmem:[%s10471_s26 + $0xe20] ss:$16 sps:$4 sm:$0xff]   ;;  %v7558_v56 = vld [vmem:[%s10471_s26 + $0xe28] ss:$16 sps:$4 sm:$0xff]  }
 0x193   :  { %3501 = vmatprep.subr.bf16.mxu0 %v7472_v57  ;;  %3829 = vmatprep.subr.bf16.mxu1 %v7475_v58  ;;  %v7566_v57 = vld [vmem:[%s10471_s26 + $0xe4c] ss:$16 sps:$4 sm:$0xff]   ;;  %v7561_v58 = vld [vmem:[%s10471_s26 + $0xe40] ss:$16 sps:$4 sm:$0xff]  }
 0x196   :  { %3502 = vmatpush1.bf16.msra.mxu0 %v7470_v59  ;;  %3830 = vmatpush1.bf16.msra.mxu1 %v7473_v60  ;;  %v7564_v59 = vld [vmem:[%s10471_s26 + $0xe48] ss:$16 sps:$4 sm:$0xff]   ;;  %v7569_v60 = vld [vmem:[%s10471_s26 + $0xe64] ss:$16 sps:$4 sm:$0xff]  }
 0x197   :  { %3503 = vmatprep.subr.bf16.mxu0 %v7478_v61  ;;  %3831 = vmatprep.subr.bf16.mxu1 %v7481_v62  ;;  %v7572_v61 = vld [vmem:[%s10471_s26 + $0xe6c] ss:$16 sps:$4 sm:$0xff]   ;;  %v7567_v62 = vld [vmem:[%s10471_s26 + $0xe60] ss:$16 sps:$4 sm:$0xff]  }
 0x19a   :  { %3504 = vmatpush1.bf16.msra.mxu0 %v7476_v63  ;;  %3832 = vmatpush1.bf16.msra.mxu1 %v7479_v0  ;;  %v7570_v63 = vld [vmem:[%s10471_s26 + $0xe68] ss:$16 sps:$4 sm:$0xff]   ;;  %v7575_v0 = vld [vmem:[%s10471_s26 + $0xe84] ss:$16 sps:$4 sm:$0xff]  }
 0x19b   :  { %3505 = vmatprep.subr.bf16.mxu0 %v7484_v1  ;;  %3833 = vmatprep.subr.bf16.mxu1 %v7487_v2  ;;  %v7578_v1 = vld [vmem:[%s10471_s26 + $0xe8c] ss:$16 sps:$4 sm:$0xff]   ;;  %v7573_v2 = vld [vmem:[%s10471_s26 + $0xe80] ss:$16 sps:$4 sm:$0xff]  }
 0x19e   :  { %3506 = vmatpush1.bf16.msra.mxu0 %v7482_v3  ;;  %3834 = vmatpush1.bf16.msra.mxu1 %v7485_v4  ;;  %v7576_v3 = vld [vmem:[%s10471_s26 + $0xe88] ss:$16 sps:$4 sm:$0xff]   ;;  %v7581_v4 = vld [vmem:[%s10471_s26 + $0xea4] ss:$16 sps:$4 sm:$0xff]  }
 0x19f   :  { %3507 = vmatprep.subr.bf16.mxu0 %v7490_v5  ;;  %3835 = vmatprep.subr.bf16.mxu1 %v7493_v6  ;;  %v7584_v5 = vld [vmem:[%s10471_s26 + $0xeac] ss:$16 sps:$4 sm:$0xff]   ;;  %v7579_v6 = vld [vmem:[%s10471_s26 + $0xea0] ss:$16 sps:$4 sm:$0xff]  }
 0x1a2   :  { %3508 = vmatpush1.bf16.msra.mxu0 %v7488_v7  ;;  %3836 = vmatpush1.bf16.msra.mxu1 %v7491_v8  ;;  %v7582_v7 = vld [vmem:[%s10471_s26 + $0xea8] ss:$16 sps:$4 sm:$0xff]   ;;  %v7587_v8 = vld [vmem:[%s10471_s26 + $0xec4] ss:$16 sps:$4 sm:$0xff]  }
 0x1a3   :  { %3509 = vmatprep.subr.bf16.mxu0 %v7496_v9  ;;  %3837 = vmatprep.subr.bf16.mxu1 %v7499_v10  ;;  %v7590_v9 = vld [vmem:[%s10471_s26 + $0xecc] ss:$16 sps:$4 sm:$0xff]   ;;  %v7585_v10 = vld [vmem:[%s10471_s26 + $0xec0] ss:$16 sps:$4 sm:$0xff]  }
 0x1a6   :  { %3510 = vmatpush1.bf16.msra.mxu0 %v7494_v11  ;;  %3838 = vmatpush1.bf16.msra.mxu1 %v7497_v12  ;;  %v7588_v11 = vld [vmem:[%s10471_s26 + $0xec8] ss:$16 sps:$4 sm:$0xff]   ;;  %v7593_v12 = vld [vmem:[%s10471_s26 + $0xee4] ss:$16 sps:$4 sm:$0xff]  }
 0x1a7   :  { %3511 = vmatprep.subr.bf16.mxu0 %v7502_v52  ;;  %3839 = vmatprep.subr.bf16.mxu1 %v7505_v15  ;;  %v7596_v52 = vld [vmem:[%s10471_s26 + $0xeec] ss:$16 sps:$4 sm:$0xff]   ;;  %v7591_v15 = vld [vmem:[%s10471_s26 + $0xee0] ss:$16 sps:$4 sm:$0xff]  }
 0x1aa   :  { %3512 = vmatpush1.bf16.msra.mxu0 %v7500_v16  ;;  %3840 = vmatpush1.bf16.msra.mxu1 %v7503_v17  ;;  %v7594_v16 = vld [vmem:[%s10471_s26 + $0xee8] ss:$16 sps:$4 sm:$0xff]   ;;  %v7599_v17 = vld [vmem:[%s10471_s26 + $0xf04] ss:$16 sps:$4 sm:$0xff]  }
 0x1ab   :  { %3513 = vmatprep.subr.bf16.mxu0 %v7508_v18  ;;  %3841 = vmatprep.subr.bf16.mxu1 %v7511_v19  ;;  %v7602_v18 = vld [vmem:[%s10471_s26 + $0xf0c] ss:$16 sps:$4 sm:$0xff]   ;;  %v7597_v19 = vld [vmem:[%s10471_s26 + $0xf00] ss:$16 sps:$4 sm:$0xff]  }
 0x1ae   :  { %3514 = vmatpush1.bf16.msra.mxu0 %v7506_v20  ;;  %3842 = vmatpush1.bf16.msra.mxu1 %v7509_v22  ;;  %v7600_v20 = vld [vmem:[%s10471_s26 + $0xf08] ss:$16 sps:$4 sm:$0xff]   ;;  %v7605_v22 = vld [vmem:[%s10471_s26 + $0xf24] ss:$16 sps:$4 sm:$0xff]  }
 0x1af   :  { %3515 = vmatprep.subr.bf16.mxu0 %v7514_v23  ;;  %3843 = vmatprep.subr.bf16.mxu1 %v7517_v24  ;;  %v7608_v23 = vld [vmem:[%s10471_s26 + $0xf2c] ss:$16 sps:$4 sm:$0xff]   ;;  %v7603_v24 = vld [vmem:[%s10471_s26 + $0xf20] ss:$16 sps:$4 sm:$0xff]  }
 0x1b2   :  { %3516 = vmatpush1.bf16.msra.mxu0 %v7512_v13  ;;  %3844 = vmatpush1.bf16.msra.mxu1 %v7515_v28  ;;  %v7606_v13 = vld [vmem:[%s10471_s26 + $0xf28] ss:$16 sps:$4 sm:$0xff]   ;;  %v7611_v28 = vld [vmem:[%s10471_s26 + $0xf44] ss:$16 sps:$4 sm:$0xff]  }
 0x1b3   :  { %3517 = vmatprep.subr.bf16.mxu0 %v7520_v29  ;;  %3845 = vmatprep.subr.bf16.mxu1 %v7523_v14  ;;  %v7614_v29 = vld [vmem:[%s10471_s26 + $0xf4c] ss:$16 sps:$4 sm:$0xff]   ;;  %v7609_v14 = vld [vmem:[%s10471_s26 + $0xf40] ss:$16 sps:$4 sm:$0xff]  }
 0x1b6   :  { %3518 = vmatpush1.bf16.msra.mxu0 %v7518_v30  ;;  %3846 = vmatpush1.bf16.msra.mxu1 %v7521_v31  ;;  %v7612_v30 = vld [vmem:[%s10471_s26 + $0xf48] ss:$16 sps:$4 sm:$0xff]   ;;  %v7617_v31 = vld [vmem:[%s10471_s26 + $0xf64] ss:$16 sps:$4 sm:$0xff]  }
 0x1b7   :  { %3519 = vmatprep.subr.bf16.mxu0 %v7526_v25  ;;  %3847 = vmatprep.subr.bf16.mxu1 %v7529_v32  ;;  %v7620_v25 = vld [vmem:[%s10471_s26 + $0xf6c] ss:$16 sps:$4 sm:$0xff]   ;;  %v7615_v32 = vld [vmem:[%s10471_s26 + $0xf60] ss:$16 sps:$4 sm:$0xff]  }
 0x1ba   :  { %3520 = vmatpush1.bf16.msra.mxu0 %v7524_v33  ;;  %3848 = vmatpush1.bf16.msra.mxu1 %v7527_v34  ;;  %v7618_v33 = vld [vmem:[%s10471_s26 + $0xf68] ss:$16 sps:$4 sm:$0xff]   ;;  %v7623_v34 = vld [vmem:[%s10471_s26 + $0xf84] ss:$16 sps:$4 sm:$0xff]  }
 0x1bb   :  { %3521 = vmatprep.subr.bf16.mxu0 %v7532_v26  ;;  %3849 = vmatprep.subr.bf16.mxu1 %v7535_v36  ;;  %v7626_v26 = vld [vmem:[%s10471_s26 + $0xf8c] ss:$16 sps:$4 sm:$0xff]   ;;  %v7621_v36 = vld [vmem:[%s10471_s26 + $0xf80] ss:$16 sps:$4 sm:$0xff]  }
 0x1be   :  { %3522 = vmatpush1.bf16.msra.mxu0 %v7530_v38  ;;  %3850 = vmatpush1.bf16.msra.mxu1 %v7533_v21  ;;  %v7624_v38 = vld [vmem:[%s10471_s26 + $0xf88] ss:$16 sps:$4 sm:$0xff]   ;;  %v7629_v21 = vld [vmem:[%s10471_s26 + $0xfa4] ss:$16 sps:$4 sm:$0xff]  }
 0x1bf   :  { %3523 = vmatprep.subr.bf16.mxu0 %v7538_v40  ;;  %3851 = vmatprep.subr.bf16.mxu1 %v7541_v27  ;;  %v7632_v40 = vld [vmem:[%s10471_s26 + $0xfac] ss:$16 sps:$4 sm:$0xff]   ;;  %v7627_v27 = vld [vmem:[%s10471_s26 + $0xfa0] ss:$16 sps:$4 sm:$0xff]  }
 0x1c2   :  { %3524 = vmatpush1.bf16.msra.mxu0 %v7536_v41  ;;  %3852 = vmatpush1.bf16.msra.mxu1 %v7539_v42  ;;  %v7630_v41 = vld [vmem:[%s10471_s26 + $0xfa8] ss:$16 sps:$4 sm:$0xff]   ;;  %v7635_v42 = vld [vmem:[%s10471_s26 + $0xfc4] ss:$16 sps:$4 sm:$0xff]  }
 0x1c3   :  { %3525 = vmatprep.subr.bf16.mxu0 %v7544_v44  ;;  %3853 = vmatprep.subr.bf16.mxu1 %v7547_v35  ;;  %v7638_v44 = vld [vmem:[%s10471_s26 + $0xfcc] ss:$16 sps:$4 sm:$0xff]   ;;  %v7633_v35 = vld [vmem:[%s10471_s26 + $0xfc0] ss:$16 sps:$4 sm:$0xff]  }
 0x1c6   :  { %3526 = vmatpush1.bf16.msra.mxu0 %v7542_v45  ;;  %3854 = vmatpush1.bf16.msra.mxu1 %v7545_v46  ;;  %v7636_v45 = vld [vmem:[%s10471_s26 + $0xfc8] ss:$16 sps:$4 sm:$0xff]   ;;  %v7641_v46 = vld [vmem:[%s10471_s26 + $0xfe4] ss:$16 sps:$4 sm:$0xff]  }
 0x1c7   :  { %3536 = vmatprep.subr.bf16.mxu0 %v7551_v47  ;;  %3864 = vmatprep.subr.bf16.mxu1 %v7554_v37  ;;  %v7644_v47 = vld [vmem:[%s10471_s26 + $0xfec] ss:$16 sps:$4 sm:$0xff]   ;;  %v7639_v37 = vld [vmem:[%s10471_s26 + $0xfe0] ss:$16 sps:$4 sm:$0xff]  }
 0x1c9   :  { %3528 = vmatmul.mubr.bf16.vlgmr.msra.gmra.mrb[0].mxu0 %v9464_v50  ;;  %3856 = vmatmul.mubr.bf16.vlgmr.msra.gmra.mrb[0].mxu1 %v9464_v50 }
 0x1ca   :  { %3537 = vmatpush1.bf16.msra.mxu0 %v7549_v51  ;;  %3865 = vmatpush1.bf16.msra.mxu1 %v7552_v53  ;;  %v7642_v51 = vld [vmem:[%s10471_s26 + $0xfe8] ss:$16 sps:$4 sm:$0xff]   ;;  %v7645_v53 = vld [vmem:[%s10451_s5] sm:$0x1f]  }
 0x1cb   :  { %3538 = vmatprep.subr.bf16.mxu0 %v7557_v54  ;;  %3866 = vmatprep.subr.bf16.mxu1 %v7560_v49  ;;  %v670_v54 = vcombine.high %v9464_v50, %v9464_v50  ;;  %v7939_v49 = vmov 0.0   ;;  %v7647_v50 = vld [vmem:[%s10452_s8 + $0x8] sm:$0xff]  }
 0x1cc   :  { %3568 = vmatprep.mubr.bf16.mxu0 %v672_v39  ;;  %3896 = vmatprep.mubr.bf16.mxu1 %v672_v39  ;;  %v3983_v39 = vsel %vm3981_vm0, %v7645_v53, 0  ;;  %v7675_v53 = vld [vmem:[%s10454_s12 + $0x80] ss:$20 sps:$4 sm:$0xff]  }
 0x1ce   :  { %3539 = vmatpush1.bf16.msra.mxu0 %v7555_v55  ;;  %3867 = vmatpush1.bf16.msra.mxu1 %v7558_v56  ;;  %v7646_v55 = vld [vmem:[%s10452_s8] sm:$0xff]  }
 0x1cf   :  { %3540 = vmatprep.subr.bf16.mxu0 %v7563_v48  ;;  %3868 = vmatprep.subr.bf16.mxu1 %v7566_v57  ;;  %v3969_v56 = vld [vmem:[%s10453_s1] sm:$0x1]  ;;  %v7648_v48 = vld [vmem:[%s10452_s8 + $0x10] sm:$0xff]   ;;  %v7649_v57 = vld [vmem:[%s10452_s8 + $0x18] sm:$0xff]  }
 0x1d2   :  { %3541 = vmatpush1.bf16.msra.mxu0 %v7561_v58  ;;  %3869 = vmatpush1.bf16.msra.mxu1 %v7564_v59  ;;  %v7650_v58 = vld [vmem:[%s10452_s8 + $0x20] sm:$0xff]   ;;  %v7651_v59 = vld [vmem:[%s10452_s8 + $0x28] sm:$0xff]  }
 0x1d3   :  { %3542 = vmatprep.subr.bf16.mxu0 %v7569_v60  ;;  %3870 = vmatprep.subr.bf16.mxu1 %v7572_v61  ;;  %v7652_v60 = vld [vmem:[%s10452_s8 + $0x30] sm:$0xff]   ;;  %v7653_v61 = vld [vmem:[%s10452_s8 + $0x38] sm:$0xff]  }
 0x1d6   :  { %3543 = vmatpush1.bf16.msra.mxu0 %v7567_v62  ;;  %3871 = vmatpush1.bf16.msra.mxu1 %v7570_v63  ;;  %v7654_v62 = vld [vmem:[%s10454_s12] ss:$20 sps:$4 sm:$0xff]   ;;  %v7656_v63 = vld [vmem:[%s10454_s12 + $0x4] ss:$20 sps:$4 sm:$0xff]  }
 0x1d7   :  { %3544 = vmatprep.subr.bf16.mxu0 %v7575_v0  ;;  %3872 = vmatprep.subr.bf16.mxu1 %v7578_v1  ;;  %v7659_v0 = vld [vmem:[%s10454_s12 + $0xc] ss:$20 sps:$4 sm:$0xff]  }
 0x1d8   :  { %v7662_v1 = vld [vmem:[%s10454_s12 + $0x2c] ss:$20 sps:$4 sm:$0xff]  }
 0x1da   :  { %3545 = vmatpush1.bf16.msra.mxu0 %v7573_v2  ;;  %3873 = vmatpush1.bf16.msra.mxu1 %v7576_v3  ;;  %v7660_v2 = vld [vmem:[%s10454_s12 + $0x28] ss:$20 sps:$4 sm:$0xff]  }
 0x1db   :  { %3546 = vmatprep.subr.bf16.mxu0 %v7581_v4  ;;  %3874 = vmatprep.subr.bf16.mxu1 %v7584_v5  ;;  %v7668_v3 = vld [vmem:[%s10454_s12 + $0x54] ss:$20 sps:$4 sm:$0xff]   ;;  %v7666_v4 = vld [vmem:[%s10454_s12 + $0x50] ss:$20 sps:$4 sm:$0xff]  }
 0x1dc   :  { %v7674_v5 = vld [vmem:[%s10454_s12 + $0x7c] ss:$20 sps:$4 sm:$0xff]  }
 0x1de   :  { %3547 = vmatpush1.bf16.msra.mxu0 %v7579_v6  ;;  %3875 = vmatpush1.bf16.msra.mxu1 %v7582_v7  ;;  %v7672_v6 = vld [vmem:[%s10454_s12 + $0x78] ss:$20 sps:$4 sm:$0xff]  }
 0x1df   :  { %3548 = vmatprep.subr.bf16.mxu0 %v7587_v8  ;;  %3876 = vmatprep.subr.bf16.mxu1 %v7590_v9  ;;  %v7680_v7 = vld [vmem:[%s10454_s12 + $0xa4] ss:$20 sps:$4 sm:$0xff]   ;;  %v7678_v8 = vld [vmem:[%s10454_s12 + $0xa0] ss:$20 sps:$4 sm:$0xff]  }
 0x1e0   :  { %v7686_v9 = vld [vmem:[%s10454_s12 + $0xcc] ss:$20 sps:$4 sm:$0xff]  }
 0x1e2   :  { %3549 = vmatpush1.bf16.msra.mxu0 %v7585_v10  ;;  %3877 = vmatpush1.bf16.msra.mxu1 %v7588_v11  ;;  %v7684_v10 = vld [vmem:[%s10454_s12 + $0xc8] ss:$20 sps:$4 sm:$0xff]   ;;  %v9741_v11 = vsub.s32 2, %v8149_v43 }
 0x1e3   :  { %3550 = vmatprep.subr.bf16.mxu0 %v7593_v12  ;;  %3878 = vmatprep.subr.bf16.mxu1 %v7596_v52  ;;  %v9746_v12 = vld [vmem:[%s10455_s3] sm:$0xf]  ;;  %v9749_v52 = vsub.s32 3, %v8149_v43 }
 0x1e6   :  { %3551 = vmatpush1.bf16.msra.mxu0 %v7591_v15  ;;  %3879 = vmatpush1.bf16.msra.mxu1 %v7594_v16  ;;  %v9754_v15 = vld [vmem:[%s10456_s4] sm:$0xf]  ;;  %v3918_v16 = vrot.slane %v9746_v12, %v9741_v11 }
 0x1e7   :  { %3552 = vmatprep.subr.bf16.mxu0 %v7599_v17  ;;  %3880 = vmatprep.subr.bf16.mxu1 %v7602_v18  ;;  %v3922_v17 = vrot.slane %v9746_v12, %v9749_v52  ;;  %v3944_v18 = vrot.slane %v9754_v15, %v9741_v11 }
 0x1ea   :  { %3553 = vmatpush1.bf16.msra.mxu0 %v7597_v19  ;;  %3881 = vmatpush1.bf16.msra.mxu1 %v7600_v20 }
 0x1eb   :  { %3554 = vmatprep.subr.bf16.mxu0 %v7605_v22  ;;  %3882 = vmatprep.subr.bf16.mxu1 %v7608_v23  ;;  %v3948_v22 = vrot.slane %v9754_v15, %v9749_v52 }
 0x1ee   :  { %3555 = vmatpush1.bf16.msra.mxu0 %v7603_v24  ;;  %3883 = vmatpush1.bf16.msra.mxu1 %v7606_v13 }
 0x1ef   :  { %3556 = vmatprep.subr.bf16.mxu0 %v7611_v28  ;;  %3884 = vmatprep.subr.bf16.mxu1 %v7614_v29 }
 0x1f2   :  { %3557 = vmatpush1.bf16.msra.mxu0 %v7609_v14  ;;  %3885 = vmatpush1.bf16.msra.mxu1 %v7612_v30 }
 0x1f3   :  { %3558 = vmatprep.subr.bf16.mxu0 %v7617_v31  ;;  %3886 = vmatprep.subr.bf16.mxu1 %v7620_v25 }
 0x1f6   :  { %3559 = vmatpush1.bf16.msra.mxu0 %v7615_v32  ;;  %3887 = vmatpush1.bf16.msra.mxu1 %v7618_v33  ;;  %v6476_v33 = vld [vmem:[%s10457_s6] ss:$0 sm:$0xff] }
 0x1f7   :  { %3560 = vmatprep.subr.bf16.mxu0 %v7623_v34  ;;  %3888 = vmatprep.subr.bf16.mxu1 %v7626_v26  ;;  %v6477_v26 = vld [vmem:[%s10458_s7] ss:$0 sm:$0xff] }
 0x1fa   :  { %3561 = vmatpush1.bf16.msra.mxu0 %v7621_v36  ;;  %3889 = vmatpush1.bf16.msra.mxu1 %v7624_v38 }
 0x1fb   :  { %3562 = vmatprep.subr.bf16.mxu0 %v7629_v21  ;;  %3890 = vmatprep.subr.bf16.mxu1 %v7632_v40 }
 0x1fe   :  { %3563 = vmatpush1.bf16.msra.mxu0 %v7627_v27  ;;  %3891 = vmatpush1.bf16.msra.mxu1 %v7630_v41 }
 0x1ff   :  { %3564 = vmatprep.subr.bf16.mxu0 %v7635_v42  ;;  %3892 = vmatprep.subr.bf16.mxu1 %v7638_v44  ;;  %v7657_v44 = vld [vmem:[%s10454_s12 + $0x8] ss:$20 sps:$4 sm:$0xff]  }
 0x202   :  { %3565 = vmatpush1.bf16.msra.mxu0 %v7633_v35  ;;  %3893 = vmatpush1.bf16.msra.mxu1 %v7636_v45  ;;  %v7665_v45 = vld [vmem:[%s10454_s12 + $0x34] ss:$20 sps:$4 sm:$0xff]  }
 0x203   :  { %3566 = vmatprep.subr.bf16.mxu0 %v7641_v46  ;;  %3894 = vmatprep.subr.bf16.mxu1 %v7644_v47  ;;  %v7663_v46 = vld [vmem:[%s10454_s12 + $0x30] ss:$20 sps:$4 sm:$0xff]  }
 0x204   :  { %v7671_v47 = vld [vmem:[%s10454_s12 + $0x5c] ss:$20 sps:$4 sm:$0xff]  }
 0x206   :  { %3567 = vmatpush1.bf16.msra.mxu0 %v7639_v37  ;;  %3895 = vmatpush1.bf16.msra.mxu1 %v7642_v51  ;;  %v7669_v37 = vld [vmem:[%s10454_s12 + $0x58] ss:$20 sps:$4 sm:$0xff]  }
 0x207   :  { %6753 = vmatprep.subr.bf16.mxu0 %v7939_v49  ;;  %6759 = vmatprep.subr.bf16.mxu1 %v7939_v49  ;;  %v7677_v51 = vld [vmem:[%s10454_s12 + $0x84] ss:$20 sps:$4 sm:$0xff]  }
 0x209   :  { %3569 = vmatmul.mubr.bf16.vlgmr.msra.gmra.mrb[0].mxu0 %v670_v54  ;;  %3897 = vmatmul.mubr.bf16.vlgmr.msra.gmra.mrb[0].mxu1 %v670_v54  ;;  %v7683_v54 = vld [vmem:[%s10454_s12 + $0xac] ss:$20 sps:$4 sm:$0xff]  }
 0x20a   :  { %6754 = vmatpush3.bf16.msra.mxu0 %v3983_v39  ;;  %6755 = vmatprep.mubr.msk.bf16.mxu0 %vm7940_vm1, %v7939_v49  ;;  %v7681_v39 = vld [vmem:[%s10454_s12 + $0xa8] ss:$20 sps:$4 sm:$0xff]  }
 0x20b   :  { %6760 = vmatpush3.bf16.msra.mxu1 %v7646_v55  ;;  %6775 = vmatprep.mubr.msk.bf16.mxu1 %vm7940_vm1, %v7939_v49  ;;  %v7689_v55 = vld [vmem:[%s10454_s12 + $0xd4] ss:$20 sps:$4 sm:$0xff]  }
 0x20c   :  { %6761 = vmatprep.subr.bf16.mxu1 %v7939_v49  ;;  %4621 = vmatprep.subr.bf16.mxu0 %v7656_v63  ;;  %v7704_v63 = vld [vmem:[%s10459_s11 + $0xc] ss:$20 sps:$4 sm:$0xff]  }
 0x20f   :  { %6762 = vmatpush3.bf16.msra.mxu1 %v7647_v50  ;;  %v7687_v50 = vld [vmem:[%s10454_s12 + $0xd0] ss:$20 sps:$4 sm:$0xff]  }
 0x210   :  { %6763 = vmatprep.subr.bf16.mxu1 %v7939_v49 }
 0x211   :  { %6756 = vmatmul.mubr.msk.bf16.vlgmr.msra.gmra.mrb[4].mxu0 %vm3977_vm2, %v3969_v56  ;;  %v7692_v56 = vld [vmem:[%s10454_s12 + $0xf4] ss:$20 sps:$4 sm:$0xff]  }
 0x212   :  { %4622 = vmatpush1.bf16.msra.mxu0 %v7654_v62  ;;  %v7699_v62 = vld [vmem:[%s10454_s12 + $0x120] ss:$20 sps:$4 sm:$0xff]  }
 0x213   :  { %6764 = vmatpush3.bf16.msra.mxu1 %v7648_v48  ;;  %4623 = vmatprep.subr.bf16.mxu0 %v7662_v1  ;;  %v7695_v48 = vld [vmem:[%s10454_s12 + $0xfc] ss:$20 sps:$4 sm:$0xff]   ;;  %v9840_v1 = vsub.s32 1, %v8149_v43 }
 0x214   :  { %6765 = vmatprep.subr.bf16.mxu1 %v7939_v49 }
 0x216   :  { %4624 = vmatpush1.bf16.msra.mxu0 %v7660_v2  ;;  %v3914_v2 = vrot.slane %v9746_v12, %v9840_v1 }
 0x217   :  { %6766 = vmatpush3.bf16.msra.mxu1 %v7649_v57  ;;  %4625 = vmatprep.subr.bf16.mxu0 %v7668_v3  ;;  %v7690_v57 = vld [vmem:[%s10454_s12 + $0xf0] ss:$20 sps:$4 sm:$0xff]  }
 0x218   :  { %6767 = vmatprep.subr.bf16.mxu1 %v7939_v49 }
 0x21a   :  { %4626 = vmatpush1.bf16.msra.mxu0 %v7666_v4  ;;  %v3940_v4 = vrot.slane %v9754_v15, %v9840_v1 }
 0x21b   :  { %6768 = vmatpush3.bf16.msra.mxu1 %v7650_v58  ;;  %4627 = vmatprep.subr.bf16.mxu0 %v7674_v5  ;;  %v7693_v58 = vld [vmem:[%s10454_s12 + $0xf8] ss:$20 sps:$4 sm:$0xff]   ;;  %v6486_v5 = vld [vmem:[%s10460_s9] ss:$0 sm:$0xff] }
 0x21c   :  { %6769 = vmatprep.subr.bf16.mxu1 %v7939_v49 }
 0x21e   :  { %4628 = vmatpush1.bf16.msra.mxu0 %v7672_v6 }
 0x21f   :  { %6770 = vmatpush3.bf16.msra.mxu1 %v7651_v59  ;;  %4629 = vmatprep.subr.bf16.mxu0 %v7680_v7  ;;  %v7698_v59 = vld [vmem:[%s10454_s12 + $0x11c] ss:$20 sps:$4 sm:$0xff]  }
 0x220   :  { %6771 = vmatprep.subr.bf16.mxu1 %v7939_v49 }
 0x222   :  { %4630 = vmatpush1.bf16.msra.mxu0 %v7678_v8  ;;  %v6487_v8 = vld [vmem:[%s10461_s10] ss:$0 sm:$0xff] }
 0x223   :  { %6772 = vmatpush3.bf16.msra.mxu1 %v7652_v60  ;;  %4631 = vmatprep.subr.bf16.mxu0 %v7686_v9  ;;  %v7701_v60 = vld [vmem:[%s10454_s12 + $0x124] ss:$20 sps:$4 sm:$0xff]  }
 0x224   :  { %6773 = vmatprep.subr.bf16.mxu1 %v7939_v49 }
 0x226   :  { %4632 = vmatpush1.bf16.msra.mxu0 %v7684_v10 }
 0x227   :  { %6774 = vmatpush3.bf16.msra.mxu1 %v7653_v61  ;;  %4633 = vmatprep.subr.bf16.mxu0 %v7692_v56  ;;  %v7696_v61 = vld [vmem:[%s10454_s12 + $0x118] ss:$20 sps:$4 sm:$0xff]  }
 0x228   :  { %4662 = vmatprep.subr.bf16.mxu1 %v7659_v0  ;;  %v7941_v0 = vmov 0   ;;  %v7742_v56 = vld [vmem:[%s10459_s11 + $0x2c] ss:$20 sps:$4 sm:$0xff]  }
 0x229   :  { %4653 = vmatprep.mubr.bf16.mxu0 %v7941_v0 }
 0x22a   :  { %4634 = vmatpush1.bf16.msra.mxu0 %v7690_v57  ;;  %v7740_v57 = vld [vmem:[%s10459_s11 + $0x28] ss:$20 sps:$4 sm:$0xff]  }
 0x22b   :  { %4635 = vmatprep.subr.bf16.mxu0 %v7698_v59  ;;  %v7748_v59 = vld [vmem:[%s10459_s11 + $0x54] ss:$20 sps:$4 sm:$0xff]  }
 0x22e   :  { %4636 = vmatpush1.bf16.msra.mxu0 %v7696_v61  ;;  %v7746_v61 = vld [vmem:[%s10459_s11 + $0x50] ss:$20 sps:$4 sm:$0xff]  }
 0x22f   :  { %6779 = vmatprep.subr.bf16.mxu0 %v7939_v49 }
 0x2dc   :  { %v9762_v19 = vpop.f32.mrb[0].mxu0  ;;  %v3898_v20 = vpop.f32.mrb[0].mxu1 }
 0x2dd   :  { %v3929_v23 = vmul.f32 %v3918_v16, %v3898_v20  ;;  %v9766_v24 = vpop.f32.mrb[1].mxu0  ;;  %v3900_v13 = vpop.f32.mrb[1].mxu1 }
 0x2de   :  { %v3930_v28 = vmul.f32 %v3922_v17, %v3900_v13  ;;  %v3574_v29 = vpop.f32.mrb[2].mxu0  ;;  %v3902_v14 = vpop.f32.mrb[2].mxu1  ;;  %v3928_v3 = vmul.f32 %v3914_v2, %v9766_v24  ;;  %v7702_v24 = vld [vmem:[%s10459_s11 + $0x8] ss:$20 sps:$4 sm:$0xff]   ;;  %v7705_v13 = vld [vmem:[%s10454_s12 + $0x10] ss:$20 sps:$4 sm:$0xff]  }
 0x2df   :  { %v9768_v30 = vadd.f32 %v3944_v18, %v3929_v23  ;;  %v3575_v31 = vpop.f32.mrb[3].mxu0  ;;  %v3903_v25 = vpop.f32.mrb[3].mxu1  ;;  %v7708_v14 = vld [vmem:[%s10459_s11 + $0x34] ss:$20 sps:$4 sm:$0xff]   ;;  %v9983_v2 = vsub.s32 0, %v8149_v43 }
 0x2e0   :  { %v9770_v32 = vadd.f32 %v3948_v22, %v3930_v28  ;;  %v3954_v6 = vadd.f32 %v3940_v4, %v3928_v3  ;;  %v7706_v25 = vld [vmem:[%s10459_s11 + $0x30] ss:$20 sps:$4 sm:$0xff]   ;;  %v7752_v3 = vld [vmem:[%s10459_s11 + $0x78] ss:$20 sps:$4 sm:$0xff]   ;;  %v7755_v4 = vld [vmem:[%s10459_s11 + $0x1c0] ss:$20 sps:$4 sm:$0xff]  }
 0x2e1   :  { %vm3959_vm8 = vcmp.ge.f32.partialorder %v9768_v30, 0.0 }
 0x2e2   :  { %v3962_v17 = vmul.f32 0.01, %v3954_v6  ;;  %vm3958_vm4 = vcmp.ge.f32.partialorder %v3954_v6, 0.0  ;;  %vm3960_vm7 = vcmp.ge.f32.partialorder %v9770_v32, 0.0 }
 0x2e4   :  { %v4019_v34 = vpop.f32.mrb[4].mxu0  ;;  %v3966_v28 = vsel %vm3958_vm4, %v3954_v6, %v3962_v17  ;;  %v7763_v6 = vld [vmem:[%s10459_s11 + $0x1ec] ss:$20 sps:$4 sm:$0xff]   ;;  %v3936_v17 = vrot.slane %v9754_v15, %v9983_v2  ;;  %v7775_v15 = vld [vmem:[%s10459_s11 + $0x23c] ss:$20 sps:$4 sm:$0xff]  }
 0x2e5   :  { %v4032_v36 = vmul.f32 %v6476_v33, %v4019_v34  ;;  %v6757_v38 = vpop.f32.mrb[5].mxu0  ;;  %v9866_v31 = vpack.c.bf16 %v3966_v28, %v3966_v28  ;;  %v7709_v33 = vld [vmem:[%s10454_s12 + $0x38] ss:$20 sps:$4 sm:$0xff]   ;;  %v7712_v34 = vld [vmem:[%s10459_s11 + $0x5c] ss:$20 sps:$4 sm:$0xff]  }
 0x2e6   :  { %v4022_v21 = vpop.f32.mrb[6].mxu0  ;;  %v7716_v38 = vld [vmem:[%s10459_s11 + $0x84] ss:$20 sps:$4 sm:$0xff]  }
 0x2e7   :  { %v4040_v40 = vadd.f32 %v6477_v26, %v4032_v36  ;;  %v6758_v27 = vpop.f32.mrb[7].mxu0  ;;  %v7710_v26 = vld [vmem:[%s10459_s11 + $0x58] ss:$20 sps:$4 sm:$0xff]   ;;  %v7713_v36 = vld [vmem:[%s10454_s12 + $0x60] ss:$20 sps:$4 sm:$0xff]  }
 0x2e8   :  { %v7714_v21 = vld [vmem:[%s10459_s11 + $0x80] ss:$20 sps:$4 sm:$0xff]   ;;  %v7781_v28 = vld [vmem:[%s10459_s11 + $0x264] ss:$20 sps:$4 sm:$0xff]  }
 0x2e9   :  { %vm4041_vm3 = vcmp.ge.f32.partialorder %v4040_v40, 0.0  ;;  %v4042_v41 = vmul.f32 0.01, %v4040_v40  ;;  %v7720_v27 = vld [vmem:[%s10459_s11 + $0xac] ss:$20 sps:$4 sm:$0xff]  }
 0x2eb   :  { %v4043_v42 = vsel %vm4041_vm3, %v4040_v40, %v4042_v41  ;;  %v7717_v40 = vld [vmem:[%s10454_s12 + $0x88] ss:$20 sps:$4 sm:$0xff]  }
 0x2ec   :  { %v4044_v35 = vpack.c.bf16 %v4043_v42, %v4043_v42  ;;  %v7718_v41 = vld [vmem:[%s10459_s11 + $0xa8] ss:$20 sps:$4 sm:$0xff]   ;;  %v7721_v42 = vld [vmem:[%s10454_s12 + $0xb0] ss:$20 sps:$4 sm:$0xff]  }
 0x2ee   :  { %6776 = vmatmul.mubr.bf16.vlgmr.msra.gmra.mrb[4].mxu1 %v4044_v35  ;;  %v7722_v35 = vld [vmem:[%s10459_s11 + $0xd0] ss:$20 sps:$4 sm:$0xff]  }
 0x2ef   :  { %4663 = vmatpush1.bf16.msra.mxu1 %v7657_v44  ;;  %4694 = vmatprep.mubr.bf16.mxu1 %v7941_v0  ;;  %v7724_v44 = vld [vmem:[%s10459_s11 + $0xd4] ss:$20 sps:$4 sm:$0xff]   ;;  %v7757_v0 = vld [vmem:[%s10459_s11 + $0x1c4] ss:$20 sps:$4 sm:$0xff]  }
 0x2f0   :  { %4664 = vmatprep.subr.bf16.mxu1 %v7665_v45  ;;  %v7725_v45 = vld [vmem:[%s10454_s12 + $0xd8] ss:$20 sps:$4 sm:$0xff]  }
 0x2f3   :  { %4665 = vmatpush1.bf16.msra.mxu1 %v7663_v46  ;;  %v7728_v46 = vld [vmem:[%s10459_s11 + $0xfc] ss:$20 sps:$4 sm:$0xff]  }
 0x2f4   :  { %4666 = vmatprep.subr.bf16.mxu1 %v7671_v47  ;;  %v7726_v47 = vld [vmem:[%s10459_s11 + $0xf8] ss:$20 sps:$4 sm:$0xff]  }
 0x2f7   :  { %4667 = vmatpush1.bf16.msra.mxu1 %v7669_v37  ;;  %v7729_v37 = vld [vmem:[%s10454_s12 + $0x100] ss:$20 sps:$4 sm:$0xff]  }
 0x2f8   :  { %4668 = vmatprep.subr.bf16.mxu1 %v7677_v51  ;;  %v7732_v51 = vld [vmem:[%s10459_s11 + $0x124] ss:$20 sps:$4 sm:$0xff]  }
 0x2fb   :  { %4669 = vmatpush1.bf16.msra.mxu1 %v7675_v53  ;;  %v7730_v53 = vld [vmem:[%s10459_s11 + $0x120] ss:$20 sps:$4 sm:$0xff]  }
 0x2fc   :  { %4670 = vmatprep.subr.bf16.mxu1 %v7683_v54  ;;  %v7733_v54 = vld [vmem:[%s10454_s12 + $0x128] ss:$20 sps:$4 sm:$0xff]  }
 0x2ff   :  { %4671 = vmatpush1.bf16.msra.mxu1 %v7681_v39  ;;  %v7736_v39 = vld [vmem:[%s10459_s11 + $0x4] ss:$20 sps:$4 sm:$0xff]  }
 0x300   :  { %4672 = vmatprep.subr.bf16.mxu1 %v7689_v55  ;;  %v7739_v55 = vld [vmem:[%s10459_s11 + $0x14c] ss:$20 sps:$4 sm:$0xff]  }
 0x303   :  { %4673 = vmatpush1.bf16.msra.mxu1 %v7687_v50  ;;  %v7734_v50 = vld [vmem:[%s10459_s11] ss:$20 sps:$4 sm:$0xff]  }
 0x304   :  { %4674 = vmatprep.subr.bf16.mxu1 %v7695_v48  ;;  %v7745_v48 = vld [vmem:[%s10459_s11 + $0x174] ss:$20 sps:$4 sm:$0xff]  }
 0x307   :  { %4675 = vmatpush1.bf16.msra.mxu1 %v7693_v58  ;;  %v7743_v58 = vld [vmem:[%s10459_s11 + $0x170] ss:$20 sps:$4 sm:$0xff]  }
 0x308   :  { %4676 = vmatprep.subr.bf16.mxu1 %v7701_v60  ;;  %v7751_v60 = vld [vmem:[%s10459_s11 + $0x19c] ss:$20 sps:$4 sm:$0xff]  }
 0x30b   :  { %4677 = vmatpush1.bf16.msra.mxu1 %v7699_v62  ;;  %v7749_v62 = vld [vmem:[%s10459_s11 + $0x198] ss:$20 sps:$4 sm:$0xff]  }
 0x30c   :  { %5657 = vmatprep.subr.bf16.mxu1 %v7704_v63  ;;  %v7754_v63 = vld [vmem:[%s10459_s11 + $0x7c] ss:$20 sps:$4 sm:$0xff]  }
 0x3c1   :  { %v4143_v7 = vpop.f32.mrb[4].mxu1 }
 0x3c2   :  { %v4156_v9 = vmul.f32 %v6486_v5, %v4143_v7  ;;  %v6777_v10 = vpop.f32.mrb[5].mxu1  ;;  %v7760_v5 = vld [vmem:[%s10459_s11 + $0xa4] ss:$20 sps:$4 sm:$0xff]   ;;  %v3910_v7 = vrot.slane %v9746_v12, %v9983_v2  ;;  %v7769_v12 = vld [vmem:[%s10459_s11 + $0x214] ss:$20 sps:$4 sm:$0xff]  }
 0x3c3   :  { %v4146_v16 = vpop.f32.mrb[6].mxu1  ;;  %v7766_v10 = vld [vmem:[%s10459_s11 + $0xcc] ss:$20 sps:$4 sm:$0xff]  }
 0x3c4   :  { %v4164_v18 = vadd.f32 %v6487_v8, %v4156_v9  ;;  %v6778_v20 = vpop.f32.mrb[7].mxu1  ;;  %v7758_v8 = vld [vmem:[%s10459_s11 + $0xa0] ss:$20 sps:$4 sm:$0xff]   ;;  %v7761_v9 = vld [vmem:[%s10459_s11 + $0x1e8] ss:$20 sps:$4 sm:$0xff]   ;;  %v3927_v16 = vmul.f32 %v3910_v7, %v9762_v19 }
 0x3c5   :  { %v7767_v20 = vld [vmem:[%s10459_s11 + $0x210] ss:$20 sps:$4 sm:$0xff]   ;;  %v7835_v7 = vld [vmem:[%s10459_s11 + $0x3cc] ss:$20 sps:$4 sm:$0xff]  }
 0x3c6   :  { %vm4165_vm5 = vcmp.ge.f32.partialorder %v4164_v18, 0.0  ;;  %v4166_v22 = vmul.f32 0.01, %v4164_v18  ;;  %v3953_v19 = vadd.f32 %v3936_v17, %v3927_v16  ;;  %v7836_v16 = vld [vmem:[%s10459_s11 + $0x2a8] ss:$20 sps:$4 sm:$0xff]  }
 0x3c7   :  { %v7839_v17 = vld [vmem:[%s10459_s11 + $0x3f0] ss:$20 sps:$4 sm:$0xff]  }
 0x3c8   :  { %v4167_v23 = vsel %vm4165_vm5, %v4164_v18, %v4166_v22  ;;  %v7764_v18 = vld [vmem:[%s10459_s11 + $0xc8] ss:$20 sps:$4 sm:$0xff]   ;;  %vm3957_vm6 = vcmp.ge.f32.partialorder %v3953_v19, 0.0 }
 0x3c9   :  { %v9859_v29 = vpack.c.bf16 %v4167_v23, %v4167_v23  ;;  %v7772_v22 = vld [vmem:[%s10459_s11 + $0xf4] ss:$20 sps:$4 sm:$0xff]   ;;  %v7770_v23 = vld [vmem:[%s10459_s11 + $0xf0] ss:$20 sps:$4 sm:$0xff]  }
 0x3cb   :  { %4654 = vmatmul.mubr.bf16.vlgmr.msra.gmra.mrb[8].mxu0 %v9859_v29  ;;  %4695 = vmatmul.mubr.bf16.vlgmr.msra.gmra.mrb[8].mxu1 %v9859_v29 }
 0x3cc   :  { %6780 = vmatpush3.bf16.msra.mxu0 %v7705_v13  ;;  %5658 = vmatpush1.bf16.msra.mxu1 %v7702_v24  ;;  %v7773_v24 = vld [vmem:[%s10459_s11 + $0x238] ss:$20 sps:$4 sm:$0xff]   ;;  %v7778_v13 = vld [vmem:[%s10459_s11 + $0x11c] ss:$20 sps:$4 sm:$0xff]  }
 0x3cd   :  { %5689 = vmatprep.mubr.bf16.mxu1 %v9866_v31  ;;  %6781 = vmatprep.subr.bf16.mxu0 %v7939_v49 }
 0x3ce   :  { %5659 = vmatprep.subr.bf16.mxu1 %v7708_v14  ;;  %6795 = vmatprep.mubr.msk.bf16.mxu0 %vm7940_vm1, %v7939_v49  ;;  %v3964_v14 = vmul.f32 0.01, %v9770_v32 }
 0x3d0   :  { %6782 = vmatpush3.bf16.msra.mxu0 %v7709_v33  ;;  %5660 = vmatpush1.bf16.msra.mxu1 %v7706_v25  ;;  %v7776_v25 = vld [vmem:[%s10459_s11 + $0x118] ss:$20 sps:$4 sm:$0xff]   ;;  %v7779_v33 = vld [vmem:[%s10459_s11 + $0x260] ss:$20 sps:$4 sm:$0xff]  }
 0x3d1   :  { %6783 = vmatprep.subr.bf16.mxu0 %v7939_v49  ;;  %5661 = vmatprep.subr.bf16.mxu1 %v7712_v34  ;;  %v7784_v34 = vld [vmem:[%s10459_s11 + $0x144] ss:$20 sps:$4 sm:$0xff]  }
 0x3d4   :  { %6784 = vmatpush3.bf16.msra.mxu0 %v7713_v36  ;;  %5662 = vmatpush1.bf16.msra.mxu1 %v7710_v26  ;;  %v7787_v26 = vld [vmem:[%s10459_s11 + $0x28c] ss:$20 sps:$4 sm:$0xff]  }
 0x3d5   :  { %6785 = vmatprep.subr.bf16.mxu0 %v7939_v49  ;;  %5663 = vmatprep.subr.bf16.mxu1 %v7716_v38  ;;  %v7782_v38 = vld [vmem:[%s10459_s11 + $0x140] ss:$20 sps:$4 sm:$0xff]  }
 0x3d8   :  { %6786 = vmatpush3.bf16.msra.mxu0 %v7717_v40  ;;  %5664 = vmatpush1.bf16.msra.mxu1 %v7714_v21  ;;  %v3968_v21 = vsel %vm3960_vm7, %v9770_v32, %v3964_v14  ;;  %v7785_v40 = vld [vmem:[%s10459_s11 + $0x288] ss:$20 sps:$4 sm:$0xff]   ;;  %v7854_v14 = vld [vmem:[%s10459_s11 + $0x320] ss:$20 sps:$4 sm:$0xff]  }
 0x3d9   :  { %6787 = vmatprep.subr.bf16.mxu0 %v7939_v49  ;;  %5665 = vmatprep.subr.bf16.mxu1 %v7720_v27  ;;  %v7788_v32 = vld [vmem:[%s10459_s11 + $0x168] ss:$20 sps:$4 sm:$0xff]  }
 0x3dc   :  { %6788 = vmatpush3.bf16.msra.mxu0 %v7721_v42  ;;  %5666 = vmatpush1.bf16.msra.mxu1 %v7718_v41  ;;  %v7790_v41 = vld [vmem:[%s10459_s11 + $0x16c] ss:$20 sps:$4 sm:$0xff]   ;;  %v7793_v42 = vld [vmem:[%s10459_s11 + $0x2b4] ss:$20 sps:$4 sm:$0xff]  }
 0x3dd   :  { %6789 = vmatprep.subr.bf16.mxu0 %v7939_v49  ;;  %5667 = vmatprep.subr.bf16.mxu1 %v7724_v44  ;;  %v10067_v44 = vpack.c.bf16 %v3968_v21, %v3968_v21  ;;  %v7871_v21 = vld [vmem:[%s10459_s11 + $0x4bc] ss:$20 sps:$4 sm:$0xff]  }
 0x3e0   :  { %6790 = vmatpush3.bf16.msra.mxu0 %v7725_v45  ;;  %5668 = vmatpush1.bf16.msra.mxu1 %v7722_v35  ;;  %v7791_v35 = vld [vmem:[%s10459_s11 + $0x2b0] ss:$20 sps:$4 sm:$0xff]   ;;  %v7796_v45 = vld [vmem:[%s10459_s11 + $0x194] ss:$20 sps:$4 sm:$0xff]  }
 0x3e1   :  { %6791 = vmatprep.subr.bf16.mxu0 %v7939_v49  ;;  %5669 = vmatprep.subr.bf16.mxu1 %v7728_v46  ;;  %v7799_v46 = vld [vmem:[%s10459_s11 + $0x2dc] ss:$20 sps:$4 sm:$0xff]  }
 0x3e4   :  { %6792 = vmatpush3.bf16.msra.mxu0 %v7729_v37  ;;  %5670 = vmatpush1.bf16.msra.mxu1 %v7726_v47  ;;  %v7794_v47 = vld [vmem:[%s10459_s11 + $0x190] ss:$20 sps:$4 sm:$0xff]   ;;  %v7797_v37 = vld [vmem:[%s10459_s11 + $0x2d8] ss:$20 sps:$4 sm:$0xff]  }
 0x3e5   :  { %6793 = vmatprep.subr.bf16.mxu0 %v7939_v49  ;;  %5671 = vmatprep.subr.bf16.mxu1 %v7732_v51  ;;  %v7737_v49 = vld [vmem:[%s10459_s11 + $0x148] ss:$20 sps:$4 sm:$0xff]  }
 0x3e6   :  { %v7802_v51 = vld [vmem:[%s10459_s11 + $0x1bc] ss:$20 sps:$4 sm:$0xff]  }
 0x3e8   :  { %6794 = vmatpush3.bf16.msra.mxu0 %v7733_v54  ;;  %5672 = vmatpush1.bf16.msra.mxu1 %v7730_v53  ;;  %v7805_v53 = vld [vmem:[%s10459_s11 + $0x304] ss:$20 sps:$4 sm:$0xff]  }
 0x3e9   :  { %5575 = vmatprep.subr.bf16.mxu0 %v7736_v39  ;;  %5673 = vmatprep.subr.bf16.mxu1 %v7739_v55  ;;  %v7800_v54 = vld [vmem:[%s10459_s11 + $0x1b8] ss:$20 sps:$4 sm:$0xff]   ;;  %v7803_v39 = vld [vmem:[%s10459_s11 + $0x300] ss:$20 sps:$4 sm:$0xff]  }
 0x3ea   :  { %v7808_v55 = vld [vmem:[%s10459_s11 + $0x1e4] ss:$20 sps:$4 sm:$0xff]  }
 0x3eb   :  { %6796 = vmatmul.mubr.bf16.vlgmr.msra.gmra.mrb[12].mxu0 %v9859_v29  ;;  %v3961_v29 = vmul.f32 0.01, %v3953_v19 }
 0x3ec   :  { %5576 = vmatpush1.bf16.msra.mxu0 %v7734_v50  ;;  %5607 = vmatprep.mubr.bf16.mxu0 %v9866_v31  ;;  %v7811_v50 = vld [vmem:[%s10459_s11 + $0x32c] ss:$20 sps:$4 sm:$0xff]  }
 0x3ed   :  { %5674 = vmatpush1.bf16.msra.mxu1 %v7737_v49  ;;  %5577 = vmatprep.subr.bf16.mxu0 %v7742_v56  ;;  %v3965_v36 = vsel %vm3957_vm6, %v3953_v19, %v3961_v29  ;;  %v7806_v49 = vld [vmem:[%s10459_s11 + $0x1e0] ss:$20 sps:$4 sm:$0xff]   ;;  %v7809_v56 = vld [vmem:[%s10459_s11 + $0x328] ss:$20 sps:$4 sm:$0xff]  }
 0x3ee   :  { %5675 = vmatprep.subr.bf16.mxu1 %v7745_v48  ;;  %v10059_v27 = vpack.c.bf16 %v3965_v36, %v3965_v36  ;;  %v7814_v48 = vld [vmem:[%s10459_s11 + $0x20c] ss:$20 sps:$4 sm:$0xff]   ;;  %v7850_v19 = vld [vmem:[%s10459_s11 + $0x2fc] ss:$20 sps:$4 sm:$0xff]  }
 0x3ef   :  { %v7859_v29 = vld [vmem:[%s10459_s11 + $0x46c] ss:$20 sps:$4 sm:$0xff]   ;;  %v7863_v36 = vld [vmem:[%s10459_s11 + $0x490] ss:$20 sps:$4 sm:$0xff]  }
 0x3f0   :  { %5578 = vmatpush1.bf16.msra.mxu0 %v7740_v57  ;;  %v7817_v57 = vld [vmem:[%s10459_s11 + $0x354] ss:$20 sps:$4 sm:$0xff]  }
 0x3f1   :  { %5676 = vmatpush1.bf16.msra.mxu1 %v7743_v58  ;;  %5579 = vmatprep.subr.bf16.mxu0 %v7748_v59  ;;  %v7812_v58 = vld [vmem:[%s10459_s11 + $0x208] ss:$20 sps:$4 sm:$0xff]   ;;  %v7815_v59 = vld [vmem:[%s10459_s11 + $0x350] ss:$20 sps:$4 sm:$0xff]  }
 0x3f2   :  { %5677 = vmatprep.subr.bf16.mxu1 %v7751_v60  ;;  %v7820_v60 = vld [vmem:[%s10459_s11 + $0x234] ss:$20 sps:$4 sm:$0xff]  }
 0x3f4   :  { %5580 = vmatpush1.bf16.msra.mxu0 %v7746_v61  ;;  %v7823_v61 = vld [vmem:[%s10459_s11 + $0x37c] ss:$20 sps:$4 sm:$0xff]  }
 0x3f5   :  { %5678 = vmatpush1.bf16.msra.mxu1 %v7749_v62  ;;  %5581 = vmatprep.subr.bf16.mxu0 %v7754_v63  ;;  %v7818_v62 = vld [vmem:[%s10459_s11 + $0x230] ss:$20 sps:$4 sm:$0xff]   ;;  %v7821_v63 = vld [vmem:[%s10459_s11 + $0x378] ss:$20 sps:$4 sm:$0xff]  }
 0x3f6   :  { %5679 = vmatprep.subr.bf16.mxu1 %v7757_v0  ;;  %v7826_v0 = vld [vmem:[%s10459_s11 + $0x25c] ss:$20 sps:$4 sm:$0xff]  }
 0x3f8   :  { %5582 = vmatpush1.bf16.msra.mxu0 %v7752_v3  ;;  %v7829_v3 = vld [vmem:[%s10459_s11 + $0x3a4] ss:$20 sps:$4 sm:$0xff]  }
 0x3f9   :  { %5680 = vmatpush1.bf16.msra.mxu1 %v7755_v4  ;;  %5583 = vmatprep.subr.bf16.mxu0 %v7760_v5  ;;  %v7824_v4 = vld [vmem:[%s10459_s11 + $0x258] ss:$20 sps:$4 sm:$0xff]   ;;  %v7827_v5 = vld [vmem:[%s10459_s11 + $0x3a0] ss:$20 sps:$4 sm:$0xff]  }
 0x3fa   :  { %5681 = vmatprep.subr.bf16.mxu1 %v7763_v6  ;;  %v7832_v6 = vld [vmem:[%s10459_s11 + $0x284] ss:$20 sps:$4 sm:$0xff]  }
 0x3fc   :  { %5584 = vmatpush1.bf16.msra.mxu0 %v7758_v8  ;;  %v7830_v8 = vld [vmem:[%s10459_s11 + $0x280] ss:$20 sps:$4 sm:$0xff]  }
 0x3fd   :  { %5682 = vmatpush1.bf16.msra.mxu1 %v7761_v9  ;;  %5585 = vmatprep.subr.bf16.mxu0 %v7766_v10  ;;  %v7833_v9 = vld [vmem:[%s10459_s11 + $0x3c8] ss:$20 sps:$4 sm:$0xff]   ;;  %v7838_v10 = vld [vmem:[%s10459_s11 + $0x2ac] ss:$20 sps:$4 sm:$0xff]  }
 0x3fe   :  { %5683 = vmatprep.subr.bf16.mxu1 %v7769_v12  ;;  %v7841_v12 = vld [vmem:[%s10459_s11 + $0x3f4] ss:$20 sps:$4 sm:$0xff]  }
 0x400   :  { %5586 = vmatpush1.bf16.msra.mxu0 %v7764_v18  ;;  %v7844_v18 = vld [vmem:[%s10459_s11 + $0x2d4] ss:$20 sps:$4 sm:$0xff]  }
 0x401   :  { %5684 = vmatpush1.bf16.msra.mxu1 %v7767_v20  ;;  %5587 = vmatprep.subr.bf16.mxu0 %v7772_v22  ;;  %v7847_v20 = vld [vmem:[%s10459_s11 + $0x41c] ss:$20 sps:$4 sm:$0xff]  }
 0x402   :  { %5685 = vmatprep.subr.bf16.mxu1 %v7775_v15  ;;  %v7842_v22 = vld [vmem:[%s10459_s11 + $0x2d0] ss:$20 sps:$4 sm:$0xff]   ;;  %v7845_v15 = vld [vmem:[%s10459_s11 + $0x418] ss:$20 sps:$4 sm:$0xff]  }
 0x404   :  { %5588 = vmatpush1.bf16.msra.mxu0 %v7770_v23  ;;  %v7853_v23 = vld [vmem:[%s10459_s11 + $0x444] ss:$20 sps:$4 sm:$0xff]  }
 0x405   :  { %5686 = vmatpush1.bf16.msra.mxu1 %v7773_v24  ;;  %5589 = vmatprep.subr.bf16.mxu0 %v7778_v13  ;;  %v7848_v24 = vld [vmem:[%s10459_s11 + $0x2f8] ss:$20 sps:$4 sm:$0xff]   ;;  %v7851_v13 = vld [vmem:[%s10459_s11 + $0x440] ss:$20 sps:$4 sm:$0xff]  }
 0x406   :  { %5687 = vmatprep.subr.bf16.mxu1 %v7781_v28  ;;  %v7856_v28 = vld [vmem:[%s10459_s11 + $0x324] ss:$20 sps:$4 sm:$0xff]  }
 0x408   :  { %5590 = vmatpush1.bf16.msra.mxu0 %v7776_v25  ;;  %v7857_v25 = vld [vmem:[%s10459_s11 + $0x468] ss:$20 sps:$4 sm:$0xff]  }
 0x409   :  { %5688 = vmatpush1.bf16.msra.mxu1 %v7779_v33  ;;  %5591 = vmatprep.subr.bf16.mxu0 %v7784_v34  ;;  %v7862_v33 = vld [vmem:[%s10459_s11 + $0x34c] ss:$20 sps:$4 sm:$0xff]   ;;  %v7865_v34 = vld [vmem:[%s10459_s11 + $0x494] ss:$20 sps:$4 sm:$0xff]  }
 0x40a   :  { %5698 = vmatprep.subr.bf16.mxu1 %v7787_v26  ;;  %v7860_v26 = vld [vmem:[%s10459_s11 + $0x348] ss:$20 sps:$4 sm:$0xff]  }
 0x40c   :  { %5690 = vmatmul.mubr.bf16.vlgmr.msra.gmra.mrb[8].mxu1 %v10059_v27  ;;  %5592 = vmatpush1.bf16.msra.mxu0 %v7782_v38  ;;  %v7868_v38 = vld [vmem:[%s10459_s11 + $0x374] ss:$20 sps:$4 sm:$0xff]  }
 0x40d   :  { %5699 = vmatpush1.bf16.msra.mxu1 %v7785_v40  ;;  %5730 = vmatprep.mubr.bf16.mxu1 %v10067_v44  ;;  %v7866_v40 = vld [vmem:[%s10459_s11 + $0x370] ss:$20 sps:$4 sm:$0xff]  }
 0x40e   :  { %5593 = vmatprep.subr.bf16.mxu0 %v7790_v41  ;;  %5700 = vmatprep.subr.bf16.mxu1 %v7793_v42  ;;  %v7869_v41 = vld [vmem:[%s10459_s11 + $0x4b8] ss:$20 sps:$4 sm:$0xff]   ;;  %v7874_v42 = vld [vmem:[%s10459_s11 + $0x39c] ss:$20 sps:$4 sm:$0xff]  }
 0x410   :  { %5594 = vmatpush1.bf16.msra.mxu0 %v7788_v32  ;;  %v7877_v32 = vld [vmem:[%s10459_s11 + $0x4e4] ss:$20 sps:$4 sm:$0xff]  }
 0x411   :  { %5701 = vmatpush1.bf16.msra.mxu1 %v7791_v35  ;;  %5595 = vmatprep.subr.bf16.mxu0 %v7796_v45  ;;  %v3963_v35 = vmul.f32 0.01, %v9768_v30  ;;  %v7872_v45 = vld [vmem:[%s10459_s11 + $0x398] ss:$20 sps:$4 sm:$0xff]  }
 0x412   :  { %5702 = vmatprep.subr.bf16.mxu1 %v7799_v46  ;;  %v7875_v46 = vld [vmem:[%s10459_s11 + $0x4e0] ss:$20 sps:$4 sm:$0xff]  }
 0x414   :  { %5596 = vmatpush1.bf16.msra.mxu0 %v7794_v47  ;;  %v7880_v47 = vld [vmem:[%s10459_s11 + $0x3c4] ss:$20 sps:$4 sm:$0xff]  }
 0x415   :  { %5703 = vmatpush1.bf16.msra.mxu1 %v7797_v37  ;;  %5597 = vmatprep.subr.bf16.mxu0 %v7802_v51  ;;  %v7881_v37 = vld [vmem:[%s10459_s11 + $0x150] ss:$20 sps:$4 sm:$0xff]   ;;  %v3967_v51 = vsel %vm3959_vm8, %v9768_v30, %v3963_v35  ;;  %v7886_v30 = vld [vmem:[%s10459_s11 + $0x178] ss:$20 sps:$4 sm:$0xff]  }
 0x416   :  { %5704 = vmatprep.subr.bf16.mxu1 %v7805_v53  ;;  %v7878_v53 = vld [vmem:[%s10459_s11 + $0x3c0] ss:$20 sps:$4 sm:$0xff]  }
 0x418   :  { %5598 = vmatpush1.bf16.msra.mxu0 %v7800_v54  ;;  %v7882_v54 = vld [vmem:[%s10459_s11 + $0x10] ss:$20 sps:$4 sm:$0xff]  }
 0x419   :  { %5705 = vmatpush1.bf16.msra.mxu1 %v7803_v39  ;;  %5599 = vmatprep.subr.bf16.mxu0 %v7808_v55  ;;  %v10262_v39 = vpack.c.bf16 %v3967_v51, %v3967_v51  ;;  %v7885_v55 = vld [vmem:[%s10459_s11 + $0x3ec] ss:$20 sps:$4 sm:$0xff]  }
 0x41a   :  { %5706 = vmatprep.subr.bf16.mxu1 %v7811_v50  ;;  %v7883_v50 = vld [vmem:[%s10459_s11 + $0x3e8] ss:$20 sps:$4 sm:$0xff]   ;;  %v10415_v51 = vld [vmem:[%s10464_s14] sm:$0x1f] }
 0x41c   :  { %5600 = vmatpush1.bf16.msra.mxu0 %v7806_v49  ;;  %v7887_v49 = vld [vmem:[%s10459_s11 + $0x38] ss:$20 sps:$4 sm:$0xff]  }
 0x41d   :  { %5707 = vmatpush1.bf16.msra.mxu1 %v7809_v56  ;;  %5601 = vmatprep.subr.bf16.mxu0 %v7814_v48  ;;  %v7890_v56 = vld [vmem:[%s10459_s11 + $0x414] ss:$20 sps:$4 sm:$0xff]  }
 0x41e   :  { %5708 = vmatprep.subr.bf16.mxu1 %v7817_v57  ;;  %v7891_v48 = vld [vmem:[%s10459_s11 + $0x1a0] ss:$20 sps:$4 sm:$0xff]   ;;  %v7888_v57 = vld [vmem:[%s10459_s11 + $0x410] ss:$20 sps:$4 sm:$0xff]  }
 0x420   :  { %5602 = vmatpush1.bf16.msra.mxu0 %v7812_v58  ;;  %v7895_v58 = vld [vmem:[%s10459_s11 + $0x43c] ss:$20 sps:$4 sm:$0xff]  }
 0x421   :  { %5709 = vmatpush1.bf16.msra.mxu1 %v7815_v59  ;;  %5603 = vmatprep.subr.bf16.mxu0 %v7820_v60  ;;  %v7896_v59 = vld [vmem:[%s10459_s11 + $0x1c8] ss:$20 sps:$4 sm:$0xff]   ;;  %v7893_v60 = vld [vmem:[%s10459_s11 + $0x438] ss:$20 sps:$4 sm:$0xff]  }
 0x422   :  { %5710 = vmatprep.subr.bf16.mxu1 %v7823_v61  ;;  %v7897_v61 = vld [vmem:[%s10459_s11 + $0x88] ss:$20 sps:$4 sm:$0xff]  }
 0x424   :  { %5604 = vmatpush1.bf16.msra.mxu0 %v7818_v62  ;;  %v7900_v62 = vld [vmem:[%s10459_s11 + $0x464] ss:$20 sps:$4 sm:$0xff]  }
 0x425   :  { %5711 = vmatpush1.bf16.msra.mxu1 %v7821_v63  ;;  %5605 = vmatprep.subr.bf16.mxu0 %v7826_v0  ;;  %v7901_v63 = vld [vmem:[%s10459_s11 + $0x1f0] ss:$20 sps:$4 sm:$0xff]   ;;  %v7898_v0 = vld [vmem:[%s10459_s11 + $0x460] ss:$20 sps:$4 sm:$0xff]  }
 0x426   :  { %5712 = vmatprep.subr.bf16.mxu1 %v7829_v3  ;;  %v7902_v3 = vld [vmem:[%s10459_s11 + $0xb0] ss:$20 sps:$4 sm:$0xff]  }
 0x428   :  { %5606 = vmatpush1.bf16.msra.mxu0 %v7824_v4  ;;  %v7905_v4 = vld [vmem:[%s10459_s11 + $0x48c] ss:$20 sps:$4 sm:$0xff]  }
 0x429   :  { %5713 = vmatpush1.bf16.msra.mxu1 %v7827_v5  ;;  %5616 = vmatprep.subr.bf16.mxu0 %v7832_v6  ;;  %v7906_v5 = vld [vmem:[%s10459_s11 + $0x218] ss:$20 sps:$4 sm:$0xff]   ;;  %v7903_v6 = vld [vmem:[%s10459_s11 + $0x488] ss:$20 sps:$4 sm:$0xff]  }
 0x42a   :  { %5714 = vmatprep.subr.bf16.mxu1 %v7835_v7  ;;  %v7907_v7 = vld [vmem:[%s10459_s11 + $0xd8] ss:$20 sps:$4 sm:$0xff]  }
 0x42b   :  { %5608 = vmatmul.mubr.bf16.vlgmr.msra.gmra.mrb[8].mxu0 %v10059_v27 }
 0x42c   :  { %5617 = vmatpush1.bf16.msra.mxu0 %v7830_v8  ;;  %5648 = vmatprep.mubr.bf16.mxu0 %v10067_v44  ;;  %v7910_v8 = vld [vmem:[%s10459_s11 + $0x4b4] ss:$20 sps:$4 sm:$0xff]  }
 0x42d   :  { %5715 = vmatpush1.bf16.msra.mxu1 %v7833_v9  ;;  %5618 = vmatprep.subr.bf16.mxu0 %v7838_v10  ;;  %v7911_v9 = vld [vmem:[%s10459_s11 + $0x240] ss:$20 sps:$4 sm:$0xff]   ;;  %v7908_v10 = vld [vmem:[%s10459_s11 + $0x4b0] ss:$20 sps:$4 sm:$0xff]  }
 0x42e   :  { %5716 = vmatprep.subr.bf16.mxu1 %v7841_v12  ;;  %v7912_v12 = vld [vmem:[%s10459_s11 + $0x100] ss:$20 sps:$4 sm:$0xff]  }
 0x430   :  { %5619 = vmatpush1.bf16.msra.mxu0 %v7836_v16  ;;  %v7915_v16 = vld [vmem:[%s10459_s11 + $0x4dc] ss:$20 sps:$4 sm:$0xff]  }
 0x431   :  { %5717 = vmatpush1.bf16.msra.mxu1 %v7839_v17  ;;  %5620 = vmatprep.subr.bf16.mxu0 %v7844_v18  ;;  %v7916_v17 = vld [vmem:[%s10459_s11 + $0x268] ss:$20 sps:$4 sm:$0xff]   ;;  %v7913_v18 = vld [vmem:[%s10459_s11 + $0x4d8] ss:$20 sps:$4 sm:$0xff]  }
 0x432   :  { %5718 = vmatprep.subr.bf16.mxu1 %v7847_v20  ;;  %v7917_v20 = vld [vmem:[%s10459_s11 + $0x128] ss:$20 sps:$4 sm:$0xff]  }
 0x434   :  { %5621 = vmatpush1.bf16.msra.mxu0 %v7842_v22  ;;  %v7918_v22 = vld [vmem:[%s10459_s11 + $0x3d0] ss:$20 sps:$4 sm:$0xff]  }
 0x435   :  { %5719 = vmatpush1.bf16.msra.mxu1 %v7845_v15  ;;  %5622 = vmatprep.subr.bf16.mxu0 %v7850_v19  ;;  %v7919_v15 = vld [vmem:[%s10459_s11 + $0x290] ss:$20 sps:$4 sm:$0xff]   ;;  %v7920_v19 = vld [vmem:[%s10459_s11 + $0x3f8] ss:$20 sps:$4 sm:$0xff]  }
 0x436   :  { %5720 = vmatprep.subr.bf16.mxu1 %v7853_v23  ;;  %v7921_v23 = vld [vmem:[%s10459_s11 + $0x2b8] ss:$20 sps:$4 sm:$0xff]  }
 0x438   :  { %5623 = vmatpush1.bf16.msra.mxu0 %v7848_v24  ;;  %v7922_v24 = vld [vmem:[%s10459_s11 + $0x420] ss:$20 sps:$4 sm:$0xff]  }
 0x439   :  { %5721 = vmatpush1.bf16.msra.mxu1 %v7851_v13  ;;  %5624 = vmatprep.subr.bf16.mxu0 %v7856_v28  ;;  %v7923_v13 = vld [vmem:[%s10459_s11 + $0x2e0] ss:$20 sps:$4 sm:$0xff]   ;;  %v7926_v28 = vld [vmem:[%s10459_s11 + $0x470] ss:$20 sps:$4 sm:$0xff]  }
 0x43a   :  { %5722 = vmatprep.subr.bf16.mxu1 %v7859_v29  ;;  %v7927_v29 = vld [vmem:[%s10459_s11 + $0x330] ss:$20 sps:$4 sm:$0xff]  }
 0x43c   :  { %5625 = vmatpush1.bf16.msra.mxu0 %v7854_v14  ;;  %v7928_v14 = vld [vmem:[%s10459_s11 + $0x498] ss:$20 sps:$4 sm:$0xff]  }
 0x43d   :  { %5723 = vmatpush1.bf16.msra.mxu1 %v7857_v25  ;;  %5626 = vmatprep.subr.bf16.mxu0 %v7862_v33  ;;  %v7929_v25 = vld [vmem:[%s10459_s11 + $0x358] ss:$20 sps:$4 sm:$0xff]   ;;  %v7930_v33 = vld [vmem:[%s10459_s11 + $0x4c0] ss:$20 sps:$4 sm:$0xff]  }
 0x43e   :  { %5724 = vmatprep.subr.bf16.mxu1 %v7865_v34  ;;  %v7931_v34 = vld [vmem:[%s10459_s11 + $0x380] ss:$20 sps:$4 sm:$0xff]  }
 0x440   :  { %5627 = vmatpush1.bf16.msra.mxu0 %v7860_v26  ;;  %v7932_v26 = vld [vmem:[%s10459_s11 + $0x4e8] ss:$20 sps:$4 sm:$0xff]  }
 0x441   :  { %5725 = vmatpush1.bf16.msra.mxu1 %v7863_v36  ;;  %5628 = vmatprep.subr.bf16.mxu0 %v7868_v38  ;;  %v7933_v36 = vld [vmem:[%s10459_s11 + $0x3a8] ss:$20 sps:$4 sm:$0xff]  }
 0x442   :  { %5726 = vmatprep.subr.bf16.mxu1 %v7871_v21 }
 0x444   :  { %5629 = vmatpush1.bf16.msra.mxu0 %v7866_v40 }
 0x445   :  { %5727 = vmatpush1.bf16.msra.mxu1 %v7869_v41  ;;  %5630 = vmatprep.subr.bf16.mxu0 %v7874_v42  ;;  %v22_v42 = vstv %s10462_s16 }
 0x446   :  { %5728 = vmatprep.subr.bf16.mxu1 %v7877_v32  ;;  %23 = vst [vmem:[#allocation2] sm:$0x1] %v22_v42 }
 0x448   :  { %5631 = vmatpush1.bf16.msra.mxu0 %v7872_v45 }
 0x449   :  { %5729 = vmatpush1.bf16.msra.mxu1 %v7875_v46  ;;  %5632 = vmatprep.subr.bf16.mxu0 %v7880_v47  ;;  %v10408_v47 = vld [vmem:[%s10463_s13] sm:$0x1f] }
 0x44a   :  { %6709 = vmatprep.subr.bf16.mxu1 %v7881_v37  ;;  %v5832_v37 = vrot.slane %v10408_v47, %v9741_v11 }
 0x44c   :  { %5731 = vmatmul.mubr.bf16.vlgmr.msra.gmra.mrb[8].mxu1 %v10262_v39  ;;  %5633 = vmatpush1.bf16.msra.mxu0 %v7878_v53  ;;  %v5836_v53 = vrot.slane %v10408_v47, %v9749_v52 }
 0x44d   :  { %6710 = vmatpush3.bf16.msra.mxu1 %v7882_v54  ;;  %5771 = vmatprep.mubr.bf16.mxu1 %v9866_v31  ;;  %v7892_v31 = vld [vmem:[%s10459_s11 + $0x60] ss:$20 sps:$4 sm:$0xff]  }
 0x44e   :  { %5634 = vmatprep.subr.bf16.mxu0 %v7885_v55  ;;  %6711 = vmatprep.subr.bf16.mxu1 %v7886_v30  ;;  %v5868_v30 = vrot.slane %v10415_v51, %v9749_v52 }
 0x450   :  { %5635 = vmatpush1.bf16.msra.mxu0 %v7883_v50  ;;  %v5824_v50 = vrot.slane %v10408_v47, %v9983_v2 }
 0x451   :  { %6712 = vmatpush3.bf16.msra.mxu1 %v7887_v49  ;;  %5636 = vmatprep.subr.bf16.mxu0 %v7890_v56  ;;  %v5828_v56 = vrot.slane %v10408_v47, %v9840_v1 }
 0x452   :  { %6713 = vmatprep.subr.bf16.mxu1 %v7891_v48  ;;  %v5856_v48 = vrot.slane %v10415_v51, %v9983_v2 }
 0x454   :  { %5637 = vmatpush1.bf16.msra.mxu0 %v7888_v57 }
 0x455   :  { %6714 = vmatpush3.bf16.msra.mxu1 %v7892_v31  ;;  %5638 = vmatprep.subr.bf16.mxu0 %v7895_v58  ;;  %v5898_v58 = vld [vmem:[%s10465_s15] sm:$0x1f] }
 0x456   :  { %6715 = vmatprep.subr.bf16.mxu1 %v7896_v59  ;;  %v5860_v59 = vrot.slane %v10415_v51, %v9840_v1 }
 0x458   :  { %5639 = vmatpush1.bf16.msra.mxu0 %v7893_v60 }
 0x459   :  { %6716 = vmatpush3.bf16.msra.mxu1 %v7897_v61  ;;  %5640 = vmatprep.subr.bf16.mxu0 %v7900_v62 }
 0x45a   :  { %6717 = vmatprep.subr.bf16.mxu1 %v7901_v63 }
 0x45c   :  { %5641 = vmatpush1.bf16.msra.mxu0 %v7898_v0 }
 0x45d   :  { %6718 = vmatpush3.bf16.msra.mxu1 %v7902_v3  ;;  %5642 = vmatprep.subr.bf16.mxu0 %v7905_v4 }
 0x45e   :  { %6719 = vmatprep.subr.bf16.mxu1 %v7906_v5 }
 0x460   :  { %5643 = vmatpush1.bf16.msra.mxu0 %v7903_v6 }
 0x461   :  { %6720 = vmatpush3.bf16.msra.mxu1 %v7907_v7  ;;  %5644 = vmatprep.subr.bf16.mxu0 %v7910_v8 }
 0x462   :  { %6721 = vmatprep.subr.bf16.mxu1 %v7911_v9  ;;  %v5911_v9 = vrot.slane %v5898_v58, %v9741_v11 }
 0x464   :  { %5645 = vmatpush1.bf16.msra.mxu0 %v7908_v10 }
 0x465   :  { %6722 = vmatpush3.bf16.msra.mxu1 %v7912_v12  ;;  %5646 = vmatprep.subr.bf16.mxu0 %v7915_v16  ;;  %v5903_v12 = vrot.slane %v5898_v58, %v9983_v2 }
 0x466   :  { %6723 = vmatprep.subr.bf16.mxu1 %v7916_v17  ;;  %v5907_v17 = vrot.slane %v5898_v58, %v9840_v1 }
 0x468   :  { %5647 = vmatpush1.bf16.msra.mxu0 %v7913_v18 }
 0x469   :  { %6724 = vmatpush3.bf16.msra.mxu1 %v7917_v20  ;;  %6731 = vmatprep.subr.bf16.mxu0 %v7918_v22 }
 0x46b   :  { %5649 = vmatmul.mubr.bf16.vlgmr.msra.gmra.mrb[8].mxu0 %v10262_v39 }
 0x46c   :  { %5772 = vmatmul.mubr.bf16.vlgmr.msra.gmra.mrb[12].mxu1 %v10059_v27  ;;  %6732 = vmatpush3.bf16.msra.mxu0 %v7919_v15  ;;  %v7924_v27 = vld [vmem:[%s10459_s11 + $0x448] ss:$20 sps:$4 sm:$0xff]  }
 0x46d   :  { %5811 = vmatprep.mubr.bf16.mxu0 %v10067_v44  ;;  %6733 = vmatprep.subr.bf16.mxu0 %v7920_v19  ;;  %v7925_v44 = vld [vmem:[%s10459_s11 + $0x308] ss:$20 sps:$4 sm:$0xff]  }
 0x470   :  { %6734 = vmatpush3.bf16.msra.mxu0 %v7921_v23 }
 0x471   :  { %6735 = vmatprep.subr.bf16.mxu0 %v7922_v24  ;;  %v5915_v24 = vrot.slane %v5898_v58, %v9749_v52  ;;  %v5839_v52 = vsub.s32 4, %v8149_v43 }
 0x474   :  { %6736 = vmatpush3.bf16.msra.mxu0 %v7923_v13 }
 0x475   :  { %6737 = vmatprep.subr.bf16.mxu0 %v7924_v27 }
 0x478   :  { %6738 = vmatpush3.bf16.msra.mxu0 %v7925_v44 }
 0x479   :  { %6739 = vmatprep.subr.bf16.mxu0 %v7926_v28 }
 0x47c   :  { %6740 = vmatpush3.bf16.msra.mxu0 %v7927_v29 }
 0x47d   :  { %6741 = vmatprep.subr.bf16.mxu0 %v7928_v14 }
 0x480   :  { %6742 = vmatpush3.bf16.msra.mxu0 %v7929_v25 }
 0x481   :  { %6743 = vmatprep.subr.bf16.mxu0 %v7930_v33 }
 0x484   :  { %6744 = vmatpush3.bf16.msra.mxu0 %v7931_v34 }
 0x485   :  { %6745 = vmatprep.subr.bf16.mxu0 %v7932_v26 }
 0x488   :  { %6746 = vmatpush3.bf16.msra.mxu0 %v7933_v36 }
 0x48b   :  { %5812 = vmatmul.mubr.bf16.vlgmr.msra.gmra.mrb[16].mxu0 %v10262_v39  ;;  %v5864_v39 = vrot.slane %v10415_v51, %v9741_v11 }
 0x4be   :  { %v4737_v38 = vpop.f32.mrb[12].mxu0 }
 0x4bf   :  { %v6797_v21 = vpop.f32.mrb[13].mxu0 }
 0x4c0   :  { %v4740_v40 = vpop.f32.mrb[14].mxu0 }
 0x4c1   :  { %v6798_v41 = vpop.f32.mrb[15].mxu0  ;;  %v5840_v40 = vrot.slane %v10408_v47, %v5839_v52 }
 0x51f   :  { %v5732_v32 = vpop.f32.mrb[8].mxu1 }
 0x520   :  { %v5734_v35 = vpop.f32.mrb[9].mxu1  ;;  %v5848_v54 = vmul.f32 %v5832_v37, %v5732_v32  ;;  %v5919_v37 = vrot.slane %v5898_v58, %v5839_v52 }
 0x521   :  { %v5736_v45 = vpop.f32.mrb[10].mxu1  ;;  %v5849_v55 = vmul.f32 %v5836_v53, %v5734_v35  ;;  %v5872_v35 = vrot.slane %v10415_v51, %v5839_v52 }
 0x522   :  { %v5737_v46 = vpop.f32.mrb[11].mxu1  ;;  %v5880_v49 = vadd.f32 %v5864_v39, %v5848_v54 }
 0x523   :  { %v5881_v57 = vadd.f32 %v5868_v30, %v5849_v55  ;;  %v6688_v30 = vld [vmem:[#allocation2] ss:$0 sm:$0xff] }
 0x524   :  { %v5890_v63 = vmul.f32 0.01, %v5880_v49  ;;  %vm5885_vm9 = vcmp.ge.f32.partialorder %v5880_v49, 0.0 }
 0x525   :  { %v5891_v10 = vmul.f32 0.01, %v5881_v57  ;;  %vm5886_vm10 = vcmp.ge.f32.partialorder %v5881_v57, 0.0 }
 0x526   :  { %v5895_v15 = vsel %vm5885_vm9, %v5880_v49, %v5890_v63 }
 0x527   :  { %v5896_v11 = vsel %vm5886_vm10, %v5881_v57, %v5891_v10  ;;  %v5927_v28 = vmul.f32 %v5911_v9, %v5895_v15 }
 0x528   :  { %v5928_v1 = vmul.f32 %v5915_v24, %v5896_v11 }
 0x529   :  { %v5934_v25 = vsel %vm5930_vm13, %v5927_v28, 0.0 }
 0x52a   :  { %v5936_v34 = vsel %vm5930_vm13, %v5928_v1, 0.0 }
 0x53e   :  { %v5650_v31 = vpop.f32.mrb[8].mxu0 }
 0x53f   :  { %v5846_v60 = vmul.f32 %v5824_v50, %v5650_v31  ;;  %v6725_v61 = vpop.f32.mrb[12].mxu1  ;;  %v5652_v62 = vpop.f32.mrb[9].mxu0 }
 0x540   :  { %v5847_v0 = vmul.f32 %v5828_v56, %v5652_v62  ;;  %v6726_v3 = vpop.f32.mrb[13].mxu1  ;;  %v5654_v4 = vpop.f32.mrb[10].mxu0 }
 0x541   :  { %v5878_v5 = vadd.f32 %v5856_v48, %v5846_v60  ;;  %v6727_v6 = vadd.f32 %v6726_v3, %v6725_v61  ;;  %v6728_v7 = vpop.f32.mrb[14].mxu1  ;;  %v5655_v8 = vpop.f32.mrb[11].mxu0 }
 0x542   :  { %v5879_v16 = vadd.f32 %v5860_v59, %v5847_v0  ;;  %v6729_v18 = vpop.f32.mrb[15].mxu1 }
 0x543   :  { %vm5883_vm11 = vcmp.ge.f32.partialorder %v5878_v5, 0.0  ;;  %v5888_v20 = vmul.f32 0.01, %v5878_v5  ;;  %v5774_v22 = vadd.f32 %v6727_v6, %v4737_v38 }
 0x544   :  { %vm5884_vm12 = vcmp.ge.f32.partialorder %v5879_v16, 0.0  ;;  %v5889_v19 = vmul.f32 0.01, %v5879_v16 }
 0x545   :  { %v5893_v23 = vsel %vm5883_vm11, %v5878_v5, %v5888_v20 }
 0x546   :  { %v5925_v13 = vmul.f32 %v5903_v12, %v5893_v23  ;;  %v5894_v27 = vsel %vm5884_vm12, %v5879_v16, %v5889_v19 }
 0x547   :  { %v5926_v44 = vmul.f32 %v5907_v17, %v5894_v27 }
 0x548   :  { %v5931_v2 = vsel %vm5930_vm13, %v5925_v13, 0.0 }
 0x549   :  { %v5932_v29 = vsel %vm5930_vm13, %v5926_v44, 0.0 }
 0x54a   :  { %v5933_v14 = vadd.f32 %v5932_v29, %v5931_v2 }
 0x54c   :  { %v5935_v33 = vadd.f32 %v5934_v25, %v5933_v14 }
 0x54e   :  { %v5937_v26 = vadd.f32 %v5936_v34, %v5935_v33 }
 0x55e   :  { %v6747_v36 = vpop.f32.mrb[16].mxu0 }
 0x55f   :  { %v6748_v38 = vpop.f32.mrb[17].mxu0 }
 0x560   :  { %v6749_v21 = vadd.f32 %v6748_v38, %v6747_v36  ;;  %v6750_v41 = vpop.f32.mrb[18].mxu0 }
 0x561   :  { %v6751_v42 = vpop.f32.mrb[19].mxu0 }
 0x562   :  { %v5814_v32 = vadd.f32 %v6749_v21, %v5774_v22 }
 0x564   :  { %v5850_v45 = vmul.f32 %v5840_v40, %v5814_v32 }
 0x566   :  { %v5882_v46 = vadd.f32 %v5872_v35, %v5850_v45 }
 0x568   :  { %vm5887_vm14 = vcmp.ge.f32.partialorder %v5882_v46, 0.0  ;;  %v5892_v53 = vmul.f32 0.01, %v5882_v46 }
 0x56a   :  { %v5897_v54 = vsel %vm5887_vm14, %v5882_v46, %v5892_v53 }
 0x56b   :  { %v5929_v39 = vmul.f32 %v5919_v37, %v5897_v54 }
 0x56d   :  { %v5938_v55 = vsel %vm5930_vm13, %v5929_v39, 0.0 }
 0x56e   :  { %v5939_v43 = vadd.f32 %v5938_v55, %v5937_v26 }
 0x570   :  { %5940 = vadd.xlane.f32.xlu0 %v5939_v43 }
 0x5fd   :  { %v5941_v50 = vpop.xlane.xlu0 %5940 }
 0x5fe   :  { %v5949_v49 = vadd.f32 %v6688_v30, %v5941_v50 }
 0x600   :  { %v5950_v47 = vsub.f32 0.0, %v5949_v49 }
 0x602   :  { %v5951_v56 = vmul.f32 1.442695, %v5950_v47 }
 0x604   :  { %7934 = vpow2.f32 %v5951_v56 }
 0x60e   :  { %v7935_v48 = vpop.eup %7934 }
 0x60f   :  { %v5953_v57 = vadd.f32 1.0, %v7935_v48 }
 0x611   :  { %7936 = vrcp.f32 %v5953_v57 }
 0x61b   :  { %v7937_v51 = vpop.eup %7936 }
 0x61c   :  { %5957 = vst.msk [vmem:[%s10466_s17] sm:$0x3] %vm5956_vm15, %v7937_v51 }

</bundles_post_ra>
